<compile_context>
chip_gen: v7x
topology: tpu7x:2x2x1
jax: 0.10.0
libtpu: 0.0.40
codegen_flags: <defaults>
</compile_context>

<pallas_src>
import numpy as np
import jax
import jax.numpy as jnp
from jax.experimental import pallas as pl
from jax.experimental.pallas import tpu as pltpu


_LANE = 128
_NEG = -1e30  # masks padded logit lanes out of the log_softmax


def _round_up(x, m):
    return (x + m - 1) // m * m


# ----------------------------- Pallas kernel --------------------------------

def _net_kernel(x_ref, m1_ref, b1_ref, n2_ref, b2_ref, w1_ref, bf1_ref,
                w2_ref, bf2_ref, o_ref):
    """Whole-network forward for one batch tile of NB images.

    x_ref  : (4, 7*NB, 28)    input rows split mod 4; rows = (u, image)
    m1_ref : (2, 5, 28, 128)  banded conv1 weights, lanes = (out_col, c_out)
    n2_ref : (2, 5, 128, 128) banded conv2 weights
    w1_ref : (4, 128, 128)    fc1 weight (torch NCHW-flatten folded in), per p2
    w2_ref : (128, 128)       fc2 weight
    b*_ref : (1, 128)         biases (lane-tiled / padded)
    o_ref  : (NB, 128)        log-softmax output (first 10 lanes valid)
    """
    nb = o_ref.shape[0]
    f32 = jnp.float32
    bf16 = jnp.bfloat16

    # -------------------- conv1 + maxpool(2) + relu -------------------------
    # a1[r][(u, n), q1*10 + c] = relu(maxpool2(conv1(x)))[n, 2u + r, q1, c]
    a1 = []
    for r in range(2):                        # parity of the pooled output row
        pooled = None
        for dh in range(2):                   # pool-window row offset
            for dw in range(2):               # pool-window col offset
                acc = None
                for ki in range(5):           # conv tap row
                    a = 2 * r + dh + ki       # input-row offset (mod-4 split)
                    xs = x_ref[a % 4, (a // 4) * nb:(a // 4 + 6) * nb, :]
                    part = jnp.dot(xs.astype(bf16), m1_ref[dw, ki],
                                   preferred_element_type=f32)
                    acc = part if acc is None else acc + part
                z = acc + b1_ref[...]
                pooled = z if pooled is None else jnp.maximum(pooled, z)
        a1.append(jnp.maximum(pooled, 0.0))    # (6*NB, 128) f32

    # -------------------- conv2 + maxpool(2) + relu -------------------------
    # TODO(synk): Dropout2d between conv2 and the pool is identity in eval
    # mode; training-mode channel dropout is not implemented.
    pooled2 = None
    for dh in range(2):
        for dw in range(2):
            acc = None
            for ki in range(5):
                s = dh + ki
                src = a1[s % 2][(s // 2) * nb:(s // 2 + 4) * nb, :]
                part = jnp.dot(src.astype(bf16), n2_ref[dw, ki],
                               preferred_element_type=f32)
                acc = part if acc is None else acc + part
            z = acc + b2_ref[...]
            pooled2 = z if pooled2 is None else jnp.maximum(pooled2, z)
    a2 = jnp.maximum(pooled2, 0.0)             # (4*NB, 128) f32, rows = (p2, n)

    # ----------------------------- fc1 + relu -------------------------------
    h = None
    for p2 in range(4):
        blk = a2[p2 * nb:(p2 + 1) * nb, :]
        part = jnp.dot(blk.astype(bf16), w1_ref[p2], preferred_element_type=f32)
        h = part if h is None else h + part
    h = jnp.maximum(h + bf1_ref[...], 0.0)     # (NB, 128), lanes >= 50 are 0
    # TODO(synk): F.dropout is identity in eval mode; not implemented for training.

    # ------------------------ fc2 + log_softmax -----------------------------
    logits = jnp.dot(h.astype(bf16), w2_ref[...], preferred_element_type=f32)
    logits = logits + bf2_ref[...]             # padded lanes carry -1e30
    m = jnp.max(logits, axis=-1, keepdims=True)
    z = logits - m
    lse = jnp.log(jnp.sum(jnp.exp(z), axis=-1, keepdims=True))
    o_ref[...] = (z - lse).astype(o_ref.dtype)


# --------------------------- weight preparation ------------------------------

def _prepare_weights(params):
    """Pre-expand conv weights into banded matmul matrices, fold torch's
    NCHW flatten into fc1, and pad everything to 128 lanes."""
    f32 = jnp.float32
    bf16 = jnp.bfloat16

    # conv1: M1[dw, ki, w, q1*10+c] = w1[c, 0, ki, w - 2*q1 - dw] (if valid)
    sel1 = np.zeros((2, 28, 12, 5), np.float32)
    for dw in range(2):
        for q1 in range(12):
            for kj in range(5):
                sel1[dw, 2 * q1 + dw + kj, q1, kj] = 1.0
    w1 = params["conv1_w"].astype(f32)[:, 0, :, :]               # (10, 5, 5)
    m1 = jnp.einsum("dwqk,cik->diwqc", jnp.asarray(sel1), w1)    # (2,5,28,12,10)
    m1 = jnp.pad(m1.reshape(2, 5, 28, 120),
                 ((0, 0), (0, 0), (0, 0), (0, _LANE - 120)))

    # conv2: N2[dw, ki, q1*10+c1, q2*20+c2] = w2[c2, c1, ki, q1 - 2*q2 - dw]
    sel2 = np.zeros((2, 12, 4, 5), np.float32)
    for dw in range(2):
        for q2 in range(4):
            for kj in range(5):
                sel2[dw, 2 * q2 + dw + kj, q2, kj] = 1.0
    w2 = params["conv2_w"].astype(f32)                           # (20, 10, 5, 5)
    n2 = jnp.einsum("dpqk,abik->dipbqa", jnp.asarray(sel2), w2)  # (2,5,12,10,4,20)
    n2 = jnp.pad(n2.reshape(2, 5, 120, 80),
                 ((0, 0), (0, 0), (0, _LANE - 120), (0, _LANE - 80)))

    # fc1: torch flattens (N, 20, 4, 4) as c2*16 + p2*4 + q2; fold that
    # permutation into the weight, split by pooled row p2.
    w_fc1 = params["fc1_w"].astype(f32).reshape(50, 20, 4, 4)    # (j, c2, p2, q2)
    w1p = jnp.transpose(w_fc1, (2, 3, 1, 0)).reshape(4, 80, 50)  # (p2, q2*20+c2, j)
    w1p = jnp.pad(w1p, ((0, 0), (0, _LANE - 80), (0, _LANE - 50)))

    w2p = jnp.pad(params["fc2_w"].astype(f32).T,
                  ((0, _LANE - 50), (0, _LANE - 10)))

    b1p = jnp.pad(jnp.tile(params["conv1_b"].astype(f32), 12), (0, _LANE - 120))
    b2p = jnp.pad(jnp.tile(params["conv2_b"].astype(f32), 4), (0, _LANE - 80))
    bf1 = jnp.pad(params["fc1_b"].astype(f32), (0, _LANE - 50))
    bf2 = jnp.concatenate([params["fc2_b"].astype(f32),
                           jnp.full((_LANE - 10,), _NEG, f32)])

    return (m1.astype(bf16), b1p.reshape(1, _LANE),
            n2.astype(bf16), b2p.reshape(1, _LANE),
            w1p.astype(bf16), bf1.reshape(1, _LANE),
            w2p.astype(bf16), bf2.reshape(1, _LANE))


# ------------------------------- forward -------------------------------------

def net_forward(x, params, *, batch_tile=64):
    """Forward pass of the PyTorch `Net` (inference semantics). x: (N,1,28,28)."""
    n = x.shape[0]
    nb = min(batch_tile, _round_up(n, 8))      # batch tile (multiple of 8)
    npad = _round_up(n, nb)
    tiles = npad // nb

    x2 = jnp.pad(x.reshape(n, 28, 28).astype(jnp.float32),
                 ((0, npad - n), (0, 0), (0, 0)))
    # Split input rows mod 4 and make the image index minor within each tile:
    #   xg[t, m, u*NB + i, w] = x[t*NB + i, 4*u + m, w]
    xg = x2.reshape(tiles, nb, 7, 4, 28).transpose(0, 3, 2, 1, 4)
    xg = xg.reshape(tiles, 4, 7 * nb, 28)

    m1, b1p, n2, b2p, w1p, bf1, w2p, bf2 = _prepare_weights(params)

    flops = tiles * 2 * nb * (40 * 6 * 28 * 128 + 20 * 4 * 128 * 128
                              + 5 * 128 * 128)
    bytes_accessed = (xg.size * 4
                      + (m1.size + n2.size + w1p.size + w2p.size) * 2
                      + 4 * 4 * _LANE + npad * _LANE * 4)

    const = lambda i: (0, 0)
    out = pl.pallas_call(
        _net_kernel,
        out_shape=jax.ShapeDtypeStruct((npad, _LANE), jnp.float32),
        grid=(tiles,),
        in_specs=[
            pl.BlockSpec((None, 4, 7 * nb, 28), lambda i: (i, 0, 0, 0)),
            pl.BlockSpec((2, 5, 28, _LANE), lambda i: (0, 0, 0, 0)),
            pl.BlockSpec((1, _LANE), const),
            pl.BlockSpec((2, 5, _LANE, _LANE), lambda i: (0, 0, 0, 0)),
            pl.BlockSpec((1, _LANE), const),
            pl.BlockSpec((4, _LANE, _LANE), lambda i: (0, 0, 0)),
            pl.BlockSpec((1, _LANE), const),
            pl.BlockSpec((_LANE, _LANE), const),
            pl.BlockSpec((1, _LANE), const),
        ],
        out_specs=pl.BlockSpec((nb, _LANE), lambda i: (i, 0)),
        compiler_params=pltpu.CompilerParams(
            dimension_semantics=("parallel",)),
        cost_estimate=pl.CostEstimate(flops=flops,
                                      transcendentals=npad * (_LANE + 1),
                                      bytes_accessed=bytes_accessed),
    )(xg, m1, b1p, n2, b2p, w1p, bf1, w2p, bf2)

    return out[:n, :10]


# ------------------------------ parameters ------------------------------------

def init_params(key):
    ks = jax.random.split(key, 8)

    def unif(k, shape, fan_in):
        bound = 1.0 / jnp.sqrt(float(fan_in))
        return jax.random.uniform(k, shape, jnp.float32, -bound, bound)

    return {
        "conv1_w": unif(ks[0], (10, 1, 5, 5), 25),
        "conv1_b": unif(ks[1], (10,), 25),
        "conv2_w": unif(ks[2], (20, 10, 5, 5), 250),
        "conv2_b": unif(ks[3], (20,), 250),
        "fc1_w":   unif(ks[4], (50, 320), 320),
        "fc1_b":   unif(ks[5], (50,), 320),
        "fc2_w":   unif(ks[6], (10, 50), 50),
        "fc2_b":   unif(ks[7], (10,), 50),
    }


if __name__ == "__main__":
    key = jax.random.PRNGKey(0)
    k_x, k_p = jax.random.split(key)

    # MNIST-shaped input (the 320-feature fc1 forces 28x28x1); small batch = 2.
    x = jax.random.normal(k_x, (2, 1, 28, 28), dtype=jnp.float32)
    params = init_params(k_p)

    fwd = jax.jit(net_forward)
    log_probs = jax.block_until_ready(fwd(x, params))

    assert log_probs.shape == (2, 10)
    assert bool(jnp.all(jnp.isfinite(log_probs)))
    # log_softmax rows must exponentiate to probability distributions
    row_sums = jnp.sum(jnp.exp(log_probs), axis=-1)
    assert bool(jnp.all(jnp.abs(row_sums - 1.0) < 1e-4))

    print("KERNEL_OK")
</pallas_src>

<mosaic_0001>
module attributes {stable_mosaic.version = 11 : i64} {
  func.func @_net_kernel(%arg0: i32, %arg1: memref<1x4x56x28xf32, #tpu.memory_space<vmem>>, %arg2: memref<2x5x28x128xbf16, #tpu.memory_space<vmem>>, %arg3: memref<1x128xf32, #tpu.memory_space<vmem>>, %arg4: memref<2x5x128x128xbf16, #tpu.memory_space<vmem>>, %arg5: memref<1x128xf32, #tpu.memory_space<vmem>>, %arg6: memref<4x128x128xbf16, #tpu.memory_space<vmem>>, %arg7: memref<1x128xf32, #tpu.memory_space<vmem>>, %arg8: memref<128x128xbf16, #tpu.memory_space<vmem>>, %arg9: memref<1x128xf32, #tpu.memory_space<vmem>>, %arg10: memref<8x128xf32, #tpu.memory_space<vmem>>) attributes {dimension_semantics = [#tpu.dimension_semantics<parallel>], iteration_bounds = array<i64: 1>, scalar_prefetch = 0 : i64, scratch_operands = 0 : i64, tpu.core_type = #tpu.core_type<tc>, window_params = [{transform_indices = @transform_0, window_bounds = array<i64: 1, 4, 56, 28>}, {pipeline_mode = #tpu.pipeline_mode<synchronous>, transform_indices = @transform_1, window_bounds = array<i64: 2, 5, 28, 128>}, {pipeline_mode = #tpu.pipeline_mode<synchronous>, transform_indices = @transform_2, window_bounds = array<i64: 1, 128>}, {pipeline_mode = #tpu.pipeline_mode<synchronous>, transform_indices = @transform_3, window_bounds = array<i64: 2, 5, 128, 128>}, {pipeline_mode = #tpu.pipeline_mode<synchronous>, transform_indices = @transform_4, window_bounds = array<i64: 1, 128>}, {pipeline_mode = #tpu.pipeline_mode<synchronous>, transform_indices = @transform_5, window_bounds = array<i64: 4, 128, 128>}, {pipeline_mode = #tpu.pipeline_mode<synchronous>, transform_indices = @transform_6, window_bounds = array<i64: 1, 128>}, {pipeline_mode = #tpu.pipeline_mode<synchronous>, transform_indices = @transform_7, window_bounds = array<i64: 128, 128>}, {pipeline_mode = #tpu.pipeline_mode<synchronous>, transform_indices = @transform_8, window_bounds = array<i64: 1, 128>}, {transform_indices = @transform_9, window_bounds = array<i64: 8, 128>}]} {
    %c0 = arith.constant 0 : index
    %c0_0 = arith.constant 0 : index
    %c0_1 = arith.constant 0 : index
    %c0_2 = arith.constant 0 : index
    %0 = vector.load %arg1[%c0, %c0_0, %c0_1, %c0_2] : memref<1x4x56x28xf32, #tpu.memory_space<vmem>>, vector<1x1x48x28xf32>
    %1 = vector.shape_cast %0 : vector<1x1x48x28xf32> to vector<48x28xf32>
    %2 = arith.truncf %1 : vector<48x28xf32> to vector<48x28xbf16>
    %c0_3 = arith.constant 0 : index
    %c0_4 = arith.constant 0 : index
    %c0_5 = arith.constant 0 : index
    %c0_6 = arith.constant 0 : index
    %3 = vector.load %arg2[%c0_3, %c0_4, %c0_5, %c0_6] : memref<2x5x28x128xbf16, #tpu.memory_space<vmem>>, vector<1x1x28x128xbf16>
    %4 = vector.shape_cast %3 : vector<1x1x28x128xbf16> to vector<28x128xbf16>
    %cst = arith.constant dense<0.000000e+00> : vector<48x128xf32>
    %5 = tpu.matmul %2, %4, %cst {dimension_numbers = #tpu.dot_dimension_numbers<[1], [0], [0], [1], [0, 0, 1, 1], [], []>} : vector<48x28xbf16>, vector<28x128xbf16>, vector<48x128xf32> -> vector<48x128xf32>
    %c0_7 = arith.constant 0 : index
    %c1 = arith.constant 1 : index
    %c0_8 = arith.constant 0 : index
    %c0_9 = arith.constant 0 : index
    %6 = vector.load %arg1[%c0_7, %c1, %c0_8, %c0_9] : memref<1x4x56x28xf32, #tpu.memory_space<vmem>>, vector<1x1x48x28xf32>
    %7 = vector.shape_cast %6 : vector<1x1x48x28xf32> to vector<48x28xf32>
    %8 = arith.truncf %7 : vector<48x28xf32> to vector<48x28xbf16>
    %c0_10 = arith.constant 0 : index
    %c1_11 = arith.constant 1 : index
    %c0_12 = arith.constant 0 : index
    %c0_13 = arith.constant 0 : index
    %9 = vector.load %arg2[%c0_10, %c1_11, %c0_12, %c0_13] : memref<2x5x28x128xbf16, #tpu.memory_space<vmem>>, vector<1x1x28x128xbf16>
    %10 = vector.shape_cast %9 : vector<1x1x28x128xbf16> to vector<28x128xbf16>
    %cst_14 = arith.constant dense<0.000000e+00> : vector<48x128xf32>
    %11 = tpu.matmul %8, %10, %cst_14 {dimension_numbers = #tpu.dot_dimension_numbers<[1], [0], [0], [1], [0, 0, 1, 1], [], []>} : vector<48x28xbf16>, vector<28x128xbf16>, vector<48x128xf32> -> vector<48x128xf32>
    %12 = arith.addf %5, %11 : vector<48x128xf32>
    %c0_15 = arith.constant 0 : index
    %c2 = arith.constant 2 : index
    %c0_16 = arith.constant 0 : index
    %c0_17 = arith.constant 0 : index
    %13 = vector.load %arg1[%c0_15, %c2, %c0_16, %c0_17] : memref<1x4x56x28xf32, #tpu.memory_space<vmem>>, vector<1x1x48x28xf32>
    %14 = vector.shape_cast %13 : vector<1x1x48x28xf32> to vector<48x28xf32>
    %15 = arith.truncf %14 : vector<48x28xf32> to vector<48x28xbf16>
    %c0_18 = arith.constant 0 : index
    %c2_19 = arith.constant 2 : index
    %c0_20 = arith.constant 0 : index
    %c0_21 = arith.constant 0 : index
    %16 = vector.load %arg2[%c0_18, %c2_19, %c0_20, %c0_21] : memref<2x5x28x128xbf16, #tpu.memory_space<vmem>>, vector<1x1x28x128xbf16>
    %17 = vector.shape_cast %16 : vector<1x1x28x128xbf16> to vector<28x128xbf16>
    %cst_22 = arith.constant dense<0.000000e+00> : vector<48x128xf32>
    %18 = tpu.matmul %15, %17, %cst_22 {dimension_numbers = #tpu.dot_dimension_numbers<[1], [0], [0], [1], [0, 0, 1, 1], [], []>} : vector<48x28xbf16>, vector<28x128xbf16>, vector<48x128xf32> -> vector<48x128xf32>
    %19 = arith.addf %12, %18 : vector<48x128xf32>
    %c0_23 = arith.constant 0 : index
    %c3 = arith.constant 3 : index
    %c0_24 = arith.constant 0 : index
    %c0_25 = arith.constant 0 : index
    %20 = vector.load %arg1[%c0_23, %c3, %c0_24, %c0_25] : memref<1x4x56x28xf32, #tpu.memory_space<vmem>>, vector<1x1x48x28xf32>
    %21 = vector.shape_cast %20 : vector<1x1x48x28xf32> to vector<48x28xf32>
    %22 = arith.truncf %21 : vector<48x28xf32> to vector<48x28xbf16>
    %c0_26 = arith.constant 0 : index
    %c3_27 = arith.constant 3 : index
    %c0_28 = arith.constant 0 : index
    %c0_29 = arith.constant 0 : index
    %23 = vector.load %arg2[%c0_26, %c3_27, %c0_28, %c0_29] : memref<2x5x28x128xbf16, #tpu.memory_space<vmem>>, vector<1x1x28x128xbf16>
    %24 = vector.shape_cast %23 : vector<1x1x28x128xbf16> to vector<28x128xbf16>
    %cst_30 = arith.constant dense<0.000000e+00> : vector<48x128xf32>
    %25 = tpu.matmul %22, %24, %cst_30 {dimension_numbers = #tpu.dot_dimension_numbers<[1], [0], [0], [1], [0, 0, 1, 1], [], []>} : vector<48x28xbf16>, vector<28x128xbf16>, vector<48x128xf32> -> vector<48x128xf32>
    %26 = arith.addf %19, %25 : vector<48x128xf32>
    %c0_31 = arith.constant 0 : index
    %c0_32 = arith.constant 0 : index
    %c8 = arith.constant 8 : index
    %c0_33 = arith.constant 0 : index
    %27 = vector.load %arg1[%c0_31, %c0_32, %c8, %c0_33] : memref<1x4x56x28xf32, #tpu.memory_space<vmem>>, vector<1x1x48x28xf32>
    %28 = vector.shape_cast %27 : vector<1x1x48x28xf32> to vector<48x28xf32>
    %29 = arith.truncf %28 : vector<48x28xf32> to vector<48x28xbf16>
    %c0_34 = arith.constant 0 : index
    %c4 = arith.constant 4 : index
    %c0_35 = arith.constant 0 : index
    %c0_36 = arith.constant 0 : index
    %30 = vector.load %arg2[%c0_34, %c4, %c0_35, %c0_36] : memref<2x5x28x128xbf16, #tpu.memory_space<vmem>>, vector<1x1x28x128xbf16>
    %31 = vector.shape_cast %30 : vector<1x1x28x128xbf16> to vector<28x128xbf16>
    %cst_37 = arith.constant dense<0.000000e+00> : vector<48x128xf32>
    %32 = tpu.matmul %29, %31, %cst_37 {dimension_numbers = #tpu.dot_dimension_numbers<[1], [0], [0], [1], [0, 0, 1, 1], [], []>} : vector<48x28xbf16>, vector<28x128xbf16>, vector<48x128xf32> -> vector<48x128xf32>
    %33 = arith.addf %26, %32 : vector<48x128xf32>
    %c0_38 = arith.constant 0 : index
    %c0_39 = arith.constant 0 : index
    %34 = vector.load %arg3[%c0_38, %c0_39] : memref<1x128xf32, #tpu.memory_space<vmem>>, vector<1x128xf32>
    %35 = vector.broadcast %34 : vector<1x128xf32> to vector<48x128xf32>
    %36 = arith.addf %33, %35 : vector<48x128xf32>
    %c0_40 = arith.constant 0 : index
    %c0_41 = arith.constant 0 : index
    %c0_42 = arith.constant 0 : index
    %c0_43 = arith.constant 0 : index
    %37 = vector.load %arg1[%c0_40, %c0_41, %c0_42, %c0_43] : memref<1x4x56x28xf32, #tpu.memory_space<vmem>>, vector<1x1x48x28xf32>
    %38 = vector.shape_cast %37 : vector<1x1x48x28xf32> to vector<48x28xf32>
    %39 = arith.truncf %38 : vector<48x28xf32> to vector<48x28xbf16>
    %c1_44 = arith.constant 1 : index
    %c0_45 = arith.constant 0 : index
    %c0_46 = arith.constant 0 : index
    %c0_47 = arith.constant 0 : index
    %40 = vector.load %arg2[%c1_44, %c0_45, %c0_46, %c0_47] : memref<2x5x28x128xbf16, #tpu.memory_space<vmem>>, vector<1x1x28x128xbf16>
    %41 = vector.shape_cast %40 : vector<1x1x28x128xbf16> to vector<28x128xbf16>
    %cst_48 = arith.constant dense<0.000000e+00> : vector<48x128xf32>
    %42 = tpu.matmul %39, %41, %cst_48 {dimension_numbers = #tpu.dot_dimension_numbers<[1], [0], [0], [1], [0, 0, 1, 1], [], []>} : vector<48x28xbf16>, vector<28x128xbf16>, vector<48x128xf32> -> vector<48x128xf32>
    %c0_49 = arith.constant 0 : index
    %c1_50 = arith.constant 1 : index
    %c0_51 = arith.constant 0 : index
    %c0_52 = arith.constant 0 : index
    %43 = vector.load %arg1[%c0_49, %c1_50, %c0_51, %c0_52] : memref<1x4x56x28xf32, #tpu.memory_space<vmem>>, vector<1x1x48x28xf32>
    %44 = vector.shape_cast %43 : vector<1x1x48x28xf32> to vector<48x28xf32>
    %45 = arith.truncf %44 : vector<48x28xf32> to vector<48x28xbf16>
    %c1_53 = arith.constant 1 : index
    %c1_54 = arith.constant 1 : index
    %c0_55 = arith.constant 0 : index
    %c0_56 = arith.constant 0 : index
    %46 = vector.load %arg2[%c1_53, %c1_54, %c0_55, %c0_56] : memref<2x5x28x128xbf16, #tpu.memory_space<vmem>>, vector<1x1x28x128xbf16>
    %47 = vector.shape_cast %46 : vector<1x1x28x128xbf16> to vector<28x128xbf16>
    %cst_57 = arith.constant dense<0.000000e+00> : vector<48x128xf32>
    %48 = tpu.matmul %45, %47, %cst_57 {dimension_numbers = #tpu.dot_dimension_numbers<[1], [0], [0], [1], [0, 0, 1, 1], [], []>} : vector<48x28xbf16>, vector<28x128xbf16>, vector<48x128xf32> -> vector<48x128xf32>
    %49 = arith.addf %42, %48 : vector<48x128xf32>
    %c0_58 = arith.constant 0 : index
    %c2_59 = arith.constant 2 : index
    %c0_60 = arith.constant 0 : index
    %c0_61 = arith.constant 0 : index
    %50 = vector.load %arg1[%c0_58, %c2_59, %c0_60, %c0_61] : memref<1x4x56x28xf32, #tpu.memory_space<vmem>>, vector<1x1x48x28xf32>
    %51 = vector.shape_cast %50 : vector<1x1x48x28xf32> to vector<48x28xf32>
    %52 = arith.truncf %51 : vector<48x28xf32> to vector<48x28xbf16>
    %c1_62 = arith.constant 1 : index
    %c2_63 = arith.constant 2 : index
    %c0_64 = arith.constant 0 : index
    %c0_65 = arith.constant 0 : index
    %53 = vector.load %arg2[%c1_62, %c2_63, %c0_64, %c0_65] : memref<2x5x28x128xbf16, #tpu.memory_space<vmem>>, vector<1x1x28x128xbf16>
    %54 = vector.shape_cast %53 : vector<1x1x28x128xbf16> to vector<28x128xbf16>
    %cst_66 = arith.constant dense<0.000000e+00> : vector<48x128xf32>
    %55 = tpu.matmul %52, %54, %cst_66 {dimension_numbers = #tpu.dot_dimension_numbers<[1], [0], [0], [1], [0, 0, 1, 1], [], []>} : vector<48x28xbf16>, vector<28x128xbf16>, vector<48x128xf32> -> vector<48x128xf32>
    %56 = arith.addf %49, %55 : vector<48x128xf32>
    %c0_67 = arith.constant 0 : index
    %c3_68 = arith.constant 3 : index
    %c0_69 = arith.constant 0 : index
    %c0_70 = arith.constant 0 : index
    %57 = vector.load %arg1[%c0_67, %c3_68, %c0_69, %c0_70] : memref<1x4x56x28xf32, #tpu.memory_space<vmem>>, vector<1x1x48x28xf32>
    %58 = vector.shape_cast %57 : vector<1x1x48x28xf32> to vector<48x28xf32>
    %59 = arith.truncf %58 : vector<48x28xf32> to vector<48x28xbf16>
    %c1_71 = arith.constant 1 : index
    %c3_72 = arith.constant 3 : index
    %c0_73 = arith.constant 0 : index
    %c0_74 = arith.constant 0 : index
    %60 = vector.load %arg2[%c1_71, %c3_72, %c0_73, %c0_74] : memref<2x5x28x128xbf16, #tpu.memory_space<vmem>>, vector<1x1x28x128xbf16>
    %61 = vector.shape_cast %60 : vector<1x1x28x128xbf16> to vector<28x128xbf16>
    %cst_75 = arith.constant dense<0.000000e+00> : vector<48x128xf32>
    %62 = tpu.matmul %59, %61, %cst_75 {dimension_numbers = #tpu.dot_dimension_numbers<[1], [0], [0], [1], [0, 0, 1, 1], [], []>} : vector<48x28xbf16>, vector<28x128xbf16>, vector<48x128xf32> -> vector<48x128xf32>
    %63 = arith.addf %56, %62 : vector<48x128xf32>
    %c0_76 = arith.constant 0 : index
    %c0_77 = arith.constant 0 : index
    %c8_78 = arith.constant 8 : index
    %c0_79 = arith.constant 0 : index
    %64 = vector.load %arg1[%c0_76, %c0_77, %c8_78, %c0_79] : memref<1x4x56x28xf32, #tpu.memory_space<vmem>>, vector<1x1x48x28xf32>
    %65 = vector.shape_cast %64 : vector<1x1x48x28xf32> to vector<48x28xf32>
    %66 = arith.truncf %65 : vector<48x28xf32> to vector<48x28xbf16>
    %c1_80 = arith.constant 1 : index
    %c4_81 = arith.constant 4 : index
    %c0_82 = arith.constant 0 : index
    %c0_83 = arith.constant 0 : index
    %67 = vector.load %arg2[%c1_80, %c4_81, %c0_82, %c0_83] : memref<2x5x28x128xbf16, #tpu.memory_space<vmem>>, vector<1x1x28x128xbf16>
    %68 = vector.shape_cast %67 : vector<1x1x28x128xbf16> to vector<28x128xbf16>
    %cst_84 = arith.constant dense<0.000000e+00> : vector<48x128xf32>
    %69 = tpu.matmul %66, %68, %cst_84 {dimension_numbers = #tpu.dot_dimension_numbers<[1], [0], [0], [1], [0, 0, 1, 1], [], []>} : vector<48x28xbf16>, vector<28x128xbf16>, vector<48x128xf32> -> vector<48x128xf32>
    %70 = arith.addf %63, %69 : vector<48x128xf32>
    %c0_85 = arith.constant 0 : index
    %c0_86 = arith.constant 0 : index
    %71 = vector.load %arg3[%c0_85, %c0_86] : memref<1x128xf32, #tpu.memory_space<vmem>>, vector<1x128xf32>
    %72 = vector.broadcast %71 : vector<1x128xf32> to vector<48x128xf32>
    %73 = arith.addf %70, %72 : vector<48x128xf32>
    %74 = arith.maximumf %36, %73 : vector<48x128xf32>
    %c0_87 = arith.constant 0 : index
    %c1_88 = arith.constant 1 : index
    %c0_89 = arith.constant 0 : index
    %c0_90 = arith.constant 0 : index
    %75 = vector.load %arg1[%c0_87, %c1_88, %c0_89, %c0_90] : memref<1x4x56x28xf32, #tpu.memory_space<vmem>>, vector<1x1x48x28xf32>
    %76 = vector.shape_cast %75 : vector<1x1x48x28xf32> to vector<48x28xf32>
    %77 = arith.truncf %76 : vector<48x28xf32> to vector<48x28xbf16>
    %c0_91 = arith.constant 0 : index
    %c0_92 = arith.constant 0 : index
    %c0_93 = arith.constant 0 : index
    %c0_94 = arith.constant 0 : index
    %78 = vector.load %arg2[%c0_91, %c0_92, %c0_93, %c0_94] : memref<2x5x28x128xbf16, #tpu.memory_space<vmem>>, vector<1x1x28x128xbf16>
    %79 = vector.shape_cast %78 : vector<1x1x28x128xbf16> to vector<28x128xbf16>
    %cst_95 = arith.constant dense<0.000000e+00> : vector<48x128xf32>
    %80 = tpu.matmul %77, %79, %cst_95 {dimension_numbers = #tpu.dot_dimension_numbers<[1], [0], [0], [1], [0, 0, 1, 1], [], []>} : vector<48x28xbf16>, vector<28x128xbf16>, vector<48x128xf32> -> vector<48x128xf32>
    %c0_96 = arith.constant 0 : index
    %c2_97 = arith.constant 2 : index
    %c0_98 = arith.constant 0 : index
    %c0_99 = arith.constant 0 : index
    %81 = vector.load %arg1[%c0_96, %c2_97, %c0_98, %c0_99] : memref<1x4x56x28xf32, #tpu.memory_space<vmem>>, vector<1x1x48x28xf32>
    %82 = vector.shape_cast %81 : vector<1x1x48x28xf32> to vector<48x28xf32>
    %83 = arith.truncf %82 : vector<48x28xf32> to vector<48x28xbf16>
    %c0_100 = arith.constant 0 : index
    %c1_101 = arith.constant 1 : index
    %c0_102 = arith.constant 0 : index
    %c0_103 = arith.constant 0 : index
    %84 = vector.load %arg2[%c0_100, %c1_101, %c0_102, %c0_103] : memref<2x5x28x128xbf16, #tpu.memory_space<vmem>>, vector<1x1x28x128xbf16>
    %85 = vector.shape_cast %84 : vector<1x1x28x128xbf16> to vector<28x128xbf16>
    %cst_104 = arith.constant dense<0.000000e+00> : vector<48x128xf32>
    %86 = tpu.matmul %83, %85, %cst_104 {dimension_numbers = #tpu.dot_dimension_numbers<[1], [0], [0], [1], [0, 0, 1, 1], [], []>} : vector<48x28xbf16>, vector<28x128xbf16>, vector<48x128xf32> -> vector<48x128xf32>
    %87 = arith.addf %80, %86 : vector<48x128xf32>
    %c0_105 = arith.constant 0 : index
    %c3_106 = arith.constant 3 : index
    %c0_107 = arith.constant 0 : index
    %c0_108 = arith.constant 0 : index
    %88 = vector.load %arg1[%c0_105, %c3_106, %c0_107, %c0_108] : memref<1x4x56x28xf32, #tpu.memory_space<vmem>>, vector<1x1x48x28xf32>
    %89 = vector.shape_cast %88 : vector<1x1x48x28xf32> to vector<48x28xf32>
    %90 = arith.truncf %89 : vector<48x28xf32> to vector<48x28xbf16>
    %c0_109 = arith.constant 0 : index
    %c2_110 = arith.constant 2 : index
    %c0_111 = arith.constant 0 : index
    %c0_112 = arith.constant 0 : index
    %91 = vector.load %arg2[%c0_109, %c2_110, %c0_111, %c0_112] : memref<2x5x28x128xbf16, #tpu.memory_space<vmem>>, vector<1x1x28x128xbf16>
    %92 = vector.shape_cast %91 : vector<1x1x28x128xbf16> to vector<28x128xbf16>
    %cst_113 = arith.constant dense<0.000000e+00> : vector<48x128xf32>
    %93 = tpu.matmul %90, %92, %cst_113 {dimension_numbers = #tpu.dot_dimension_numbers<[1], [0], [0], [1], [0, 0, 1, 1], [], []>} : vector<48x28xbf16>, vector<28x128xbf16>, vector<48x128xf32> -> vector<48x128xf32>
    %94 = arith.addf %87, %93 : vector<48x128xf32>
    %c0_114 = arith.constant 0 : index
    %c0_115 = arith.constant 0 : index
    %c8_116 = arith.constant 8 : index
    %c0_117 = arith.constant 0 : index
    %95 = vector.load %arg1[%c0_114, %c0_115, %c8_116, %c0_117] : memref<1x4x56x28xf32, #tpu.memory_space<vmem>>, vector<1x1x48x28xf32>
    %96 = vector.shape_cast %95 : vector<1x1x48x28xf32> to vector<48x28xf32>
    %97 = arith.truncf %96 : vector<48x28xf32> to vector<48x28xbf16>
    %c0_118 = arith.constant 0 : index
    %c3_119 = arith.constant 3 : index
    %c0_120 = arith.constant 0 : index
    %c0_121 = arith.constant 0 : index
    %98 = vector.load %arg2[%c0_118, %c3_119, %c0_120, %c0_121] : memref<2x5x28x128xbf16, #tpu.memory_space<vmem>>, vector<1x1x28x128xbf16>
    %99 = vector.shape_cast %98 : vector<1x1x28x128xbf16> to vector<28x128xbf16>
    %cst_122 = arith.constant dense<0.000000e+00> : vector<48x128xf32>
    %100 = tpu.matmul %97, %99, %cst_122 {dimension_numbers = #tpu.dot_dimension_numbers<[1], [0], [0], [1], [0, 0, 1, 1], [], []>} : vector<48x28xbf16>, vector<28x128xbf16>, vector<48x128xf32> -> vector<48x128xf32>
    %101 = arith.addf %94, %100 : vector<48x128xf32>
    %c0_123 = arith.constant 0 : index
    %c1_124 = arith.constant 1 : index
    %c8_125 = arith.constant 8 : index
    %c0_126 = arith.constant 0 : index
    %102 = vector.load %arg1[%c0_123, %c1_124, %c8_125, %c0_126] : memref<1x4x56x28xf32, #tpu.memory_space<vmem>>, vector<1x1x48x28xf32>
    %103 = vector.shape_cast %102 : vector<1x1x48x28xf32> to vector<48x28xf32>
    %104 = arith.truncf %103 : vector<48x28xf32> to vector<48x28xbf16>
    %c0_127 = arith.constant 0 : index
    %c4_128 = arith.constant 4 : index
    %c0_129 = arith.constant 0 : index
    %c0_130 = arith.constant 0 : index
    %105 = vector.load %arg2[%c0_127, %c4_128, %c0_129, %c0_130] : memref<2x5x28x128xbf16, #tpu.memory_space<vmem>>, vector<1x1x28x128xbf16>
    %106 = vector.shape_cast %105 : vector<1x1x28x128xbf16> to vector<28x128xbf16>
    %cst_131 = arith.constant dense<0.000000e+00> : vector<48x128xf32>
    %107 = tpu.matmul %104, %106, %cst_131 {dimension_numbers = #tpu.dot_dimension_numbers<[1], [0], [0], [1], [0, 0, 1, 1], [], []>} : vector<48x28xbf16>, vector<28x128xbf16>, vector<48x128xf32> -> vector<48x128xf32>
    %108 = arith.addf %101, %107 : vector<48x128xf32>
    %c0_132 = arith.constant 0 : index
    %c0_133 = arith.constant 0 : index
    %109 = vector.load %arg3[%c0_132, %c0_133] : memref<1x128xf32, #tpu.memory_space<vmem>>, vector<1x128xf32>
    %110 = vector.broadcast %109 : vector<1x128xf32> to vector<48x128xf32>
    %111 = arith.addf %108, %110 : vector<48x128xf32>
    %112 = arith.maximumf %74, %111 : vector<48x128xf32>
    %c0_134 = arith.constant 0 : index
    %c1_135 = arith.constant 1 : index
    %c0_136 = arith.constant 0 : index
    %c0_137 = arith.constant 0 : index
    %113 = vector.load %arg1[%c0_134, %c1_135, %c0_136, %c0_137] : memref<1x4x56x28xf32, #tpu.memory_space<vmem>>, vector<1x1x48x28xf32>
    %114 = vector.shape_cast %113 : vector<1x1x48x28xf32> to vector<48x28xf32>
    %115 = arith.truncf %114 : vector<48x28xf32> to vector<48x28xbf16>
    %c1_138 = arith.constant 1 : index
    %c0_139 = arith.constant 0 : index
    %c0_140 = arith.constant 0 : index
    %c0_141 = arith.constant 0 : index
    %116 = vector.load %arg2[%c1_138, %c0_139, %c0_140, %c0_141] : memref<2x5x28x128xbf16, #tpu.memory_space<vmem>>, vector<1x1x28x128xbf16>
    %117 = vector.shape_cast %116 : vector<1x1x28x128xbf16> to vector<28x128xbf16>
    %cst_142 = arith.constant dense<0.000000e+00> : vector<48x128xf32>
    %118 = tpu.matmul %115, %117, %cst_142 {dimension_numbers = #tpu.dot_dimension_numbers<[1], [0], [0], [1], [0, 0, 1, 1], [], []>} : vector<48x28xbf16>, vector<28x128xbf16>, vector<48x128xf32> -> vector<48x128xf32>
    %c0_143 = arith.constant 0 : index
    %c2_144 = arith.constant 2 : index
    %c0_145 = arith.constant 0 : index
    %c0_146 = arith.constant 0 : index
    %119 = vector.load %arg1[%c0_143, %c2_144, %c0_145, %c0_146] : memref<1x4x56x28xf32, #tpu.memory_space<vmem>>, vector<1x1x48x28xf32>
    %120 = vector.shape_cast %119 : vector<1x1x48x28xf32> to vector<48x28xf32>
    %121 = arith.truncf %120 : vector<48x28xf32> to vector<48x28xbf16>
    %c1_147 = arith.constant 1 : index
    %c1_148 = arith.constant 1 : index
    %c0_149 = arith.constant 0 : index
    %c0_150 = arith.constant 0 : index
    %122 = vector.load %arg2[%c1_147, %c1_148, %c0_149, %c0_150] : memref<2x5x28x128xbf16, #tpu.memory_space<vmem>>, vector<1x1x28x128xbf16>
    %123 = vector.shape_cast %122 : vector<1x1x28x128xbf16> to vector<28x128xbf16>
    %cst_151 = arith.constant dense<0.000000e+00> : vector<48x128xf32>
    %124 = tpu.matmul %121, %123, %cst_151 {dimension_numbers = #tpu.dot_dimension_numbers<[1], [0], [0], [1], [0, 0, 1, 1], [], []>} : vector<48x28xbf16>, vector<28x128xbf16>, vector<48x128xf32> -> vector<48x128xf32>
    %125 = arith.addf %118, %124 : vector<48x128xf32>
    %c0_152 = arith.constant 0 : index
    %c3_153 = arith.constant 3 : index
    %c0_154 = arith.constant 0 : index
    %c0_155 = arith.constant 0 : index
    %126 = vector.load %arg1[%c0_152, %c3_153, %c0_154, %c0_155] : memref<1x4x56x28xf32, #tpu.memory_space<vmem>>, vector<1x1x48x28xf32>
    %127 = vector.shape_cast %126 : vector<1x1x48x28xf32> to vector<48x28xf32>
    %128 = arith.truncf %127 : vector<48x28xf32> to vector<48x28xbf16>
    %c1_156 = arith.constant 1 : index
    %c2_157 = arith.constant 2 : index
    %c0_158 = arith.constant 0 : index
    %c0_159 = arith.constant 0 : index
    %129 = vector.load %arg2[%c1_156, %c2_157, %c0_158, %c0_159] : memref<2x5x28x128xbf16, #tpu.memory_space<vmem>>, vector<1x1x28x128xbf16>
    %130 = vector.shape_cast %129 : vector<1x1x28x128xbf16> to vector<28x128xbf16>
    %cst_160 = arith.constant dense<0.000000e+00> : vector<48x128xf32>
    %131 = tpu.matmul %128, %130, %cst_160 {dimension_numbers = #tpu.dot_dimension_numbers<[1], [0], [0], [1], [0, 0, 1, 1], [], []>} : vector<48x28xbf16>, vector<28x128xbf16>, vector<48x128xf32> -> vector<48x128xf32>
    %132 = arith.addf %125, %131 : vector<48x128xf32>
    %c0_161 = arith.constant 0 : index
    %c0_162 = arith.constant 0 : index
    %c8_163 = arith.constant 8 : index
    %c0_164 = arith.constant 0 : index
    %133 = vector.load %arg1[%c0_161, %c0_162, %c8_163, %c0_164] : memref<1x4x56x28xf32, #tpu.memory_space<vmem>>, vector<1x1x48x28xf32>
    %134 = vector.shape_cast %133 : vector<1x1x48x28xf32> to vector<48x28xf32>
    %135 = arith.truncf %134 : vector<48x28xf32> to vector<48x28xbf16>
    %c1_165 = arith.constant 1 : index
    %c3_166 = arith.constant 3 : index
    %c0_167 = arith.constant 0 : index
    %c0_168 = arith.constant 0 : index
    %136 = vector.load %arg2[%c1_165, %c3_166, %c0_167, %c0_168] : memref<2x5x28x128xbf16, #tpu.memory_space<vmem>>, vector<1x1x28x128xbf16>
    %137 = vector.shape_cast %136 : vector<1x1x28x128xbf16> to vector<28x128xbf16>
    %cst_169 = arith.constant dense<0.000000e+00> : vector<48x128xf32>
    %138 = tpu.matmul %135, %137, %cst_169 {dimension_numbers = #tpu.dot_dimension_numbers<[1], [0], [0], [1], [0, 0, 1, 1], [], []>} : vector<48x28xbf16>, vector<28x128xbf16>, vector<48x128xf32> -> vector<48x128xf32>
    %139 = arith.addf %132, %138 : vector<48x128xf32>
    %c0_170 = arith.constant 0 : index
    %c1_171 = arith.constant 1 : index
    %c8_172 = arith.constant 8 : index
    %c0_173 = arith.constant 0 : index
    %140 = vector.load %arg1[%c0_170, %c1_171, %c8_172, %c0_173] : memref<1x4x56x28xf32, #tpu.memory_space<vmem>>, vector<1x1x48x28xf32>
    %141 = vector.shape_cast %140 : vector<1x1x48x28xf32> to vector<48x28xf32>
    %142 = arith.truncf %141 : vector<48x28xf32> to vector<48x28xbf16>
    %c1_174 = arith.constant 1 : index
    %c4_175 = arith.constant 4 : index
    %c0_176 = arith.constant 0 : index
    %c0_177 = arith.constant 0 : index
    %143 = vector.load %arg2[%c1_174, %c4_175, %c0_176, %c0_177] : memref<2x5x28x128xbf16, #tpu.memory_space<vmem>>, vector<1x1x28x128xbf16>
    %144 = vector.shape_cast %143 : vector<1x1x28x128xbf16> to vector<28x128xbf16>
    %cst_178 = arith.constant dense<0.000000e+00> : vector<48x128xf32>
    %145 = tpu.matmul %142, %144, %cst_178 {dimension_numbers = #tpu.dot_dimension_numbers<[1], [0], [0], [1], [0, 0, 1, 1], [], []>} : vector<48x28xbf16>, vector<28x128xbf16>, vector<48x128xf32> -> vector<48x128xf32>
    %146 = arith.addf %139, %145 : vector<48x128xf32>
    %c0_179 = arith.constant 0 : index
    %c0_180 = arith.constant 0 : index
    %147 = vector.load %arg3[%c0_179, %c0_180] : memref<1x128xf32, #tpu.memory_space<vmem>>, vector<1x128xf32>
    %148 = vector.broadcast %147 : vector<1x128xf32> to vector<48x128xf32>
    %149 = arith.addf %146, %148 : vector<48x128xf32>
    %150 = arith.maximumf %112, %149 : vector<48x128xf32>
    %cst_181 = arith.constant 0.000000e+00 : f32
    %151 = vector.broadcast %cst_181 : f32 to vector<48x128xf32>
    %152 = arith.maximumf %150, %151 : vector<48x128xf32>
    %c0_182 = arith.constant 0 : index
    %c2_183 = arith.constant 2 : index
    %c0_184 = arith.constant 0 : index
    %c0_185 = arith.constant 0 : index
    %153 = vector.load %arg1[%c0_182, %c2_183, %c0_184, %c0_185] : memref<1x4x56x28xf32, #tpu.memory_space<vmem>>, vector<1x1x48x28xf32>
    %154 = vector.shape_cast %153 : vector<1x1x48x28xf32> to vector<48x28xf32>
    %155 = arith.truncf %154 : vector<48x28xf32> to vector<48x28xbf16>
    %c0_186 = arith.constant 0 : index
    %c0_187 = arith.constant 0 : index
    %c0_188 = arith.constant 0 : index
    %c0_189 = arith.constant 0 : index
    %156 = vector.load %arg2[%c0_186, %c0_187, %c0_188, %c0_189] : memref<2x5x28x128xbf16, #tpu.memory_space<vmem>>, vector<1x1x28x128xbf16>
    %157 = vector.shape_cast %156 : vector<1x1x28x128xbf16> to vector<28x128xbf16>
    %cst_190 = arith.constant dense<0.000000e+00> : vector<48x128xf32>
    %158 = tpu.matmul %155, %157, %cst_190 {dimension_numbers = #tpu.dot_dimension_numbers<[1], [0], [0], [1], [0, 0, 1, 1], [], []>} : vector<48x28xbf16>, vector<28x128xbf16>, vector<48x128xf32> -> vector<48x128xf32>
    %c0_191 = arith.constant 0 : index
    %c3_192 = arith.constant 3 : index
    %c0_193 = arith.constant 0 : index
    %c0_194 = arith.constant 0 : index
    %159 = vector.load %arg1[%c0_191, %c3_192, %c0_193, %c0_194] : memref<1x4x56x28xf32, #tpu.memory_space<vmem>>, vector<1x1x48x28xf32>
    %160 = vector.shape_cast %159 : vector<1x1x48x28xf32> to vector<48x28xf32>
    %161 = arith.truncf %160 : vector<48x28xf32> to vector<48x28xbf16>
    %c0_195 = arith.constant 0 : index
    %c1_196 = arith.constant 1 : index
    %c0_197 = arith.constant 0 : index
    %c0_198 = arith.constant 0 : index
    %162 = vector.load %arg2[%c0_195, %c1_196, %c0_197, %c0_198] : memref<2x5x28x128xbf16, #tpu.memory_space<vmem>>, vector<1x1x28x128xbf16>
    %163 = vector.shape_cast %162 : vector<1x1x28x128xbf16> to vector<28x128xbf16>
    %cst_199 = arith.constant dense<0.000000e+00> : vector<48x128xf32>
    %164 = tpu.matmul %161, %163, %cst_199 {dimension_numbers = #tpu.dot_dimension_numbers<[1], [0], [0], [1], [0, 0, 1, 1], [], []>} : vector<48x28xbf16>, vector<28x128xbf16>, vector<48x128xf32> -> vector<48x128xf32>
    %165 = arith.addf %158, %164 : vector<48x128xf32>
    %c0_200 = arith.constant 0 : index
    %c0_201 = arith.constant 0 : index
    %c8_202 = arith.constant 8 : index
    %c0_203 = arith.constant 0 : index
    %166 = vector.load %arg1[%c0_200, %c0_201, %c8_202, %c0_203] : memref<1x4x56x28xf32, #tpu.memory_space<vmem>>, vector<1x1x48x28xf32>
    %167 = vector.shape_cast %166 : vector<1x1x48x28xf32> to vector<48x28xf32>
    %168 = arith.truncf %167 : vector<48x28xf32> to vector<48x28xbf16>
    %c0_204 = arith.constant 0 : index
    %c2_205 = arith.constant 2 : index
    %c0_206 = arith.constant 0 : index
    %c0_207 = arith.constant 0 : index
    %169 = vector.load %arg2[%c0_204, %c2_205, %c0_206, %c0_207] : memref<2x5x28x128xbf16, #tpu.memory_space<vmem>>, vector<1x1x28x128xbf16>
    %170 = vector.shape_cast %169 : vector<1x1x28x128xbf16> to vector<28x128xbf16>
    %cst_208 = arith.constant dense<0.000000e+00> : vector<48x128xf32>
    %171 = tpu.matmul %168, %170, %cst_208 {dimension_numbers = #tpu.dot_dimension_numbers<[1], [0], [0], [1], [0, 0, 1, 1], [], []>} : vector<48x28xbf16>, vector<28x128xbf16>, vector<48x128xf32> -> vector<48x128xf32>
    %172 = arith.addf %165, %171 : vector<48x128xf32>
    %c0_209 = arith.constant 0 : index
    %c1_210 = arith.constant 1 : index
    %c8_211 = arith.constant 8 : index
    %c0_212 = arith.constant 0 : index
    %173 = vector.load %arg1[%c0_209, %c1_210, %c8_211, %c0_212] : memref<1x4x56x28xf32, #tpu.memory_space<vmem>>, vector<1x1x48x28xf32>
    %174 = vector.shape_cast %173 : vector<1x1x48x28xf32> to vector<48x28xf32>
    %175 = arith.truncf %174 : vector<48x28xf32> to vector<48x28xbf16>
    %c0_213 = arith.constant 0 : index
    %c3_214 = arith.constant 3 : index
    %c0_215 = arith.constant 0 : index
    %c0_216 = arith.constant 0 : index
    %176 = vector.load %arg2[%c0_213, %c3_214, %c0_215, %c0_216] : memref<2x5x28x128xbf16, #tpu.memory_space<vmem>>, vector<1x1x28x128xbf16>
    %177 = vector.shape_cast %176 : vector<1x1x28x128xbf16> to vector<28x128xbf16>
    %cst_217 = arith.constant dense<0.000000e+00> : vector<48x128xf32>
    %178 = tpu.matmul %175, %177, %cst_217 {dimension_numbers = #tpu.dot_dimension_numbers<[1], [0], [0], [1], [0, 0, 1, 1], [], []>} : vector<48x28xbf16>, vector<28x128xbf16>, vector<48x128xf32> -> vector<48x128xf32>
    %179 = arith.addf %172, %178 : vector<48x128xf32>
    %c0_218 = arith.constant 0 : index
    %c2_219 = arith.constant 2 : index
    %c8_220 = arith.constant 8 : index
    %c0_221 = arith.constant 0 : index
    %180 = vector.load %arg1[%c0_218, %c2_219, %c8_220, %c0_221] : memref<1x4x56x28xf32, #tpu.memory_space<vmem>>, vector<1x1x48x28xf32>
    %181 = vector.shape_cast %180 : vector<1x1x48x28xf32> to vector<48x28xf32>
    %182 = arith.truncf %181 : vector<48x28xf32> to vector<48x28xbf16>
    %c0_222 = arith.constant 0 : index
    %c4_223 = arith.constant 4 : index
    %c0_224 = arith.constant 0 : index
    %c0_225 = arith.constant 0 : index
    %183 = vector.load %arg2[%c0_222, %c4_223, %c0_224, %c0_225] : memref<2x5x28x128xbf16, #tpu.memory_space<vmem>>, vector<1x1x28x128xbf16>
    %184 = vector.shape_cast %183 : vector<1x1x28x128xbf16> to vector<28x128xbf16>
    %cst_226 = arith.constant dense<0.000000e+00> : vector<48x128xf32>
    %185 = tpu.matmul %182, %184, %cst_226 {dimension_numbers = #tpu.dot_dimension_numbers<[1], [0], [0], [1], [0, 0, 1, 1], [], []>} : vector<48x28xbf16>, vector<28x128xbf16>, vector<48x128xf32> -> vector<48x128xf32>
    %186 = arith.addf %179, %185 : vector<48x128xf32>
    %c0_227 = arith.constant 0 : index
    %c0_228 = arith.constant 0 : index
    %187 = vector.load %arg3[%c0_227, %c0_228] : memref<1x128xf32, #tpu.memory_space<vmem>>, vector<1x128xf32>
    %188 = vector.broadcast %187 : vector<1x128xf32> to vector<48x128xf32>
    %189 = arith.addf %186, %188 : vector<48x128xf32>
    %c0_229 = arith.constant 0 : index
    %c2_230 = arith.constant 2 : index
    %c0_231 = arith.constant 0 : index
    %c0_232 = arith.constant 0 : index
    %190 = vector.load %arg1[%c0_229, %c2_230, %c0_231, %c0_232] : memref<1x4x56x28xf32, #tpu.memory_space<vmem>>, vector<1x1x48x28xf32>
    %191 = vector.shape_cast %190 : vector<1x1x48x28xf32> to vector<48x28xf32>
    %192 = arith.truncf %191 : vector<48x28xf32> to vector<48x28xbf16>
    %c1_233 = arith.constant 1 : index
    %c0_234 = arith.constant 0 : index
    %c0_235 = arith.constant 0 : index
    %c0_236 = arith.constant 0 : index
    %193 = vector.load %arg2[%c1_233, %c0_234, %c0_235, %c0_236] : memref<2x5x28x128xbf16, #tpu.memory_space<vmem>>, vector<1x1x28x128xbf16>
    %194 = vector.shape_cast %193 : vector<1x1x28x128xbf16> to vector<28x128xbf16>
    %cst_237 = arith.constant dense<0.000000e+00> : vector<48x128xf32>
    %195 = tpu.matmul %192, %194, %cst_237 {dimension_numbers = #tpu.dot_dimension_numbers<[1], [0], [0], [1], [0, 0, 1, 1], [], []>} : vector<48x28xbf16>, vector<28x128xbf16>, vector<48x128xf32> -> vector<48x128xf32>
    %c0_238 = arith.constant 0 : index
    %c3_239 = arith.constant 3 : index
    %c0_240 = arith.constant 0 : index
    %c0_241 = arith.constant 0 : index
    %196 = vector.load %arg1[%c0_238, %c3_239, %c0_240, %c0_241] : memref<1x4x56x28xf32, #tpu.memory_space<vmem>>, vector<1x1x48x28xf32>
    %197 = vector.shape_cast %196 : vector<1x1x48x28xf32> to vector<48x28xf32>
    %198 = arith.truncf %197 : vector<48x28xf32> to vector<48x28xbf16>
    %c1_242 = arith.constant 1 : index
    %c1_243 = arith.constant 1 : index
    %c0_244 = arith.constant 0 : index
    %c0_245 = arith.constant 0 : index
    %199 = vector.load %arg2[%c1_242, %c1_243, %c0_244, %c0_245] : memref<2x5x28x128xbf16, #tpu.memory_space<vmem>>, vector<1x1x28x128xbf16>
    %200 = vector.shape_cast %199 : vector<1x1x28x128xbf16> to vector<28x128xbf16>
    %cst_246 = arith.constant dense<0.000000e+00> : vector<48x128xf32>
    %201 = tpu.matmul %198, %200, %cst_246 {dimension_numbers = #tpu.dot_dimension_numbers<[1], [0], [0], [1], [0, 0, 1, 1], [], []>} : vector<48x28xbf16>, vector<28x128xbf16>, vector<48x128xf32> -> vector<48x128xf32>
    %202 = arith.addf %195, %201 : vector<48x128xf32>
    %c0_247 = arith.constant 0 : index
    %c0_248 = arith.constant 0 : index
    %c8_249 = arith.constant 8 : index
    %c0_250 = arith.constant 0 : index
    %203 = vector.load %arg1[%c0_247, %c0_248, %c8_249, %c0_250] : memref<1x4x56x28xf32, #tpu.memory_space<vmem>>, vector<1x1x48x28xf32>
    %204 = vector.shape_cast %203 : vector<1x1x48x28xf32> to vector<48x28xf32>
    %205 = arith.truncf %204 : vector<48x28xf32> to vector<48x28xbf16>
    %c1_251 = arith.constant 1 : index
    %c2_252 = arith.constant 2 : index
    %c0_253 = arith.constant 0 : index
    %c0_254 = arith.constant 0 : index
    %206 = vector.load %arg2[%c1_251, %c2_252, %c0_253, %c0_254] : memref<2x5x28x128xbf16, #tpu.memory_space<vmem>>, vector<1x1x28x128xbf16>
    %207 = vector.shape_cast %206 : vector<1x1x28x128xbf16> to vector<28x128xbf16>
    %cst_255 = arith.constant dense<0.000000e+00> : vector<48x128xf32>
    %208 = tpu.matmul %205, %207, %cst_255 {dimension_numbers = #tpu.dot_dimension_numbers<[1], [0], [0], [1], [0, 0, 1, 1], [], []>} : vector<48x28xbf16>, vector<28x128xbf16>, vector<48x128xf32> -> vector<48x128xf32>
    %209 = arith.addf %202, %208 : vector<48x128xf32>
    %c0_256 = arith.constant 0 : index
    %c1_257 = arith.constant 1 : index
    %c8_258 = arith.constant 8 : index
    %c0_259 = arith.constant 0 : index
    %210 = vector.load %arg1[%c0_256, %c1_257, %c8_258, %c0_259] : memref<1x4x56x28xf32, #tpu.memory_space<vmem>>, vector<1x1x48x28xf32>
    %211 = vector.shape_cast %210 : vector<1x1x48x28xf32> to vector<48x28xf32>
    %212 = arith.truncf %211 : vector<48x28xf32> to vector<48x28xbf16>
    %c1_260 = arith.constant 1 : index
    %c3_261 = arith.constant 3 : index
    %c0_262 = arith.constant 0 : index
    %c0_263 = arith.constant 0 : index
    %213 = vector.load %arg2[%c1_260, %c3_261, %c0_262, %c0_263] : memref<2x5x28x128xbf16, #tpu.memory_space<vmem>>, vector<1x1x28x128xbf16>
    %214 = vector.shape_cast %213 : vector<1x1x28x128xbf16> to vector<28x128xbf16>
    %cst_264 = arith.constant dense<0.000000e+00> : vector<48x128xf32>
    %215 = tpu.matmul %212, %214, %cst_264 {dimension_numbers = #tpu.dot_dimension_numbers<[1], [0], [0], [1], [0, 0, 1, 1], [], []>} : vector<48x28xbf16>, vector<28x128xbf16>, vector<48x128xf32> -> vector<48x128xf32>
    %216 = arith.addf %209, %215 : vector<48x128xf32>
    %c0_265 = arith.constant 0 : index
    %c2_266 = arith.constant 2 : index
    %c8_267 = arith.constant 8 : index
    %c0_268 = arith.constant 0 : index
    %217 = vector.load %arg1[%c0_265, %c2_266, %c8_267, %c0_268] : memref<1x4x56x28xf32, #tpu.memory_space<vmem>>, vector<1x1x48x28xf32>
    %218 = vector.shape_cast %217 : vector<1x1x48x28xf32> to vector<48x28xf32>
    %219 = arith.truncf %218 : vector<48x28xf32> to vector<48x28xbf16>
    %c1_269 = arith.constant 1 : index
    %c4_270 = arith.constant 4 : index
    %c0_271 = arith.constant 0 : index
    %c0_272 = arith.constant 0 : index
    %220 = vector.load %arg2[%c1_269, %c4_270, %c0_271, %c0_272] : memref<2x5x28x128xbf16, #tpu.memory_space<vmem>>, vector<1x1x28x128xbf16>
    %221 = vector.shape_cast %220 : vector<1x1x28x128xbf16> to vector<28x128xbf16>
    %cst_273 = arith.constant dense<0.000000e+00> : vector<48x128xf32>
    %222 = tpu.matmul %219, %221, %cst_273 {dimension_numbers = #tpu.dot_dimension_numbers<[1], [0], [0], [1], [0, 0, 1, 1], [], []>} : vector<48x28xbf16>, vector<28x128xbf16>, vector<48x128xf32> -> vector<48x128xf32>
    %223 = arith.addf %216, %222 : vector<48x128xf32>
    %c0_274 = arith.constant 0 : index
    %c0_275 = arith.constant 0 : index
    %224 = vector.load %arg3[%c0_274, %c0_275] : memref<1x128xf32, #tpu.memory_space<vmem>>, vector<1x128xf32>
    %225 = vector.broadcast %224 : vector<1x128xf32> to vector<48x128xf32>
    %226 = arith.addf %223, %225 : vector<48x128xf32>
    %227 = arith.maximumf %189, %226 : vector<48x128xf32>
    %c0_276 = arith.constant 0 : index
    %c3_277 = arith.constant 3 : index
    %c0_278 = arith.constant 0 : index
    %c0_279 = arith.constant 0 : index
    %228 = vector.load %arg1[%c0_276, %c3_277, %c0_278, %c0_279] : memref<1x4x56x28xf32, #tpu.memory_space<vmem>>, vector<1x1x48x28xf32>
    %229 = vector.shape_cast %228 : vector<1x1x48x28xf32> to vector<48x28xf32>
    %230 = arith.truncf %229 : vector<48x28xf32> to vector<48x28xbf16>
    %c0_280 = arith.constant 0 : index
    %c0_281 = arith.constant 0 : index
    %c0_282 = arith.constant 0 : index
    %c0_283 = arith.constant 0 : index
    %231 = vector.load %arg2[%c0_280, %c0_281, %c0_282, %c0_283] : memref<2x5x28x128xbf16, #tpu.memory_space<vmem>>, vector<1x1x28x128xbf16>
    %232 = vector.shape_cast %231 : vector<1x1x28x128xbf16> to vector<28x128xbf16>
    %cst_284 = arith.constant dense<0.000000e+00> : vector<48x128xf32>
    %233 = tpu.matmul %230, %232, %cst_284 {dimension_numbers = #tpu.dot_dimension_numbers<[1], [0], [0], [1], [0, 0, 1, 1], [], []>} : vector<48x28xbf16>, vector<28x128xbf16>, vector<48x128xf32> -> vector<48x128xf32>
    %c0_285 = arith.constant 0 : index
    %c0_286 = arith.constant 0 : index
    %c8_287 = arith.constant 8 : index
    %c0_288 = arith.constant 0 : index
    %234 = vector.load %arg1[%c0_285, %c0_286, %c8_287, %c0_288] : memref<1x4x56x28xf32, #tpu.memory_space<vmem>>, vector<1x1x48x28xf32>
    %235 = vector.shape_cast %234 : vector<1x1x48x28xf32> to vector<48x28xf32>
    %236 = arith.truncf %235 : vector<48x28xf32> to vector<48x28xbf16>
    %c0_289 = arith.constant 0 : index
    %c1_290 = arith.constant 1 : index
    %c0_291 = arith.constant 0 : index
    %c0_292 = arith.constant 0 : index
    %237 = vector.load %arg2[%c0_289, %c1_290, %c0_291, %c0_292] : memref<2x5x28x128xbf16, #tpu.memory_space<vmem>>, vector<1x1x28x128xbf16>
    %238 = vector.shape_cast %237 : vector<1x1x28x128xbf16> to vector<28x128xbf16>
    %cst_293 = arith.constant dense<0.000000e+00> : vector<48x128xf32>
    %239 = tpu.matmul %236, %238, %cst_293 {dimension_numbers = #tpu.dot_dimension_numbers<[1], [0], [0], [1], [0, 0, 1, 1], [], []>} : vector<48x28xbf16>, vector<28x128xbf16>, vector<48x128xf32> -> vector<48x128xf32>
    %240 = arith.addf %233, %239 : vector<48x128xf32>
    %c0_294 = arith.constant 0 : index
    %c1_295 = arith.constant 1 : index
    %c8_296 = arith.constant 8 : index
    %c0_297 = arith.constant 0 : index
    %241 = vector.load %arg1[%c0_294, %c1_295, %c8_296, %c0_297] : memref<1x4x56x28xf32, #tpu.memory_space<vmem>>, vector<1x1x48x28xf32>
    %242 = vector.shape_cast %241 : vector<1x1x48x28xf32> to vector<48x28xf32>
    %243 = arith.truncf %242 : vector<48x28xf32> to vector<48x28xbf16>
    %c0_298 = arith.constant 0 : index
    %c2_299 = arith.constant 2 : index
    %c0_300 = arith.constant 0 : index
    %c0_301 = arith.constant 0 : index
    %244 = vector.load %arg2[%c0_298, %c2_299, %c0_300, %c0_301] : memref<2x5x28x128xbf16, #tpu.memory_space<vmem>>, vector<1x1x28x128xbf16>
    %245 = vector.shape_cast %244 : vector<1x1x28x128xbf16> to vector<28x128xbf16>
    %cst_302 = arith.constant dense<0.000000e+00> : vector<48x128xf32>
    %246 = tpu.matmul %243, %245, %cst_302 {dimension_numbers = #tpu.dot_dimension_numbers<[1], [0], [0], [1], [0, 0, 1, 1], [], []>} : vector<48x28xbf16>, vector<28x128xbf16>, vector<48x128xf32> -> vector<48x128xf32>
    %247 = arith.addf %240, %246 : vector<48x128xf32>
    %c0_303 = arith.constant 0 : index
    %c2_304 = arith.constant 2 : index
    %c8_305 = arith.constant 8 : index
    %c0_306 = arith.constant 0 : index
    %248 = vector.load %arg1[%c0_303, %c2_304, %c8_305, %c0_306] : memref<1x4x56x28xf32, #tpu.memory_space<vmem>>, vector<1x1x48x28xf32>
    %249 = vector.shape_cast %248 : vector<1x1x48x28xf32> to vector<48x28xf32>
    %250 = arith.truncf %249 : vector<48x28xf32> to vector<48x28xbf16>
    %c0_307 = arith.constant 0 : index
    %c3_308 = arith.constant 3 : index
    %c0_309 = arith.constant 0 : index
    %c0_310 = arith.constant 0 : index
    %251 = vector.load %arg2[%c0_307, %c3_308, %c0_309, %c0_310] : memref<2x5x28x128xbf16, #tpu.memory_space<vmem>>, vector<1x1x28x128xbf16>
    %252 = vector.shape_cast %251 : vector<1x1x28x128xbf16> to vector<28x128xbf16>
    %cst_311 = arith.constant dense<0.000000e+00> : vector<48x128xf32>
    %253 = tpu.matmul %250, %252, %cst_311 {dimension_numbers = #tpu.dot_dimension_numbers<[1], [0], [0], [1], [0, 0, 1, 1], [], []>} : vector<48x28xbf16>, vector<28x128xbf16>, vector<48x128xf32> -> vector<48x128xf32>
    %254 = arith.addf %247, %253 : vector<48x128xf32>
    %c0_312 = arith.constant 0 : index
    %c3_313 = arith.constant 3 : index
    %c8_314 = arith.constant 8 : index
    %c0_315 = arith.constant 0 : index
    %255 = vector.load %arg1[%c0_312, %c3_313, %c8_314, %c0_315] : memref<1x4x56x28xf32, #tpu.memory_space<vmem>>, vector<1x1x48x28xf32>
    %256 = vector.shape_cast %255 : vector<1x1x48x28xf32> to vector<48x28xf32>
    %257 = arith.truncf %256 : vector<48x28xf32> to vector<48x28xbf16>
    %c0_316 = arith.constant 0 : index
    %c4_317 = arith.constant 4 : index
    %c0_318 = arith.constant 0 : index
    %c0_319 = arith.constant 0 : index
    %258 = vector.load %arg2[%c0_316, %c4_317, %c0_318, %c0_319] : memref<2x5x28x128xbf16, #tpu.memory_space<vmem>>, vector<1x1x28x128xbf16>
    %259 = vector.shape_cast %258 : vector<1x1x28x128xbf16> to vector<28x128xbf16>
    %cst_320 = arith.constant dense<0.000000e+00> : vector<48x128xf32>
    %260 = tpu.matmul %257, %259, %cst_320 {dimension_numbers = #tpu.dot_dimension_numbers<[1], [0], [0], [1], [0, 0, 1, 1], [], []>} : vector<48x28xbf16>, vector<28x128xbf16>, vector<48x128xf32> -> vector<48x128xf32>
    %261 = arith.addf %254, %260 : vector<48x128xf32>
    %c0_321 = arith.constant 0 : index
    %c0_322 = arith.constant 0 : index
    %262 = vector.load %arg3[%c0_321, %c0_322] : memref<1x128xf32, #tpu.memory_space<vmem>>, vector<1x128xf32>
    %263 = vector.broadcast %262 : vector<1x128xf32> to vector<48x128xf32>
    %264 = arith.addf %261, %263 : vector<48x128xf32>
    %265 = arith.maximumf %227, %264 : vector<48x128xf32>
    %c0_323 = arith.constant 0 : index
    %c3_324 = arith.constant 3 : index
    %c0_325 = arith.constant 0 : index
    %c0_326 = arith.constant 0 : index
    %266 = vector.load %arg1[%c0_323, %c3_324, %c0_325, %c0_326] : memref<1x4x56x28xf32, #tpu.memory_space<vmem>>, vector<1x1x48x28xf32>
    %267 = vector.shape_cast %266 : vector<1x1x48x28xf32> to vector<48x28xf32>
    %268 = arith.truncf %267 : vector<48x28xf32> to vector<48x28xbf16>
    %c1_327 = arith.constant 1 : index
    %c0_328 = arith.constant 0 : index
    %c0_329 = arith.constant 0 : index
    %c0_330 = arith.constant 0 : index
    %269 = vector.load %arg2[%c1_327, %c0_328, %c0_329, %c0_330] : memref<2x5x28x128xbf16, #tpu.memory_space<vmem>>, vector<1x1x28x128xbf16>
    %270 = vector.shape_cast %269 : vector<1x1x28x128xbf16> to vector<28x128xbf16>
    %cst_331 = arith.constant dense<0.000000e+00> : vector<48x128xf32>
    %271 = tpu.matmul %268, %270, %cst_331 {dimension_numbers = #tpu.dot_dimension_numbers<[1], [0], [0], [1], [0, 0, 1, 1], [], []>} : vector<48x28xbf16>, vector<28x128xbf16>, vector<48x128xf32> -> vector<48x128xf32>
    %c0_332 = arith.constant 0 : index
    %c0_333 = arith.constant 0 : index
    %c8_334 = arith.constant 8 : index
    %c0_335 = arith.constant 0 : index
    %272 = vector.load %arg1[%c0_332, %c0_333, %c8_334, %c0_335] : memref<1x4x56x28xf32, #tpu.memory_space<vmem>>, vector<1x1x48x28xf32>
    %273 = vector.shape_cast %272 : vector<1x1x48x28xf32> to vector<48x28xf32>
    %274 = arith.truncf %273 : vector<48x28xf32> to vector<48x28xbf16>
    %c1_336 = arith.constant 1 : index
    %c1_337 = arith.constant 1 : index
    %c0_338 = arith.constant 0 : index
    %c0_339 = arith.constant 0 : index
    %275 = vector.load %arg2[%c1_336, %c1_337, %c0_338, %c0_339] : memref<2x5x28x128xbf16, #tpu.memory_space<vmem>>, vector<1x1x28x128xbf16>
    %276 = vector.shape_cast %275 : vector<1x1x28x128xbf16> to vector<28x128xbf16>
    %cst_340 = arith.constant dense<0.000000e+00> : vector<48x128xf32>
    %277 = tpu.matmul %274, %276, %cst_340 {dimension_numbers = #tpu.dot_dimension_numbers<[1], [0], [0], [1], [0, 0, 1, 1], [], []>} : vector<48x28xbf16>, vector<28x128xbf16>, vector<48x128xf32> -> vector<48x128xf32>
    %278 = arith.addf %271, %277 : vector<48x128xf32>
    %c0_341 = arith.constant 0 : index
    %c1_342 = arith.constant 1 : index
    %c8_343 = arith.constant 8 : index
    %c0_344 = arith.constant 0 : index
    %279 = vector.load %arg1[%c0_341, %c1_342, %c8_343, %c0_344] : memref<1x4x56x28xf32, #tpu.memory_space<vmem>>, vector<1x1x48x28xf32>
    %280 = vector.shape_cast %279 : vector<1x1x48x28xf32> to vector<48x28xf32>
    %281 = arith.truncf %280 : vector<48x28xf32> to vector<48x28xbf16>
    %c1_345 = arith.constant 1 : index
    %c2_346 = arith.constant 2 : index
    %c0_347 = arith.constant 0 : index
    %c0_348 = arith.constant 0 : index
    %282 = vector.load %arg2[%c1_345, %c2_346, %c0_347, %c0_348] : memref<2x5x28x128xbf16, #tpu.memory_space<vmem>>, vector<1x1x28x128xbf16>
    %283 = vector.shape_cast %282 : vector<1x1x28x128xbf16> to vector<28x128xbf16>
    %cst_349 = arith.constant dense<0.000000e+00> : vector<48x128xf32>
    %284 = tpu.matmul %281, %283, %cst_349 {dimension_numbers = #tpu.dot_dimension_numbers<[1], [0], [0], [1], [0, 0, 1, 1], [], []>} : vector<48x28xbf16>, vector<28x128xbf16>, vector<48x128xf32> -> vector<48x128xf32>
    %285 = arith.addf %278, %284 : vector<48x128xf32>
    %c0_350 = arith.constant 0 : index
    %c2_351 = arith.constant 2 : index
    %c8_352 = arith.constant 8 : index
    %c0_353 = arith.constant 0 : index
    %286 = vector.load %arg1[%c0_350, %c2_351, %c8_352, %c0_353] : memref<1x4x56x28xf32, #tpu.memory_space<vmem>>, vector<1x1x48x28xf32>
    %287 = vector.shape_cast %286 : vector<1x1x48x28xf32> to vector<48x28xf32>
    %288 = arith.truncf %287 : vector<48x28xf32> to vector<48x28xbf16>
    %c1_354 = arith.constant 1 : index
    %c3_355 = arith.constant 3 : index
    %c0_356 = arith.constant 0 : index
    %c0_357 = arith.constant 0 : index
    %289 = vector.load %arg2[%c1_354, %c3_355, %c0_356, %c0_357] : memref<2x5x28x128xbf16, #tpu.memory_space<vmem>>, vector<1x1x28x128xbf16>
    %290 = vector.shape_cast %289 : vector<1x1x28x128xbf16> to vector<28x128xbf16>
    %cst_358 = arith.constant dense<0.000000e+00> : vector<48x128xf32>
    %291 = tpu.matmul %288, %290, %cst_358 {dimension_numbers = #tpu.dot_dimension_numbers<[1], [0], [0], [1], [0, 0, 1, 1], [], []>} : vector<48x28xbf16>, vector<28x128xbf16>, vector<48x128xf32> -> vector<48x128xf32>
    %292 = arith.addf %285, %291 : vector<48x128xf32>
    %c0_359 = arith.constant 0 : index
    %c3_360 = arith.constant 3 : index
    %c8_361 = arith.constant 8 : index
    %c0_362 = arith.constant 0 : index
    %293 = vector.load %arg1[%c0_359, %c3_360, %c8_361, %c0_362] : memref<1x4x56x28xf32, #tpu.memory_space<vmem>>, vector<1x1x48x28xf32>
    %294 = vector.shape_cast %293 : vector<1x1x48x28xf32> to vector<48x28xf32>
    %295 = arith.truncf %294 : vector<48x28xf32> to vector<48x28xbf16>
    %c1_363 = arith.constant 1 : index
    %c4_364 = arith.constant 4 : index
    %c0_365 = arith.constant 0 : index
    %c0_366 = arith.constant 0 : index
    %296 = vector.load %arg2[%c1_363, %c4_364, %c0_365, %c0_366] : memref<2x5x28x128xbf16, #tpu.memory_space<vmem>>, vector<1x1x28x128xbf16>
    %297 = vector.shape_cast %296 : vector<1x1x28x128xbf16> to vector<28x128xbf16>
    %cst_367 = arith.constant dense<0.000000e+00> : vector<48x128xf32>
    %298 = tpu.matmul %295, %297, %cst_367 {dimension_numbers = #tpu.dot_dimension_numbers<[1], [0], [0], [1], [0, 0, 1, 1], [], []>} : vector<48x28xbf16>, vector<28x128xbf16>, vector<48x128xf32> -> vector<48x128xf32>
    %299 = arith.addf %292, %298 : vector<48x128xf32>
    %c0_368 = arith.constant 0 : index
    %c0_369 = arith.constant 0 : index
    %300 = vector.load %arg3[%c0_368, %c0_369] : memref<1x128xf32, #tpu.memory_space<vmem>>, vector<1x128xf32>
    %301 = vector.broadcast %300 : vector<1x128xf32> to vector<48x128xf32>
    %302 = arith.addf %299, %301 : vector<48x128xf32>
    %303 = arith.maximumf %265, %302 : vector<48x128xf32>
    %cst_370 = arith.constant 0.000000e+00 : f32
    %304 = vector.broadcast %cst_370 : f32 to vector<48x128xf32>
    %305 = arith.maximumf %303, %304 : vector<48x128xf32>
    %306 = vector.extract_strided_slice %152 {offsets = [0, 0], sizes = [32, 128], strides = [1, 1]} : vector<48x128xf32> to vector<32x128xf32>
    %307 = arith.truncf %306 : vector<32x128xf32> to vector<32x128xbf16>
    %c0_371 = arith.constant 0 : index
    %c0_372 = arith.constant 0 : index
    %c0_373 = arith.constant 0 : index
    %c0_374 = arith.constant 0 : index
    %308 = vector.load %arg4[%c0_371, %c0_372, %c0_373, %c0_374] : memref<2x5x128x128xbf16, #tpu.memory_space<vmem>>, vector<1x1x128x128xbf16>
    %309 = vector.shape_cast %308 : vector<1x1x128x128xbf16> to vector<128x128xbf16>
    %cst_375 = arith.constant dense<0.000000e+00> : vector<32x128xf32>
    %310 = tpu.matmul %307, %309, %cst_375 {dimension_numbers = #tpu.dot_dimension_numbers<[1], [0], [0], [1], [0, 0, 1, 1], [], []>} : vector<32x128xbf16>, vector<128x128xbf16>, vector<32x128xf32> -> vector<32x128xf32>
    %311 = vector.extract_strided_slice %305 {offsets = [0, 0], sizes = [32, 128], strides = [1, 1]} : vector<48x128xf32> to vector<32x128xf32>
    %312 = arith.truncf %311 : vector<32x128xf32> to vector<32x128xbf16>
    %c0_376 = arith.constant 0 : index
    %c1_377 = arith.constant 1 : index
    %c0_378 = arith.constant 0 : index
    %c0_379 = arith.constant 0 : index
    %313 = vector.load %arg4[%c0_376, %c1_377, %c0_378, %c0_379] : memref<2x5x128x128xbf16, #tpu.memory_space<vmem>>, vector<1x1x128x128xbf16>
    %314 = vector.shape_cast %313 : vector<1x1x128x128xbf16> to vector<128x128xbf16>
    %cst_380 = arith.constant dense<0.000000e+00> : vector<32x128xf32>
    %315 = tpu.matmul %312, %314, %cst_380 {dimension_numbers = #tpu.dot_dimension_numbers<[1], [0], [0], [1], [0, 0, 1, 1], [], []>} : vector<32x128xbf16>, vector<128x128xbf16>, vector<32x128xf32> -> vector<32x128xf32>
    %316 = arith.addf %310, %315 : vector<32x128xf32>
    %317 = vector.extract_strided_slice %152 {offsets = [8, 0], sizes = [32, 128], strides = [1, 1]} : vector<48x128xf32> to vector<32x128xf32>
    %318 = arith.truncf %317 : vector<32x128xf32> to vector<32x128xbf16>
    %c0_381 = arith.constant 0 : index
    %c2_382 = arith.constant 2 : index
    %c0_383 = arith.constant 0 : index
    %c0_384 = arith.constant 0 : index
    %319 = vector.load %arg4[%c0_381, %c2_382, %c0_383, %c0_384] : memref<2x5x128x128xbf16, #tpu.memory_space<vmem>>, vector<1x1x128x128xbf16>
    %320 = vector.shape_cast %319 : vector<1x1x128x128xbf16> to vector<128x128xbf16>
    %cst_385 = arith.constant dense<0.000000e+00> : vector<32x128xf32>
    %321 = tpu.matmul %318, %320, %cst_385 {dimension_numbers = #tpu.dot_dimension_numbers<[1], [0], [0], [1], [0, 0, 1, 1], [], []>} : vector<32x128xbf16>, vector<128x128xbf16>, vector<32x128xf32> -> vector<32x128xf32>
    %322 = arith.addf %316, %321 : vector<32x128xf32>
    %323 = vector.extract_strided_slice %305 {offsets = [8, 0], sizes = [32, 128], strides = [1, 1]} : vector<48x128xf32> to vector<32x128xf32>
    %324 = arith.truncf %323 : vector<32x128xf32> to vector<32x128xbf16>
    %c0_386 = arith.constant 0 : index
    %c3_387 = arith.constant 3 : index
    %c0_388 = arith.constant 0 : index
    %c0_389 = arith.constant 0 : index
    %325 = vector.load %arg4[%c0_386, %c3_387, %c0_388, %c0_389] : memref<2x5x128x128xbf16, #tpu.memory_space<vmem>>, vector<1x1x128x128xbf16>
    %326 = vector.shape_cast %325 : vector<1x1x128x128xbf16> to vector<128x128xbf16>
    %cst_390 = arith.constant dense<0.000000e+00> : vector<32x128xf32>
    %327 = tpu.matmul %324, %326, %cst_390 {dimension_numbers = #tpu.dot_dimension_numbers<[1], [0], [0], [1], [0, 0, 1, 1], [], []>} : vector<32x128xbf16>, vector<128x128xbf16>, vector<32x128xf32> -> vector<32x128xf32>
    %328 = arith.addf %322, %327 : vector<32x128xf32>
    %329 = vector.extract_strided_slice %152 {offsets = [16, 0], sizes = [32, 128], strides = [1, 1]} : vector<48x128xf32> to vector<32x128xf32>
    %330 = arith.truncf %329 : vector<32x128xf32> to vector<32x128xbf16>
    %c0_391 = arith.constant 0 : index
    %c4_392 = arith.constant 4 : index
    %c0_393 = arith.constant 0 : index
    %c0_394 = arith.constant 0 : index
    %331 = vector.load %arg4[%c0_391, %c4_392, %c0_393, %c0_394] : memref<2x5x128x128xbf16, #tpu.memory_space<vmem>>, vector<1x1x128x128xbf16>
    %332 = vector.shape_cast %331 : vector<1x1x128x128xbf16> to vector<128x128xbf16>
    %cst_395 = arith.constant dense<0.000000e+00> : vector<32x128xf32>
    %333 = tpu.matmul %330, %332, %cst_395 {dimension_numbers = #tpu.dot_dimension_numbers<[1], [0], [0], [1], [0, 0, 1, 1], [], []>} : vector<32x128xbf16>, vector<128x128xbf16>, vector<32x128xf32> -> vector<32x128xf32>
    %334 = arith.addf %328, %333 : vector<32x128xf32>
    %c0_396 = arith.constant 0 : index
    %c0_397 = arith.constant 0 : index
    %335 = vector.load %arg5[%c0_396, %c0_397] : memref<1x128xf32, #tpu.memory_space<vmem>>, vector<1x128xf32>
    %336 = vector.broadcast %335 : vector<1x128xf32> to vector<32x128xf32>
    %337 = arith.addf %334, %336 : vector<32x128xf32>
    %338 = vector.extract_strided_slice %152 {offsets = [0, 0], sizes = [32, 128], strides = [1, 1]} : vector<48x128xf32> to vector<32x128xf32>
    %339 = arith.truncf %338 : vector<32x128xf32> to vector<32x128xbf16>
    %c1_398 = arith.constant 1 : index
    %c0_399 = arith.constant 0 : index
    %c0_400 = arith.constant 0 : index
    %c0_401 = arith.constant 0 : index
    %340 = vector.load %arg4[%c1_398, %c0_399, %c0_400, %c0_401] : memref<2x5x128x128xbf16, #tpu.memory_space<vmem>>, vector<1x1x128x128xbf16>
    %341 = vector.shape_cast %340 : vector<1x1x128x128xbf16> to vector<128x128xbf16>
    %cst_402 = arith.constant dense<0.000000e+00> : vector<32x128xf32>
    %342 = tpu.matmul %339, %341, %cst_402 {dimension_numbers = #tpu.dot_dimension_numbers<[1], [0], [0], [1], [0, 0, 1, 1], [], []>} : vector<32x128xbf16>, vector<128x128xbf16>, vector<32x128xf32> -> vector<32x128xf32>
    %343 = vector.extract_strided_slice %305 {offsets = [0, 0], sizes = [32, 128], strides = [1, 1]} : vector<48x128xf32> to vector<32x128xf32>
    %344 = arith.truncf %343 : vector<32x128xf32> to vector<32x128xbf16>
    %c1_403 = arith.constant 1 : index
    %c1_404 = arith.constant 1 : index
    %c0_405 = arith.constant 0 : index
    %c0_406 = arith.constant 0 : index
    %345 = vector.load %arg4[%c1_403, %c1_404, %c0_405, %c0_406] : memref<2x5x128x128xbf16, #tpu.memory_space<vmem>>, vector<1x1x128x128xbf16>
    %346 = vector.shape_cast %345 : vector<1x1x128x128xbf16> to vector<128x128xbf16>
    %cst_407 = arith.constant dense<0.000000e+00> : vector<32x128xf32>
    %347 = tpu.matmul %344, %346, %cst_407 {dimension_numbers = #tpu.dot_dimension_numbers<[1], [0], [0], [1], [0, 0, 1, 1], [], []>} : vector<32x128xbf16>, vector<128x128xbf16>, vector<32x128xf32> -> vector<32x128xf32>
    %348 = arith.addf %342, %347 : vector<32x128xf32>
    %349 = vector.extract_strided_slice %152 {offsets = [8, 0], sizes = [32, 128], strides = [1, 1]} : vector<48x128xf32> to vector<32x128xf32>
    %350 = arith.truncf %349 : vector<32x128xf32> to vector<32x128xbf16>
    %c1_408 = arith.constant 1 : index
    %c2_409 = arith.constant 2 : index
    %c0_410 = arith.constant 0 : index
    %c0_411 = arith.constant 0 : index
    %351 = vector.load %arg4[%c1_408, %c2_409, %c0_410, %c0_411] : memref<2x5x128x128xbf16, #tpu.memory_space<vmem>>, vector<1x1x128x128xbf16>
    %352 = vector.shape_cast %351 : vector<1x1x128x128xbf16> to vector<128x128xbf16>
    %cst_412 = arith.constant dense<0.000000e+00> : vector<32x128xf32>
    %353 = tpu.matmul %350, %352, %cst_412 {dimension_numbers = #tpu.dot_dimension_numbers<[1], [0], [0], [1], [0, 0, 1, 1], [], []>} : vector<32x128xbf16>, vector<128x128xbf16>, vector<32x128xf32> -> vector<32x128xf32>
    %354 = arith.addf %348, %353 : vector<32x128xf32>
    %355 = vector.extract_strided_slice %305 {offsets = [8, 0], sizes = [32, 128], strides = [1, 1]} : vector<48x128xf32> to vector<32x128xf32>
    %356 = arith.truncf %355 : vector<32x128xf32> to vector<32x128xbf16>
    %c1_413 = arith.constant 1 : index
    %c3_414 = arith.constant 3 : index
    %c0_415 = arith.constant 0 : index
    %c0_416 = arith.constant 0 : index
    %357 = vector.load %arg4[%c1_413, %c3_414, %c0_415, %c0_416] : memref<2x5x128x128xbf16, #tpu.memory_space<vmem>>, vector<1x1x128x128xbf16>
    %358 = vector.shape_cast %357 : vector<1x1x128x128xbf16> to vector<128x128xbf16>
    %cst_417 = arith.constant dense<0.000000e+00> : vector<32x128xf32>
    %359 = tpu.matmul %356, %358, %cst_417 {dimension_numbers = #tpu.dot_dimension_numbers<[1], [0], [0], [1], [0, 0, 1, 1], [], []>} : vector<32x128xbf16>, vector<128x128xbf16>, vector<32x128xf32> -> vector<32x128xf32>
    %360 = arith.addf %354, %359 : vector<32x128xf32>
    %361 = vector.extract_strided_slice %152 {offsets = [16, 0], sizes = [32, 128], strides = [1, 1]} : vector<48x128xf32> to vector<32x128xf32>
    %362 = arith.truncf %361 : vector<32x128xf32> to vector<32x128xbf16>
    %c1_418 = arith.constant 1 : index
    %c4_419 = arith.constant 4 : index
    %c0_420 = arith.constant 0 : index
    %c0_421 = arith.constant 0 : index
    %363 = vector.load %arg4[%c1_418, %c4_419, %c0_420, %c0_421] : memref<2x5x128x128xbf16, #tpu.memory_space<vmem>>, vector<1x1x128x128xbf16>
    %364 = vector.shape_cast %363 : vector<1x1x128x128xbf16> to vector<128x128xbf16>
    %cst_422 = arith.constant dense<0.000000e+00> : vector<32x128xf32>
    %365 = tpu.matmul %362, %364, %cst_422 {dimension_numbers = #tpu.dot_dimension_numbers<[1], [0], [0], [1], [0, 0, 1, 1], [], []>} : vector<32x128xbf16>, vector<128x128xbf16>, vector<32x128xf32> -> vector<32x128xf32>
    %366 = arith.addf %360, %365 : vector<32x128xf32>
    %c0_423 = arith.constant 0 : index
    %c0_424 = arith.constant 0 : index
    %367 = vector.load %arg5[%c0_423, %c0_424] : memref<1x128xf32, #tpu.memory_space<vmem>>, vector<1x128xf32>
    %368 = vector.broadcast %367 : vector<1x128xf32> to vector<32x128xf32>
    %369 = arith.addf %366, %368 : vector<32x128xf32>
    %370 = arith.maximumf %337, %369 : vector<32x128xf32>
    %371 = vector.extract_strided_slice %305 {offsets = [0, 0], sizes = [32, 128], strides = [1, 1]} : vector<48x128xf32> to vector<32x128xf32>
    %372 = arith.truncf %371 : vector<32x128xf32> to vector<32x128xbf16>
    %c0_425 = arith.constant 0 : index
    %c0_426 = arith.constant 0 : index
    %c0_427 = arith.constant 0 : index
    %c0_428 = arith.constant 0 : index
    %373 = vector.load %arg4[%c0_425, %c0_426, %c0_427, %c0_428] : memref<2x5x128x128xbf16, #tpu.memory_space<vmem>>, vector<1x1x128x128xbf16>
    %374 = vector.shape_cast %373 : vector<1x1x128x128xbf16> to vector<128x128xbf16>
    %cst_429 = arith.constant dense<0.000000e+00> : vector<32x128xf32>
    %375 = tpu.matmul %372, %374, %cst_429 {dimension_numbers = #tpu.dot_dimension_numbers<[1], [0], [0], [1], [0, 0, 1, 1], [], []>} : vector<32x128xbf16>, vector<128x128xbf16>, vector<32x128xf32> -> vector<32x128xf32>
    %376 = vector.extract_strided_slice %152 {offsets = [8, 0], sizes = [32, 128], strides = [1, 1]} : vector<48x128xf32> to vector<32x128xf32>
    %377 = arith.truncf %376 : vector<32x128xf32> to vector<32x128xbf16>
    %c0_430 = arith.constant 0 : index
    %c1_431 = arith.constant 1 : index
    %c0_432 = arith.constant 0 : index
    %c0_433 = arith.constant 0 : index
    %378 = vector.load %arg4[%c0_430, %c1_431, %c0_432, %c0_433] : memref<2x5x128x128xbf16, #tpu.memory_space<vmem>>, vector<1x1x128x128xbf16>
    %379 = vector.shape_cast %378 : vector<1x1x128x128xbf16> to vector<128x128xbf16>
    %cst_434 = arith.constant dense<0.000000e+00> : vector<32x128xf32>
    %380 = tpu.matmul %377, %379, %cst_434 {dimension_numbers = #tpu.dot_dimension_numbers<[1], [0], [0], [1], [0, 0, 1, 1], [], []>} : vector<32x128xbf16>, vector<128x128xbf16>, vector<32x128xf32> -> vector<32x128xf32>
    %381 = arith.addf %375, %380 : vector<32x128xf32>
    %382 = vector.extract_strided_slice %305 {offsets = [8, 0], sizes = [32, 128], strides = [1, 1]} : vector<48x128xf32> to vector<32x128xf32>
    %383 = arith.truncf %382 : vector<32x128xf32> to vector<32x128xbf16>
    %c0_435 = arith.constant 0 : index
    %c2_436 = arith.constant 2 : index
    %c0_437 = arith.constant 0 : index
    %c0_438 = arith.constant 0 : index
    %384 = vector.load %arg4[%c0_435, %c2_436, %c0_437, %c0_438] : memref<2x5x128x128xbf16, #tpu.memory_space<vmem>>, vector<1x1x128x128xbf16>
    %385 = vector.shape_cast %384 : vector<1x1x128x128xbf16> to vector<128x128xbf16>
    %cst_439 = arith.constant dense<0.000000e+00> : vector<32x128xf32>
    %386 = tpu.matmul %383, %385, %cst_439 {dimension_numbers = #tpu.dot_dimension_numbers<[1], [0], [0], [1], [0, 0, 1, 1], [], []>} : vector<32x128xbf16>, vector<128x128xbf16>, vector<32x128xf32> -> vector<32x128xf32>
    %387 = arith.addf %381, %386 : vector<32x128xf32>
    %388 = vector.extract_strided_slice %152 {offsets = [16, 0], sizes = [32, 128], strides = [1, 1]} : vector<48x128xf32> to vector<32x128xf32>
    %389 = arith.truncf %388 : vector<32x128xf32> to vector<32x128xbf16>
    %c0_440 = arith.constant 0 : index
    %c3_441 = arith.constant 3 : index
    %c0_442 = arith.constant 0 : index
    %c0_443 = arith.constant 0 : index
    %390 = vector.load %arg4[%c0_440, %c3_441, %c0_442, %c0_443] : memref<2x5x128x128xbf16, #tpu.memory_space<vmem>>, vector<1x1x128x128xbf16>
    %391 = vector.shape_cast %390 : vector<1x1x128x128xbf16> to vector<128x128xbf16>
    %cst_444 = arith.constant dense<0.000000e+00> : vector<32x128xf32>
    %392 = tpu.matmul %389, %391, %cst_444 {dimension_numbers = #tpu.dot_dimension_numbers<[1], [0], [0], [1], [0, 0, 1, 1], [], []>} : vector<32x128xbf16>, vector<128x128xbf16>, vector<32x128xf32> -> vector<32x128xf32>
    %393 = arith.addf %387, %392 : vector<32x128xf32>
    %394 = vector.extract_strided_slice %305 {offsets = [16, 0], sizes = [32, 128], strides = [1, 1]} : vector<48x128xf32> to vector<32x128xf32>
    %395 = arith.truncf %394 : vector<32x128xf32> to vector<32x128xbf16>
    %c0_445 = arith.constant 0 : index
    %c4_446 = arith.constant 4 : index
    %c0_447 = arith.constant 0 : index
    %c0_448 = arith.constant 0 : index
    %396 = vector.load %arg4[%c0_445, %c4_446, %c0_447, %c0_448] : memref<2x5x128x128xbf16, #tpu.memory_space<vmem>>, vector<1x1x128x128xbf16>
    %397 = vector.shape_cast %396 : vector<1x1x128x128xbf16> to vector<128x128xbf16>
    %cst_449 = arith.constant dense<0.000000e+00> : vector<32x128xf32>
    %398 = tpu.matmul %395, %397, %cst_449 {dimension_numbers = #tpu.dot_dimension_numbers<[1], [0], [0], [1], [0, 0, 1, 1], [], []>} : vector<32x128xbf16>, vector<128x128xbf16>, vector<32x128xf32> -> vector<32x128xf32>
    %399 = arith.addf %393, %398 : vector<32x128xf32>
    %c0_450 = arith.constant 0 : index
    %c0_451 = arith.constant 0 : index
    %400 = vector.load %arg5[%c0_450, %c0_451] : memref<1x128xf32, #tpu.memory_space<vmem>>, vector<1x128xf32>
    %401 = vector.broadcast %400 : vector<1x128xf32> to vector<32x128xf32>
    %402 = arith.addf %399, %401 : vector<32x128xf32>
    %403 = arith.maximumf %370, %402 : vector<32x128xf32>
    %404 = vector.extract_strided_slice %305 {offsets = [0, 0], sizes = [32, 128], strides = [1, 1]} : vector<48x128xf32> to vector<32x128xf32>
    %405 = arith.truncf %404 : vector<32x128xf32> to vector<32x128xbf16>
    %c1_452 = arith.constant 1 : index
    %c0_453 = arith.constant 0 : index
    %c0_454 = arith.constant 0 : index
    %c0_455 = arith.constant 0 : index
    %406 = vector.load %arg4[%c1_452, %c0_453, %c0_454, %c0_455] : memref<2x5x128x128xbf16, #tpu.memory_space<vmem>>, vector<1x1x128x128xbf16>
    %407 = vector.shape_cast %406 : vector<1x1x128x128xbf16> to vector<128x128xbf16>
    %cst_456 = arith.constant dense<0.000000e+00> : vector<32x128xf32>
    %408 = tpu.matmul %405, %407, %cst_456 {dimension_numbers = #tpu.dot_dimension_numbers<[1], [0], [0], [1], [0, 0, 1, 1], [], []>} : vector<32x128xbf16>, vector<128x128xbf16>, vector<32x128xf32> -> vector<32x128xf32>
    %409 = vector.extract_strided_slice %152 {offsets = [8, 0], sizes = [32, 128], strides = [1, 1]} : vector<48x128xf32> to vector<32x128xf32>
    %410 = arith.truncf %409 : vector<32x128xf32> to vector<32x128xbf16>
    %c1_457 = arith.constant 1 : index
    %c1_458 = arith.constant 1 : index
    %c0_459 = arith.constant 0 : index
    %c0_460 = arith.constant 0 : index
    %411 = vector.load %arg4[%c1_457, %c1_458, %c0_459, %c0_460] : memref<2x5x128x128xbf16, #tpu.memory_space<vmem>>, vector<1x1x128x128xbf16>
    %412 = vector.shape_cast %411 : vector<1x1x128x128xbf16> to vector<128x128xbf16>
    %cst_461 = arith.constant dense<0.000000e+00> : vector<32x128xf32>
    %413 = tpu.matmul %410, %412, %cst_461 {dimension_numbers = #tpu.dot_dimension_numbers<[1], [0], [0], [1], [0, 0, 1, 1], [], []>} : vector<32x128xbf16>, vector<128x128xbf16>, vector<32x128xf32> -> vector<32x128xf32>
    %414 = arith.addf %408, %413 : vector<32x128xf32>
    %415 = vector.extract_strided_slice %305 {offsets = [8, 0], sizes = [32, 128], strides = [1, 1]} : vector<48x128xf32> to vector<32x128xf32>
    %416 = arith.truncf %415 : vector<32x128xf32> to vector<32x128xbf16>
    %c1_462 = arith.constant 1 : index
    %c2_463 = arith.constant 2 : index
    %c0_464 = arith.constant 0 : index
    %c0_465 = arith.constant 0 : index
    %417 = vector.load %arg4[%c1_462, %c2_463, %c0_464, %c0_465] : memref<2x5x128x128xbf16, #tpu.memory_space<vmem>>, vector<1x1x128x128xbf16>
    %418 = vector.shape_cast %417 : vector<1x1x128x128xbf16> to vector<128x128xbf16>
    %cst_466 = arith.constant dense<0.000000e+00> : vector<32x128xf32>
    %419 = tpu.matmul %416, %418, %cst_466 {dimension_numbers = #tpu.dot_dimension_numbers<[1], [0], [0], [1], [0, 0, 1, 1], [], []>} : vector<32x128xbf16>, vector<128x128xbf16>, vector<32x128xf32> -> vector<32x128xf32>
    %420 = arith.addf %414, %419 : vector<32x128xf32>
    %421 = vector.extract_strided_slice %152 {offsets = [16, 0], sizes = [32, 128], strides = [1, 1]} : vector<48x128xf32> to vector<32x128xf32>
    %422 = arith.truncf %421 : vector<32x128xf32> to vector<32x128xbf16>
    %c1_467 = arith.constant 1 : index
    %c3_468 = arith.constant 3 : index
    %c0_469 = arith.constant 0 : index
    %c0_470 = arith.constant 0 : index
    %423 = vector.load %arg4[%c1_467, %c3_468, %c0_469, %c0_470] : memref<2x5x128x128xbf16, #tpu.memory_space<vmem>>, vector<1x1x128x128xbf16>
    %424 = vector.shape_cast %423 : vector<1x1x128x128xbf16> to vector<128x128xbf16>
    %cst_471 = arith.constant dense<0.000000e+00> : vector<32x128xf32>
    %425 = tpu.matmul %422, %424, %cst_471 {dimension_numbers = #tpu.dot_dimension_numbers<[1], [0], [0], [1], [0, 0, 1, 1], [], []>} : vector<32x128xbf16>, vector<128x128xbf16>, vector<32x128xf32> -> vector<32x128xf32>
    %426 = arith.addf %420, %425 : vector<32x128xf32>
    %427 = vector.extract_strided_slice %305 {offsets = [16, 0], sizes = [32, 128], strides = [1, 1]} : vector<48x128xf32> to vector<32x128xf32>
    %428 = arith.truncf %427 : vector<32x128xf32> to vector<32x128xbf16>
    %c1_472 = arith.constant 1 : index
    %c4_473 = arith.constant 4 : index
    %c0_474 = arith.constant 0 : index
    %c0_475 = arith.constant 0 : index
    %429 = vector.load %arg4[%c1_472, %c4_473, %c0_474, %c0_475] : memref<2x5x128x128xbf16, #tpu.memory_space<vmem>>, vector<1x1x128x128xbf16>
    %430 = vector.shape_cast %429 : vector<1x1x128x128xbf16> to vector<128x128xbf16>
    %cst_476 = arith.constant dense<0.000000e+00> : vector<32x128xf32>
    %431 = tpu.matmul %428, %430, %cst_476 {dimension_numbers = #tpu.dot_dimension_numbers<[1], [0], [0], [1], [0, 0, 1, 1], [], []>} : vector<32x128xbf16>, vector<128x128xbf16>, vector<32x128xf32> -> vector<32x128xf32>
    %432 = arith.addf %426, %431 : vector<32x128xf32>
    %c0_477 = arith.constant 0 : index
    %c0_478 = arith.constant 0 : index
    %433 = vector.load %arg5[%c0_477, %c0_478] : memref<1x128xf32, #tpu.memory_space<vmem>>, vector<1x128xf32>
    %434 = vector.broadcast %433 : vector<1x128xf32> to vector<32x128xf32>
    %435 = arith.addf %432, %434 : vector<32x128xf32>
    %436 = arith.maximumf %403, %435 : vector<32x128xf32>
    %cst_479 = arith.constant 0.000000e+00 : f32
    %437 = vector.broadcast %cst_479 : f32 to vector<32x128xf32>
    %438 = arith.maximumf %436, %437 : vector<32x128xf32>
    %439 = vector.extract_strided_slice %438 {offsets = [0, 0], sizes = [8, 128], strides = [1, 1]} : vector<32x128xf32> to vector<8x128xf32>
    %440 = arith.truncf %439 : vector<8x128xf32> to vector<8x128xbf16>
    %c0_480 = arith.constant 0 : index
    %c0_481 = arith.constant 0 : index
    %c0_482 = arith.constant 0 : index
    %441 = vector.load %arg6[%c0_480, %c0_481, %c0_482] : memref<4x128x128xbf16, #tpu.memory_space<vmem>>, vector<1x128x128xbf16>
    %442 = vector.shape_cast %441 : vector<1x128x128xbf16> to vector<128x128xbf16>
    %cst_483 = arith.constant dense<0.000000e+00> : vector<8x128xf32>
    %443 = tpu.matmul %440, %442, %cst_483 {dimension_numbers = #tpu.dot_dimension_numbers<[1], [0], [0], [1], [0, 0, 1, 1], [], []>} : vector<8x128xbf16>, vector<128x128xbf16>, vector<8x128xf32> -> vector<8x128xf32>
    %444 = vector.extract_strided_slice %438 {offsets = [8, 0], sizes = [8, 128], strides = [1, 1]} : vector<32x128xf32> to vector<8x128xf32>
    %445 = arith.truncf %444 : vector<8x128xf32> to vector<8x128xbf16>
    %c1_484 = arith.constant 1 : index
    %c0_485 = arith.constant 0 : index
    %c0_486 = arith.constant 0 : index
    %446 = vector.load %arg6[%c1_484, %c0_485, %c0_486] : memref<4x128x128xbf16, #tpu.memory_space<vmem>>, vector<1x128x128xbf16>
    %447 = vector.shape_cast %446 : vector<1x128x128xbf16> to vector<128x128xbf16>
    %cst_487 = arith.constant dense<0.000000e+00> : vector<8x128xf32>
    %448 = tpu.matmul %445, %447, %cst_487 {dimension_numbers = #tpu.dot_dimension_numbers<[1], [0], [0], [1], [0, 0, 1, 1], [], []>} : vector<8x128xbf16>, vector<128x128xbf16>, vector<8x128xf32> -> vector<8x128xf32>
    %449 = arith.addf %443, %448 : vector<8x128xf32>
    %450 = vector.extract_strided_slice %438 {offsets = [16, 0], sizes = [8, 128], strides = [1, 1]} : vector<32x128xf32> to vector<8x128xf32>
    %451 = arith.truncf %450 : vector<8x128xf32> to vector<8x128xbf16>
    %c2_488 = arith.constant 2 : index
    %c0_489 = arith.constant 0 : index
    %c0_490 = arith.constant 0 : index
    %452 = vector.load %arg6[%c2_488, %c0_489, %c0_490] : memref<4x128x128xbf16, #tpu.memory_space<vmem>>, vector<1x128x128xbf16>
    %453 = vector.shape_cast %452 : vector<1x128x128xbf16> to vector<128x128xbf16>
    %cst_491 = arith.constant dense<0.000000e+00> : vector<8x128xf32>
    %454 = tpu.matmul %451, %453, %cst_491 {dimension_numbers = #tpu.dot_dimension_numbers<[1], [0], [0], [1], [0, 0, 1, 1], [], []>} : vector<8x128xbf16>, vector<128x128xbf16>, vector<8x128xf32> -> vector<8x128xf32>
    %455 = arith.addf %449, %454 : vector<8x128xf32>
    %456 = vector.extract_strided_slice %438 {offsets = [24, 0], sizes = [8, 128], strides = [1, 1]} : vector<32x128xf32> to vector<8x128xf32>
    %457 = arith.truncf %456 : vector<8x128xf32> to vector<8x128xbf16>
    %c3_492 = arith.constant 3 : index
    %c0_493 = arith.constant 0 : index
    %c0_494 = arith.constant 0 : index
    %458 = vector.load %arg6[%c3_492, %c0_493, %c0_494] : memref<4x128x128xbf16, #tpu.memory_space<vmem>>, vector<1x128x128xbf16>
    %459 = vector.shape_cast %458 : vector<1x128x128xbf16> to vector<128x128xbf16>
    %cst_495 = arith.constant dense<0.000000e+00> : vector<8x128xf32>
    %460 = tpu.matmul %457, %459, %cst_495 {dimension_numbers = #tpu.dot_dimension_numbers<[1], [0], [0], [1], [0, 0, 1, 1], [], []>} : vector<8x128xbf16>, vector<128x128xbf16>, vector<8x128xf32> -> vector<8x128xf32>
    %461 = arith.addf %455, %460 : vector<8x128xf32>
    %c0_496 = arith.constant 0 : index
    %c0_497 = arith.constant 0 : index
    %462 = vector.load %arg7[%c0_496, %c0_497] : memref<1x128xf32, #tpu.memory_space<vmem>>, vector<1x128xf32>
    %463 = vector.broadcast %462 : vector<1x128xf32> to vector<8x128xf32>
    %464 = arith.addf %461, %463 : vector<8x128xf32>
    %cst_498 = arith.constant 0.000000e+00 : f32
    %465 = vector.broadcast %cst_498 : f32 to vector<8x128xf32>
    %466 = arith.maximumf %464, %465 : vector<8x128xf32>
    %467 = arith.truncf %466 : vector<8x128xf32> to vector<8x128xbf16>
    %c0_499 = arith.constant 0 : index
    %c0_500 = arith.constant 0 : index
    %468 = vector.load %arg8[%c0_499, %c0_500] : memref<128x128xbf16, #tpu.memory_space<vmem>>, vector<128x128xbf16>
    %cst_501 = arith.constant dense<0.000000e+00> : vector<8x128xf32>
    %469 = tpu.matmul %467, %468, %cst_501 {dimension_numbers = #tpu.dot_dimension_numbers<[1], [0], [0], [1], [0, 0, 1, 1], [], []>} : vector<8x128xbf16>, vector<128x128xbf16>, vector<8x128xf32> -> vector<8x128xf32>
    %c0_502 = arith.constant 0 : index
    %c0_503 = arith.constant 0 : index
    %470 = vector.load %arg9[%c0_502, %c0_503] : memref<1x128xf32, #tpu.memory_space<vmem>>, vector<1x128xf32>
    %471 = vector.broadcast %470 : vector<1x128xf32> to vector<8x128xf32>
    %472 = arith.addf %469, %471 : vector<8x128xf32>
    %cst_504 = arith.constant dense<0xFF800000> : vector<8xf32>
    %473 = vector.multi_reduction <maximumf>, %472, %cst_504 [1] : vector<8x128xf32> to vector<8xf32>
    %474 = vector.shape_cast %473 : vector<8xf32> to vector<8x1xf32>
    %475 = vector.broadcast %474 : vector<8x1xf32> to vector<8x128xf32>
    %476 = arith.subf %472, %475 : vector<8x128xf32>
    %477 = math.exp %476 : vector<8x128xf32>
    %cst_505 = arith.constant dense<0.000000e+00> : vector<8xf32>
    %478 = vector.multi_reduction <add>, %477, %cst_505 [1] : vector<8x128xf32> to vector<8xf32>
    %479 = vector.shape_cast %478 : vector<8xf32> to vector<8x1xf32>
    %480 = math.log %479 : vector<8x1xf32>
    %481 = vector.broadcast %480 : vector<8x1xf32> to vector<8x128xf32>
    %482 = arith.subf %476, %481 : vector<8x128xf32>
    %c0_506 = arith.constant 0 : index
    %c0_507 = arith.constant 0 : index
    %483 = vector.load %arg10[%c0_506, %c0_507] : memref<8x128xf32, #tpu.memory_space<vmem>>, vector<8x128xf32>
    tpu.vector_store %arg10[%c0_506, %c0_507], %482 {strides = array<i32>} : memref<8x128xf32, #tpu.memory_space<vmem>>, vector<8x128xf32>,
    return
  }
  func.func @transform_0(%arg0: i32) -> (i32, i32, i32, i32) {
    %c0_i32 = arith.constant 0 : i32
    %c0_i32_0 = arith.constant 0 : i32
    %c0_i32_1 = arith.constant 0 : i32
    %c0_i32_2 = arith.constant 0 : i32
    return %arg0, %c0_i32, %c0_i32_0, %c0_i32_1 : i32, i32, i32, i32
  }
  func.func @transform_1(%arg0: i32) -> (i32, i32, i32, i32) {
    %c0_i32 = arith.constant 0 : i32
    %c0_i32_0 = arith.constant 0 : i32
    %c0_i32_1 = arith.constant 0 : i32
    %c0_i32_2 = arith.constant 0 : i32
    %c0_i32_3 = arith.constant 0 : i32
    return %c0_i32, %c0_i32_0, %c0_i32_1, %c0_i32_2 : i32, i32, i32, i32
  }
  func.func @transform_2(%arg0: i32) -> (i32, i32) {
    %c0_i32 = arith.constant 0 : i32
    %c0_i32_0 = arith.constant 0 : i32
    %c0_i32_1 = arith.constant 0 : i32
    return %c0_i32, %c0_i32_0 : i32, i32
  }
  func.func @transform_3(%arg0: i32) -> (i32, i32, i32, i32) {
    %c0_i32 = arith.constant 0 : i32
    %c0_i32_0 = arith.constant 0 : i32
    %c0_i32_1 = arith.constant 0 : i32
    %c0_i32_2 = arith.constant 0 : i32
    %c0_i32_3 = arith.constant 0 : i32
    return %c0_i32, %c0_i32_0, %c0_i32_1, %c0_i32_2 : i32, i32, i32, i32
  }
  func.func @transform_4(%arg0: i32) -> (i32, i32) {
    %c0_i32 = arith.constant 0 : i32
    %c0_i32_0 = arith.constant 0 : i32
    %c0_i32_1 = arith.constant 0 : i32
    return %c0_i32, %c0_i32_0 : i32, i32
  }
  func.func @transform_5(%arg0: i32) -> (i32, i32, i32) {
    %c0_i32 = arith.constant 0 : i32
    %c0_i32_0 = arith.constant 0 : i32
    %c0_i32_1 = arith.constant 0 : i32
    %c0_i32_2 = arith.constant 0 : i32
    return %c0_i32, %c0_i32_0, %c0_i32_1 : i32, i32, i32
  }
  func.func @transform_6(%arg0: i32) -> (i32, i32) {
    %c0_i32 = arith.constant 0 : i32
    %c0_i32_0 = arith.constant 0 : i32
    %c0_i32_1 = arith.constant 0 : i32
    return %c0_i32, %c0_i32_0 : i32, i32
  }
  func.func @transform_7(%arg0: i32) -> (i32, i32) {
    %c0_i32 = arith.constant 0 : i32
    %c0_i32_0 = arith.constant 0 : i32
    %c0_i32_1 = arith.constant 0 : i32
    return %c0_i32, %c0_i32_0 : i32, i32
  }
  func.func @transform_8(%arg0: i32) -> (i32, i32) {
    %c0_i32 = arith.constant 0 : i32
    %c0_i32_0 = arith.constant 0 : i32
    %c0_i32_1 = arith.constant 0 : i32
    return %c0_i32, %c0_i32_0 : i32, i32
  }
  func.func @transform_9(%arg0: i32) -> (i32, i32) {
    %c0_i32 = arith.constant 0 : i32
    %c0_i32_0 = arith.constant 0 : i32
    return %arg0, %c0_i32 : i32, i32
  }
}

</mosaic_0001>

<bundles_post_ra>
// kernel: tile.14
= control target key start
LH: loop header
LB: loop body
LE: loop exit
PB: predicated region body
PF: predicated region fallthrough
CT: control target
= control target key end

     0   :  { %s99_s10 = smov 110   ;;  %s100_s11 = smov 90   ;;  %vm3_vm0 = vcmask 80896   ;;  %vm9_vm1 = vcmask 982896   ;;  %vm15_vm2 = vcmask 900896   ;;  %vm21_vm3 = vcmask 818896   ;;  %s159_s0 = inlined_call_operand.vmem [shape: f32[12,10], index: 0, kind: input, shape index: {}]   ;;  %s160_s1 = inlined_call_operand.vmem [shape: f32[120], index: 1, kind: output, shape index: {}]  }
   0x1   :  { %v77_v0 = vld [vmem:[%s159_s0 + $0xb] sm:$0x1]   ;;  %v79_v1 = vld [vmem:[%s159_s0 + $0x9] sm:$0x1]   ;;  %v78_v2 = vld [vmem:[%s159_s0 + $0xa] sm:$0x1]  }
   0x2   :  { %7 = vrot.lane.b32.xlu0 %v77_v0, %s99_s10  ;;  %19 = vrot.lane.b32.xlu1 %v79_v1, %s100_s11  ;;  %v80_v3 = vld [vmem:[%s159_s0 + $0x8] sm:$0x1]   ;;  %s101_s16 = smov 100   ;;  %s102_s17 = smov 80   ;;  %v81_v4 = vld [vmem:[%s159_s0 + $0x7] sm:$0x1]  }
   0x3   :  { %v2_v5 = vld [vmem:[%s159_s0] sm:$0x1]   ;;  %v82_v6 = vld [vmem:[%s159_s0 + $0x6] sm:$0x1]   ;;  %s103_s24 = smov 70   ;;  %s104_s25 = smov 60  }
   0x4   :  { %4 = vst.msk [vmem:[#allocation0] sm:$0x1] %vm3_vm0, %v2_v5   ;;  %v83_v7 = vld [vmem:[%s159_s0 + $0x5] sm:$0x1]   ;;  %v84_v8 = vld [vmem:[%s159_s0 + $0x4] sm:$0x1]  }
   0x5   :  { %s105_s30 = smov 50   ;;  %s106_s2 = smov 40   ;;  %v85_v9 = vld [vmem:[%s159_s0 + $0x3] sm:$0x1]   ;;  %v86_v10 = vld [vmem:[%s159_s0 + $0x2] sm:$0x1]  }
   0x6   :  { %13 = vrot.lane.b32.xlu0 %v78_v2, %s101_s16  ;;  %25 = vrot.lane.b32.xlu1 %v80_v3, %s102_s17  ;;  %s107_s7 = smov 30   ;;  %s108_s8 = smov 20   ;;  %v87_v11 = vld [vmem:[%s159_s0 + $0x1] sm:$0x1]   ;;  %vm27_vm4 = vcmask 736896   ;;  %vm33_vm5 = vcmask 654896  }
   0x7   :  { %s109_s0 = smov 10   ;;  %vm39_vm6 = vcmask 572896   ;;  %vm45_vm7 = vcmask 490896   ;;  %vm51_vm8 = vcmask 408896   ;;  %vm57_vm9 = vcmask 326896  }
   0x8   :  { %vm63_vm10 = vcmask 244896   ;;  %vm69_vm11 = vcmask 162896  }
   0xa   :  { %31 = vrot.lane.b32.xlu0 %v81_v4, %s103_s24  ;;  %37 = vrot.lane.b32.xlu1 %v82_v6, %s104_s25 }
   0xe   :  { %43 = vrot.lane.b32.xlu0 %v83_v7, %s105_s30  ;;  %49 = vrot.lane.b32.xlu1 %v84_v8, %s106_s2 }
  0x12   :  { %55 = vrot.lane.b32.xlu0 %v85_v9, %s107_s7  ;;  %61 = vrot.lane.b32.xlu1 %v86_v10, %s108_s8 }
  0x16   :  { %67 = vrot.lane.b32.xlu0 %v87_v11, %s109_s0 }
  0x74   :  { %v8_v12 = vpop.permute.xlu0 %7   ;;  %v20_v13 = vpop.permute.xlu1 %19  }
  0x75   :  { %10 = vst.msk [vmem:[#allocation0] sm:$0x1] %vm9_vm1, %v8_v12  }
  0x78   :  { %v14_v14 = vpop.permute.xlu0 %13   ;;  %v26_v15 = vpop.permute.xlu1 %25  }
  0x79   :  { %16 = vst.msk [vmem:[#allocation0] sm:$0x1] %vm15_vm2, %v14_v14  }
  0x7a   :  { %22 = vst.msk [vmem:[#allocation0] sm:$0x1] %vm21_vm3, %v20_v13  }
  0x7b   :  { %28 = vst.msk [vmem:[#allocation0] sm:$0x1] %vm27_vm4, %v26_v15  }
  0x7c   :  { %v32_v16 = vpop.permute.xlu0 %31   ;;  %v38_v17 = vpop.permute.xlu1 %37  }
  0x7d   :  { %34 = vst.msk [vmem:[#allocation0] sm:$0x1] %vm33_vm5, %v32_v16  }
  0x7e   :  { %40 = vst.msk [vmem:[#allocation0] sm:$0x1] %vm39_vm6, %v38_v17  }
  0x80   :  { %v44_v18 = vpop.permute.xlu0 %43   ;;  %v50_v19 = vpop.permute.xlu1 %49  }
  0x81   :  { %46 = vst.msk [vmem:[#allocation0] sm:$0x1] %vm45_vm7, %v44_v18  }
  0x82   :  { %52 = vst.msk [vmem:[#allocation0] sm:$0x1] %vm51_vm8, %v50_v19  }
  0x84   :  { %v56_v20 = vpop.permute.xlu0 %55   ;;  %v62_v21 = vpop.permute.xlu1 %61  }
  0x85   :  { %58 = vst.msk [vmem:[#allocation0] sm:$0x1] %vm57_vm9, %v56_v20  }
  0x86   :  { %64 = vst.msk [vmem:[#allocation0] sm:$0x1] %vm63_vm10, %v62_v21  }
  0x88   :  { %v68_v22 = vpop.permute.xlu0 %67  }
  0x89   :  { %70 = vst.msk [vmem:[#allocation0] sm:$0x1] %vm69_vm11, %v68_v22  }
  0x90   :  { %v74_v23 = vld [vmem:[#allocation0] sm:$0x1] }
  0x91   :  { %76 = vst [vmem:[%s160_s1] sm:$0x1] %v74_v23 }

// kernel: tile.19
= control target key start
LH: loop header
LB: loop body
LE: loop exit
PB: predicated region body
PF: predicated region fallthrough
CT: control target
= control target key end

     0   :  { %vm7_vm0 = vcmask 162816   ;;  %s37_s8 = smov 20   ;;  %s38_s9 = smov 40   ;;  %vm13_vm1 = vcmask 654816   ;;  %vm19_vm2 = vcmask 490816   ;;  %vm25_vm3 = vcmask 326816   ;;  %s55_s0 = inlined_call_operand.vmem [shape: f32[4,20], index: 0, kind: input, shape index: {}]   ;;  %s56_s1 = inlined_call_operand.vmem [shape: f32[80], index: 1, kind: output, shape index: {}]  }
   0x1   :  { %v4_v0 = vld [vmem:[%s55_s0] sm:$0xf]  ;;  %s36_s0 = smov 60  }
   0x2   :  { %5 = vst [vmem:[#allocation1] sm:$0xf] %v4_v0 }
   0x9   :  { %v10_v1 = vld [vmem:[#allocation1 + $0x3] sm:$0x1]   ;;  %v22_v2 = vld [vmem:[#allocation1 + $0x1] sm:$0x1]   ;;  %v6_v3 = vld [vmem:[#allocation1] sm:$0x1]  }
   0xa   :  { %11 = vrot.lane.b32.xlu0 %v10_v1, %s36_s0  ;;  %23 = vrot.lane.b32.xlu1 %v22_v2, %s37_s8  ;;  %v16_v4 = vld [vmem:[#allocation1 + $0x2] sm:$0x1]   ;;  %8 = vst.msk [vmem:[#allocation0] sm:$0x1] %vm7_vm0, %v6_v3  }
   0xe   :  { %17 = vrot.lane.b32.xlu0 %v16_v4, %s38_s9 }
  0x7c   :  { %v12_v5 = vpop.permute.xlu0 %11   ;;  %v24_v6 = vpop.permute.xlu1 %23  }
  0x7d   :  { %14 = vst.msk [vmem:[#allocation0] sm:$0x1] %vm13_vm1, %v12_v5  }
  0x80   :  { %v18_v7 = vpop.permute.xlu0 %17  }
  0x81   :  { %20 = vst.msk [vmem:[#allocation0] sm:$0x1] %vm19_vm2, %v18_v7  }
  0x82   :  { %26 = vst.msk [vmem:[#allocation0] sm:$0x1] %vm25_vm3, %v24_v6  }
  0x89   :  { %v30_v8 = vld [vmem:[#allocation0] sm:$0x1] }
  0x8a   :  { %32 = vst [vmem:[%s56_s1] sm:$0x1] %v30_v8 }

// kernel: tile.18
= control target key start
LH: loop header
LB: loop body
LE: loop exit
PB: predicated region body
PF: predicated region fallthrough
CT: control target
= control target key end

     0   :  { %2 = vsyncpa [#allocation1], 0  ;;  %s44_s6 = smov [#allocation0]   ;;  %s70_s0 = inlined_call_operand.hbm [shape: f32[20], index: 0, kind: input, shape index: {}]   ;;  %s71_s1 = inlined_call_operand.vmem [shape: f32[4,20], index: 1, kind: output, shape index: {}]  }
   0x1   :  { %s9_s7 = sshll.u32 %s44_s6, 4  ;;  %s20_s10 = scalar_lea.hbm %s70_s0, 16  ;;  %s10_s7 = int_to_ptr.vmem [resolvable:$true] %s9_s7 }
   0x2   :  { %p21_p0 = scmp.ne.s32.totalorder %s70_s0, %s20_s10  ;;  %p24_p1 = scmp.lt.u32.totalorder %s20_s10, %s70_s0 }
   0x4   :  { %p26_p2 = pnand %p24_p1, %p21_p0 }
   0x6   :  { %29 = shalt.err (!%p26_p2)
}
   0x7   :  { %s30_s15 = scalar_lea.vmem %s10_s7, 16  ;;  %s34_s16 = scalar_lea.vmem %s10_s7, 32 }
   0x8   :  { %p31_p3 = scmp.ne.s32.totalorder %s10_s7, %s30_s15  ;;  %p35_p4 = scmp.lt.s32.totalorder %s10_s7, %s10_s7 }
   0x9   :  { %p36_p5 = scmp.lt.s32.totalorder %s34_s16, %s30_s15 }
   0xb   :  { %p37_p6 = por %p36_p5, %p35_p4 }
   0xd   :  { %p38_p7 = pnand %p37_p6, %p31_p3 }
   0xf   :  { %41 = shalt.err (!%p38_p7)
}
  0x10   :  { %12 = dma.hbm_to_vmem [thread:$0]  %s70_s0, 16, %s10_s7, [#allocation1]  }
  0x11   :  { %42 = dma.done.wait [#allocation1], 16  }
  0x12   :  { %43 = vsyncadd [#allocation1], 4294967280  ;;  %v16_v0 = vld [vmem:[#allocation0] ss:$0 sm:$0xff] }
  0x13   :  { %17 = vst [vmem:[%s71_s1] sm:$0xf] %v16_v0 }
  0x14   :  { %18 = vsyncpa [#allocation1], 1 }

// kernel: tile.13
= control target key start
LH: loop header
LB: loop body
LE: loop exit
PB: predicated region body
PF: predicated region fallthrough
CT: control target
= control target key end

     0   :  { %2 = vsyncpa [#allocation1], 0  ;;  %s47_s6 = smov [#allocation0]   ;;  %s76_s0 = inlined_call_operand.hbm [shape: f32[10], index: 0, kind: input, shape index: {}]   ;;  %s77_s1 = inlined_call_operand.vmem [shape: f32[12,10], index: 1, kind: output, shape index: {}]  }
   0x1   :  { %s9_s7 = sshll.u32 %s47_s6, 4  ;;  %s23_s10 = scalar_lea.hbm %s76_s0, 16  ;;  %s10_s7 = int_to_ptr.vmem [resolvable:$true] %s9_s7 }
   0x2   :  { %p24_p0 = scmp.ne.s32.totalorder %s76_s0, %s23_s10  ;;  %p27_p1 = scmp.lt.u32.totalorder %s23_s10, %s76_s0 }
   0x4   :  { %p29_p2 = pnand %p27_p1, %p24_p0 }
   0x6   :  { %32 = shalt.err (!%p29_p2)
}
   0x7   :  { %s33_s15 = scalar_lea.vmem %s10_s7, 16  ;;  %s37_s16 = scalar_lea.vmem %s10_s7, 32 }
   0x8   :  { %p34_p3 = scmp.ne.s32.totalorder %s10_s7, %s33_s15  ;;  %p38_p4 = scmp.lt.s32.totalorder %s10_s7, %s10_s7 }
   0x9   :  { %p39_p5 = scmp.lt.s32.totalorder %s37_s16, %s33_s15 }
   0xb   :  { %p40_p6 = por %p39_p5, %p38_p4 }
   0xd   :  { %p41_p7 = pnand %p40_p6, %p34_p3 }
   0xf   :  { %44 = shalt.err (!%p41_p7)
}
  0x10   :  { %12 = dma.hbm_to_vmem [thread:$0]  %s76_s0, 16, %s10_s7, [#allocation1]  }
  0x11   :  { %45 = dma.done.wait [#allocation1], 16  }
  0x12   :  { %46 = vsyncadd [#allocation1], 4294967280  ;;  %v16_v0 = vld [vmem:[#allocation0] ss:$0 sm:$0xff] }
  0x13   :  { %17 = vst [vmem:[%s77_s1] sm:$0xff] %v16_v0  ;;  %21 = vst [vmem:[%s77_s1 + $0x8] sm:$0xff] %v16_v0 }
  0x14   :  { %20 = vsyncpa [#allocation1], 1 }

// kernel: net_forward.1
= control target key start
LH: loop header
LB: loop body
LE: loop exit
PB: predicated region body
PF: predicated region fallthrough
CT: control target
= control target key end

     0   :  { %v9795_v0 = vmov 0.0   ;;  %vm82_vm0 = vcmask 1045504   ;;  %vm7542_vm1 = vmmov 0   ;;  %vm72_vm2 = vcmask 228352   ;;  %s9785_s1 = inlined_call_operand.vmem [shape: bf16[2,5,28,128], index: 1, kind: input, shape index: {}]   ;;  %s9786_s0 = inlined_call_operand.vmem [shape: f32[1,4,56,28], index: 0, kind: input, shape index: {}]   ;;  %s9787_s2 = inlined_call_operand.vmem [shape: f32[1,128], index: 2, kind: input, shape index: {}]   ;;  %s9788_s3 = inlined_call_operand.vmem [shape: bf16[2,5,128,128], index: 3, kind: input, shape index: {}]   ;;  %s9789_s5 = inlined_call_operand.vmem [shape: bf16[4,128,128], index: 5, kind: input, shape index: {}]   ;;  %s9790_s4 = inlined_call_operand.vmem [shape: f32[1,128], index: 4, kind: input, shape index: {}]   ;;  %s9791_s7 = inlined_call_operand.vmem [shape: bf16[128,128], index: 7, kind: input, shape index: {}]   ;;  %s9792_s6 = inlined_call_operand.vmem [shape: f32[1,128], index: 6, kind: input, shape index: {}]   ;;  %s9793_s8 = inlined_call_operand.vmem [shape: f32[1,128], index: 8, kind: input, shape index: {}]   ;;  %s9794_s9 = inlined_call_operand.vmem [shape: f32[8,128], index: 9, kind: output, shape index: {}]  }
   0x1   :  { %7298 = vmatprep.subr.bf16.mxu1 %v9795_v0  ;;  %v7597_v1 = vld [vmem:[%s9785_s1 + $0x10] sm:$0xff]   ;;  %6166 = vmatprep.mubr.msk.bf16.mxu1 %vm7542_vm1, %v9795_v0  ;;  %v7369_v2 = vld [vmem:[%s9785_s1 + $0x18] sm:$0x3f]   ;;  %v7611_v3 = vld [vmem:[%s9786_s0 + $0x48] sm:$0xff] }
   0x2   :  { %6158 = vmatprep.subr.bf16.mxu0 %v9795_v0  ;;  %6162 = vmatprep.mubr.msk.bf16.mxu0 %vm7542_vm1, %v9795_v0  ;;  %v7616_v4 = vld [vmem:[%s9786_s0 + $0x50] sm:$0xff]  ;;  %v7621_v5 = vsel %vm82_vm0, %v7369_v2, 0  ;;  %v5185_v6 = vld [vmem:[%s9786_s0 + $0x38] sm:$0xff]  ;;  %v7630_v7 = vld [vmem:[%s9786_s0 + $0x40] sm:$0xff] }
   0x3   :  { %7300 = vmatpush3.bf16.msra.mxu1 %v7597_v1  ;;  %6159 = vmatpush3.bf16.msra.mxu0 %v7597_v1  ;;  %v7634_v8 = vpack.c.bf16 %v7616_v4, %v7611_v3  ;;  %v7639_v9 = vld [vmem:[%s9785_s1] sm:$0xff]   ;;  %v7642_v10 = vpack.c.bf16 %v7630_v7, %v5185_v6  ;;  %v7371_v11 = vld [vmem:[%s9785_s1 + $0x8] sm:$0x3f]   ;;  %v7669_v14 = vld [vmem:[%s9786_s0 + $0x58] sm:$0xff]  ;;  %v7832_v50 = vpack.c.bf16 %v7611_v3, %v7630_v7 }
   0x4   :  { %7299 = vmatprep.subr.bf16.mxu1 %v9795_v0  ;;  %6160 = vmatprep.subr.bf16.mxu0 %v9795_v0  ;;  %v7654_v12 = vld [vmem:[%s9785_s1 + $0x20] sm:$0xff]   ;;  %v7373_v13 = vld [vmem:[%s9785_s1 + $0x28] sm:$0x3f]   ;;  %v7678_v16 = vsel %vm82_vm0, %v7371_v11, 0  ;;  %v5205_v17 = vld [vmem:[%s9786_s0 + $0x70] sm:$0xff]  ;;  %v7874_v60 = vpack.c.bf16 %v7669_v14, %v7616_v4 }
   0x5   :  { %v7674_v15 = vld [vmem:[%s9786_s0 + $0x60] sm:$0xff]  ;;  %v7687_v18 = vld [vmem:[%s9786_s0 + $0x78] sm:$0xff]  ;;  %v7691_v19 = vsel %vm82_vm0, %v7373_v13, 0  ;;  %v7377_v23 = vld [vmem:[%s9785_s1 + $0x48] sm:$0x3f]  }
   0x6   :  { %v7697_v20 = vpack.c.bf16 %v7674_v15, %v7669_v14  ;;  %v7701_v21 = vpack.c.bf16 %v7687_v18, %v5205_v17  ;;  %v7708_v22 = vld [vmem:[%s9785_s1 + $0x40] sm:$0xff]   ;;  %v34_v25 = vld [vmem:[%s9786_s0 + $0x8] sm:$0xff]  ;;  %v7741_v28 = vsel %vm82_vm0, %v7377_v23, 0  ;;  %v7748_v30 = vld [vmem:[%s9785_s1 + $0x30] sm:$0xff]  }
   0x7   :  { %7301 = vmatpush3.bf16.msra.mxu1 %v7621_v5  ;;  %6161 = vmatpush3.bf16.msra.mxu0 %v7621_v5  ;;  %v33_v24 = vld [vmem:[%s9786_s0] sm:$0xff]  ;;  %v7737_v27 = vld [vmem:[%s9786_s0 + $0x88] sm:$0xff]  ;;  %v7375_v31 = vld [vmem:[%s9785_s1 + $0x38] sm:$0x3f]  }
   0x8   :  { %6174 = vmatprep.subr.bf16.mxu1 %v9795_v0  ;;  %6190 = vmatprep.subr.bf16.mxu0 %v9795_v0  ;;  %v7731_v26 = vld [vmem:[%s9786_s0 + $0x80] sm:$0xff]  ;;  %v7743_v29 = vpack.c.bf16 %v34_v25, %v33_v24  ;;  %v35_v33 = vld [vmem:[%s9786_s0 + $0x10] sm:$0xff]  ;;  %v36_v34 = vld [vmem:[%s9786_s0 + $0x18] sm:$0xff]  ;;  %v7774_v36 = vsel %vm82_vm0, %v7375_v31, 0 }
   0x9   :  { %v7755_v32 = vpack.c.bf16 %v7737_v27, %v7731_v26  ;;  %v7383_v35 = vld [vmem:[%s9785_s1 + $0x78] sm:$0x3f]   ;;  %v7385_v38 = vld [vmem:[%s9785_s1 + $0x88] sm:$0x3f]   ;;  %v7790_v39 = vld [vmem:[%s9786_s0 + $0x90] sm:$0xff]  ;;  %v7803_v43 = vpack.c.bf16 %v36_v34, %v35_v33  ;;  %v7828_v49 = vpack.c.bf16 %v35_v33, %v34_v25 }
   0xa   :  { %6167 = vmatmul.mubr.msk.bf16.vlgmr.msra.gmra.mrb[0].mxu1 %vm72_vm2, %v7634_v8  ;;  %6163 = vmatmul.mubr.msk.bf16.vlgmr.msra.gmra.mrb[0].mxu0 %vm72_vm2, %v7642_v10  ;;  %v7777_v37 = vsel %vm82_vm0, %v7383_v35, 0  ;;  %v7795_v40 = vld [vmem:[%s9786_s0 + $0x98] sm:$0xff]  ;;  %v7798_v41 = vsel %vm82_vm0, %v7385_v38, 0  ;;  %v37_v46 = vld [vmem:[%s9786_s0 + $0x20] sm:$0xff]  ;;  %v38_v47 = vld [vmem:[%s9786_s0 + $0x28] sm:$0xff] }
   0xb   :  { %6175 = vmatpush3.bf16.msra.mxu1 %v7639_v9  ;;  %6170 = vmatprep.mubr.msk.bf16.mxu1 %vm7542_vm1, %v9795_v0  ;;  %v7387_v42 = vld [vmem:[%s9785_s1 + $0x98] sm:$0x3f]   ;;  %v7811_v45 = vpack.c.bf16 %v7795_v40, %v7790_v39  ;;  %v41_v48 = vpack.c.bf16 %v38_v47, %v37_v46  ;;  %v7837_v51 = vld [vmem:[%s9785_s1 + $0x50] sm:$0xff]   ;;  %v5220_v53 = vld [vmem:[%s9786_s0 + $0xa8] sm:$0xff]  ;;  %v7867_v58 = vpack.c.bf16 %v37_v46, %v36_v34 }
   0xc   :  { %6176 = vmatprep.subr.bf16.mxu1 %v9795_v0  ;;  %6191 = vmatpush3.bf16.msra.mxu0 %v7654_v12  ;;  %v7807_v44 = vsel %vm82_vm0, %v7387_v42, 0  ;;  %v7381_v52 = vld [vmem:[%s9785_s1 + $0x58] sm:$0x3f]   ;;  %v5221_v54 = vld [vmem:[%s9786_s0 + $0xb0] sm:$0xff]  ;;  %v7865_v57 = vld [vmem:[%s9785_s1 + $0x60] sm:$0xff]  }
   0xd   :  { %6192 = vmatprep.subr.bf16.mxu0 %v9795_v0  ;;  %6194 = vmatprep.mubr.msk.bf16.mxu0 %vm7542_vm1, %v9795_v0  ;;  %v7856_v55 = vpack.c.bf16 %v5221_v54, %v5220_v53  ;;  %v7860_v56 = vsel %vm82_vm0, %v7381_v52, 0  ;;  %v7379_v59 = vld [vmem:[%s9785_s1 + $0x68] sm:$0x3f]   ;;  %v5222_v61 = vld [vmem:[%s9786_s0 + $0xb8] sm:$0xff]  ;;  %v5223_v62 = vld [vmem:[%s9786_s0 + $0xc0] sm:$0xff] }
   0xe   :  { %v7893_v63 = vsel %vm82_vm0, %v7379_v59, 0  ;;  %v430_v2 = vld [vmem:[%s9786_s0 + $0x30] sm:$0xff]  ;;  %v7900_v3 = vpack.c.bf16 %v5223_v62, %v5222_v61  ;;  %v5224_v6 = vld [vmem:[%s9786_s0 + $0xc8] sm:$0xff]  ;;  %v7925_v13 = vld [vmem:[%s9785_s1 + $0x80] sm:$0xff]  }
   0xf   :  { %6177 = vmatpush3.bf16.msra.mxu1 %v7678_v16  ;;  %v7903_v4 = vpack.c.bf16 %v430_v2, %v38_v47  ;;  %v5225_v7 = vld [vmem:[%s9786_s0 + $0xd0] sm:$0xff]  ;;  %v5307_v23 = vld [vmem:[%s9786_s0 + $0x68] sm:$0xff] }
  0x10   :  { %6193 = vmatpush3.bf16.msra.mxu0 %v7691_v19  ;;  %6206 = vmatprep.subr.bf16.mxu1 %v9795_v0  ;;  %v7920_v11 = vpack.c.bf16 %v5225_v7, %v5224_v6  ;;  %v7940_v14 = vld [vmem:[%s9785_s1 + $0x70] sm:$0xff]   ;;  %v8091_v24 = vpack.c.bf16 %v5307_v23, %v7674_v15 }
  0x11   :  { %6222 = vmatprep.subr.bf16.mxu0 %v9795_v0  ;;  %v7976_v17 = vld [vmem:[%s9785_s1 + $0x90] sm:$0xff]  }
  0x12   :  { %6171 = vmatmul.mubr.msk.bf16.gmra.mrb[4].mxu1 %vm72_vm2, %v7697_v20 }
  0x13   :  { %6178 = vmatprep.mubr.msk.bf16.mxu1 %vm7542_vm1, %v9795_v0  ;;  %6195 = vmatmul.mubr.msk.bf16.vlgmr.msra.gmra.mrb[4].mxu0 %vm72_vm2, %v7701_v21 }
  0x14   :  { %6198 = vmatprep.mubr.msk.bf16.mxu0 %vm7542_vm1, %v9795_v0  ;;  %6223 = vmatpush3.bf16.msra.mxu0 %v7708_v22 }
  0x15   :  { %6224 = vmatprep.subr.bf16.mxu0 %v9795_v0 }
  0x18   :  { %6225 = vmatpush3.bf16.msra.mxu0 %v7741_v28 }
  0x19   :  { %6254 = vmatprep.subr.bf16.mxu0 %v9795_v0 }
  0x1a   :  { %6179 = vmatmul.mubr.msk.bf16.vlgmr.msra.gmra.mrb[8].mxu1 %vm72_vm2, %v7743_v29 }
  0x1b   :  { %6207 = vmatpush3.bf16.msra.mxu1 %v7748_v30  ;;  %6182 = vmatprep.mubr.msk.bf16.mxu1 %vm7542_vm1, %v9795_v0 }
  0x1c   :  { %6199 = vmatmul.mubr.msk.bf16.gmra.mrb[8].mxu0 %vm72_vm2, %v7755_v32  ;;  %6208 = vmatprep.subr.bf16.mxu1 %v9795_v0 }
  0x1d   :  { %6202 = vmatprep.mubr.msk.bf16.mxu0 %vm7542_vm1, %v9795_v0 }
  0x1f   :  { %6209 = vmatpush3.bf16.msra.mxu1 %v7774_v36 }
  0x20   :  { %6238 = vmatprep.subr.bf16.mxu1 %v9795_v0 }
  0x22   :  { %6183 = vmatmul.mubr.msk.bf16.gmra.mrb[12].mxu1 %vm72_vm2, %v7803_v43 }
  0x23   :  { %6186 = vmatprep.mubr.msk.bf16.mxu1 %vm7542_vm1, %v9795_v0 }
  0x24   :  { %6203 = vmatmul.mubr.msk.bf16.gmra.mrb[12].mxu0 %vm72_vm2, %v7811_v45 }
  0x25   :  { %6226 = vmatprep.mubr.msk.bf16.mxu0 %vm7542_vm1, %v9795_v0 }
  0x2a   :  { %6187 = vmatmul.mubr.msk.bf16.gmra.mrb[16].mxu1 %vm72_vm2, %v41_v48 }
  0x2b   :  { %6210 = vmatprep.mubr.msk.bf16.mxu1 %vm7542_vm1, %v9795_v0 }
  0x2c   :  { %6227 = vmatmul.mubr.msk.bf16.vlgmr.msra.gmra.mrb[16].mxu0 %vm72_vm2, %v7828_v49 }
  0x2d   :  { %6230 = vmatprep.mubr.msk.bf16.mxu0 %vm7542_vm1, %v9795_v0  ;;  %6255 = vmatpush3.bf16.msra.mxu0 %v7837_v51 }
  0x2e   :  { %6256 = vmatprep.subr.bf16.mxu0 %v9795_v0 }
  0x31   :  { %6257 = vmatpush3.bf16.msra.mxu0 %v7860_v56 }
  0x32   :  { %6211 = vmatmul.mubr.msk.bf16.vlgmr.msra.gmra.mrb[20].mxu1 %vm72_vm2, %v7856_v55  ;;  %6286 = vmatprep.subr.bf16.mxu0 %v9795_v0 }
  0x33   :  { %6239 = vmatpush3.bf16.msra.mxu1 %v7865_v57  ;;  %6214 = vmatprep.mubr.msk.bf16.mxu1 %vm7542_vm1, %v9795_v0 }
  0x34   :  { %6231 = vmatmul.mubr.msk.bf16.gmra.mrb[20].mxu0 %vm72_vm2, %v7867_v58  ;;  %6240 = vmatprep.subr.bf16.mxu1 %v9795_v0 }
  0x35   :  { %6234 = vmatprep.mubr.msk.bf16.mxu0 %vm7542_vm1, %v9795_v0 }
  0x37   :  { %6241 = vmatpush3.bf16.msra.mxu1 %v7893_v63 }
  0x38   :  { %6270 = vmatprep.subr.bf16.mxu1 %v9795_v0 }
  0x3a   :  { %6215 = vmatmul.mubr.msk.bf16.gmra.mrb[24].mxu1 %vm72_vm2, %v7900_v3 }
  0x3b   :  { %6218 = vmatprep.mubr.msk.bf16.mxu1 %vm7542_vm1, %v9795_v0 }
  0x3c   :  { %6235 = vmatmul.mubr.msk.bf16.gmra.mrb[24].mxu0 %vm72_vm2, %v7903_v4 }
  0x3d   :  { %6258 = vmatprep.mubr.msk.bf16.mxu0 %vm7542_vm1, %v9795_v0 }
  0x42   :  { %6219 = vmatmul.mubr.msk.bf16.gmra.mrb[28].mxu1 %vm72_vm2, %v7920_v11 }
  0x43   :  { %6242 = vmatprep.mubr.msk.bf16.mxu1 %vm7542_vm1, %v9795_v0 }
  0x44   :  { %6259 = vmatmul.mubr.msk.bf16.vlgmr.msra.gmra.mrb[28].mxu0 %vm72_vm2, %v7743_v29 }
  0x45   :  { %6262 = vmatprep.mubr.msk.bf16.mxu0 %vm7542_vm1, %v9795_v0  ;;  %6287 = vmatpush3.bf16.msra.mxu0 %v7925_v13 }
  0x46   :  { %6288 = vmatprep.subr.bf16.mxu0 %v9795_v0 }
  0x49   :  { %6289 = vmatpush3.bf16.msra.mxu0 %v7798_v41 }
  0x4a   :  { %6243 = vmatmul.mubr.msk.bf16.vlgmr.msra.gmra.mrb[32].mxu1 %vm72_vm2, %v7642_v10  ;;  %6318 = vmatprep.subr.bf16.mxu0 %v9795_v0 }
  0x4b   :  { %6271 = vmatpush3.bf16.msra.mxu1 %v7940_v14  ;;  %6246 = vmatprep.mubr.msk.bf16.mxu1 %vm7542_vm1, %v9795_v0 }
  0x4c   :  { %6263 = vmatmul.mubr.msk.bf16.gmra.mrb[32].mxu0 %vm72_vm2, %v7803_v43  ;;  %6272 = vmatprep.subr.bf16.mxu1 %v9795_v0 }
  0x4d   :  { %6266 = vmatprep.mubr.msk.bf16.mxu0 %vm7542_vm1, %v9795_v0 }
  0x4f   :  { %6273 = vmatpush3.bf16.msra.mxu1 %v7777_v37 }
  0x50   :  { %6302 = vmatprep.subr.bf16.mxu1 %v9795_v0 }
  0x52   :  { %6247 = vmatmul.mubr.msk.bf16.gmra.mrb[36].mxu1 %vm72_vm2, %v7634_v8 }
  0x53   :  { %6250 = vmatprep.mubr.msk.bf16.mxu1 %vm7542_vm1, %v9795_v0 }
  0x54   :  { %6267 = vmatmul.mubr.msk.bf16.gmra.mrb[36].mxu0 %vm72_vm2, %v41_v48 }
  0x55   :  { %6290 = vmatprep.mubr.msk.bf16.mxu0 %vm7542_vm1, %v9795_v0 }
  0x5a   :  { %6251 = vmatmul.mubr.msk.bf16.gmra.mrb[40].mxu1 %vm72_vm2, %v7697_v20 }
  0x5b   :  { %6274 = vmatprep.mubr.msk.bf16.mxu1 %vm7542_vm1, %v9795_v0 }
  0x5c   :  { %6291 = vmatmul.mubr.msk.bf16.vlgmr.msra.gmra.mrb[40].mxu0 %vm72_vm2, %v7856_v55 }
  0x5d   :  { %6294 = vmatprep.mubr.msk.bf16.mxu0 %vm7542_vm1, %v9795_v0  ;;  %6319 = vmatpush3.bf16.msra.mxu0 %v7597_v1 }
  0x5e   :  { %6320 = vmatprep.subr.bf16.mxu0 %v9795_v0 }
  0x61   :  { %6321 = vmatpush3.bf16.msra.mxu0 %v7621_v5 }
  0x62   :  { %6275 = vmatmul.mubr.msk.bf16.vlgmr.msra.gmra.mrb[44].mxu1 %vm72_vm2, %v7701_v21  ;;  %6350 = vmatprep.subr.bf16.mxu0 %v9795_v0 }
  0x63   :  { %6303 = vmatpush3.bf16.msra.mxu1 %v7976_v17  ;;  %6278 = vmatprep.mubr.msk.bf16.mxu1 %vm7542_vm1, %v9795_v0 }
  0x64   :  { %6295 = vmatmul.mubr.msk.bf16.gmra.mrb[44].mxu0 %vm72_vm2, %v7900_v3  ;;  %6304 = vmatprep.subr.bf16.mxu1 %v9795_v0 }
  0x65   :  { %6298 = vmatprep.mubr.msk.bf16.mxu0 %vm7542_vm1, %v9795_v0 }
  0x67   :  { %6305 = vmatpush3.bf16.msra.mxu1 %v7807_v44 }
  0x68   :  { %6334 = vmatprep.subr.bf16.mxu1 %v9795_v0 }
  0x6a   :  { %6279 = vmatmul.mubr.msk.bf16.gmra.mrb[48].mxu1 %vm72_vm2, %v7755_v32 }
  0x6b   :  { %6282 = vmatprep.mubr.msk.bf16.mxu1 %vm7542_vm1, %v9795_v0 }
  0x6c   :  { %6299 = vmatmul.mubr.msk.bf16.gmra.mrb[48].mxu0 %vm72_vm2, %v7920_v11 }
  0x6d   :  { %6322 = vmatprep.mubr.msk.bf16.mxu0 %vm7542_vm1, %v9795_v0 }
  0x72   :  { %6283 = vmatmul.mubr.msk.bf16.gmra.mrb[52].mxu1 %vm72_vm2, %v7811_v45 }
  0x73   :  { %6306 = vmatprep.mubr.msk.bf16.mxu1 %vm7542_vm1, %v9795_v0 }
  0x74   :  { %6323 = vmatmul.mubr.msk.bf16.vlgmr.msra.gmra.mrb[52].mxu0 %vm72_vm2, %v7701_v21 }
  0x75   :  { %6326 = vmatprep.mubr.msk.bf16.mxu0 %vm7542_vm1, %v9795_v0  ;;  %6351 = vmatpush3.bf16.msra.mxu0 %v7654_v12 }
  0x76   :  { %6352 = vmatprep.subr.bf16.mxu0 %v9795_v0 }
  0x79   :  { %6353 = vmatpush3.bf16.msra.mxu0 %v7691_v19 }
  0x7a   :  { %6307 = vmatmul.mubr.msk.bf16.vlgmr.msra.gmra.mrb[56].mxu1 %vm72_vm2, %v7828_v49  ;;  %6382 = vmatprep.subr.bf16.mxu0 %v9795_v0 }
  0x7b   :  { %6335 = vmatpush3.bf16.msra.mxu1 %v7639_v9  ;;  %6310 = vmatprep.mubr.msk.bf16.mxu1 %vm7542_vm1, %v9795_v0 }
  0x7c   :  { %6327 = vmatmul.mubr.msk.bf16.gmra.mrb[56].mxu0 %vm72_vm2, %v7755_v32  ;;  %6336 = vmatprep.subr.bf16.mxu1 %v9795_v0 }
  0x7d   :  { %6330 = vmatprep.mubr.msk.bf16.mxu0 %vm7542_vm1, %v9795_v0 }
  0x7f   :  { %6337 = vmatpush3.bf16.msra.mxu1 %v7678_v16 }
  0x80   :  { %6366 = vmatprep.subr.bf16.mxu1 %v9795_v0 }
  0x82   :  { %6311 = vmatmul.mubr.msk.bf16.gmra.mrb[60].mxu1 %vm72_vm2, %v7867_v58 }
  0x83   :  { %6314 = vmatprep.mubr.msk.bf16.mxu1 %vm7542_vm1, %v9795_v0 }
  0x84   :  { %6331 = vmatmul.mubr.msk.bf16.gmra.mrb[60].mxu0 %vm72_vm2, %v7811_v45 }
  0x85   :  { %6354 = vmatprep.mubr.msk.bf16.mxu0 %vm7542_vm1, %v9795_v0 }
  0x8a   :  { %6315 = vmatmul.mubr.msk.bf16.gmra.mrb[64].mxu1 %vm72_vm2, %v7903_v4 }
  0x8b   :  { %6338 = vmatprep.mubr.msk.bf16.mxu1 %vm7542_vm1, %v9795_v0 }
  0x8c   :  { %6355 = vmatmul.mubr.msk.bf16.vlgmr.msra.gmra.mrb[64].mxu0 %vm72_vm2, %v7856_v55 }
  0x8d   :  { %6358 = vmatprep.mubr.msk.bf16.mxu0 %vm7542_vm1, %v9795_v0  ;;  %6383 = vmatpush3.bf16.msra.mxu0 %v7708_v22 }
  0x8e   :  { %6384 = vmatprep.subr.bf16.mxu0 %v9795_v0 }
  0x91   :  { %6385 = vmatpush3.bf16.msra.mxu0 %v7741_v28 }
  0x92   :  { %6339 = vmatmul.mubr.msk.bf16.vlgmr.msra.gmra.mrb[68].mxu1 %vm72_vm2, %v7642_v10  ;;  %6414 = vmatprep.subr.bf16.mxu0 %v9795_v0 }
  0x93   :  { %6367 = vmatpush3.bf16.msra.mxu1 %v7748_v30  ;;  %6342 = vmatprep.mubr.msk.bf16.mxu1 %vm7542_vm1, %v9795_v0 }
  0x94   :  { %6359 = vmatmul.mubr.msk.bf16.gmra.mrb[68].mxu0 %vm72_vm2, %v7900_v3  ;;  %6368 = vmatprep.subr.bf16.mxu1 %v9795_v0 }
  0x95   :  { %6362 = vmatprep.mubr.msk.bf16.mxu0 %vm7542_vm1, %v9795_v0 }
  0x97   :  { %6369 = vmatpush3.bf16.msra.mxu1 %v7774_v36 }
  0x98   :  { %6398 = vmatprep.subr.bf16.mxu1 %v9795_v0 }
  0x9a   :  { %6343 = vmatmul.mubr.msk.bf16.gmra.mrb[72].mxu1 %vm72_vm2, %v7634_v8 }
  0x9b   :  { %6346 = vmatprep.mubr.msk.bf16.mxu1 %vm7542_vm1, %v9795_v0 }
  0x9c   :  { %6363 = vmatmul.mubr.msk.bf16.gmra.mrb[72].mxu0 %vm72_vm2, %v7920_v11 }
  0x9d   :  { %6386 = vmatprep.mubr.msk.bf16.mxu0 %vm7542_vm1, %v9795_v0 }
  0xa2   :  { %6347 = vmatmul.mubr.msk.bf16.gmra.mrb[76].mxu1 %vm72_vm2, %v7697_v20 }
  0xa3   :  { %6370 = vmatprep.mubr.msk.bf16.mxu1 %vm7542_vm1, %v9795_v0 }
  0xa4   :  { %6387 = vmatmul.mubr.msk.bf16.vlgmr.msra.gmra.mrb[76].mxu0 %vm72_vm2, %v7832_v50 }
  0xa5   :  { %6390 = vmatprep.mubr.msk.bf16.mxu0 %vm7542_vm1, %v9795_v0  ;;  %6415 = vmatpush3.bf16.msra.mxu0 %v7837_v51 }
  0xa6   :  { %6416 = vmatprep.subr.bf16.mxu0 %v9795_v0 }
  0xa9   :  { %6417 = vmatpush3.bf16.msra.mxu0 %v7860_v56 }
  0xaa   :  { %6371 = vmatmul.mubr.msk.bf16.vlgmr.msra.gmra.mrb[80].mxu1 %vm72_vm2, %v7828_v49  ;;  %6446 = vmatprep.subr.bf16.mxu0 %v9795_v0 }
  0xab   :  { %6399 = vmatpush3.bf16.msra.mxu1 %v7865_v57  ;;  %6374 = vmatprep.mubr.msk.bf16.mxu1 %vm7542_vm1, %v9795_v0 }
  0xac   :  { %6391 = vmatmul.mubr.msk.bf16.gmra.mrb[80].mxu0 %vm72_vm2, %v7874_v60  ;;  %6400 = vmatprep.subr.bf16.mxu1 %v9795_v0 }
  0xad   :  { %6394 = vmatprep.mubr.msk.bf16.mxu0 %vm7542_vm1, %v9795_v0 }
  0xaf   :  { %6401 = vmatpush3.bf16.msra.mxu1 %v7893_v63 }
  0xb0   :  { %6430 = vmatprep.subr.bf16.mxu1 %v9795_v0 }
  0xb2   :  { %6375 = vmatmul.mubr.msk.bf16.gmra.mrb[84].mxu1 %vm72_vm2, %v7867_v58 }
  0xb3   :  { %6378 = vmatprep.mubr.msk.bf16.mxu1 %vm7542_vm1, %v9795_v0 }
  0xb4   :  { %6395 = vmatmul.mubr.msk.bf16.gmra.mrb[84].mxu0 %vm72_vm2, %v8091_v24 }
  0xb5   :  { %6418 = vmatprep.mubr.msk.bf16.mxu0 %vm7542_vm1, %v9795_v0 }
  0xba   :  { %6379 = vmatmul.mubr.msk.bf16.gmra.mrb[88].mxu1 %vm72_vm2, %v7903_v4 }
  0xbb   :  { %6402 = vmatprep.mubr.msk.bf16.mxu1 %vm7542_vm1, %v9795_v0 }
  0xbc   :  { %6419 = vmatmul.mubr.msk.bf16.vlgmr.msra.gmra.mrb[88].mxu0 %vm72_vm2, %v7642_v10 }
  0xbd   :  { %6422 = vmatprep.mubr.msk.bf16.mxu0 %vm7542_vm1, %v9795_v0  ;;  %6447 = vmatpush3.bf16.msra.mxu0 %v7925_v13 }
  0xbe   :  { %6448 = vmatprep.subr.bf16.mxu0 %v9795_v0 }
  0xc1   :  { %6449 = vmatpush3.bf16.msra.mxu0 %v7798_v41 }
  0xc2   :  { %6403 = vmatmul.mubr.msk.bf16.vlgmr.msra.gmra.mrb[92].mxu1 %vm72_vm2, %v7701_v21  ;;  %6478 = vmatprep.subr.bf16.mxu0 %v9795_v0 }
  0xc3   :  { %6431 = vmatpush3.bf16.msra.mxu1 %v7940_v14  ;;  %6406 = vmatprep.mubr.msk.bf16.mxu1 %vm7542_vm1, %v9795_v0 }
  0xc4   :  { %6423 = vmatmul.mubr.msk.bf16.gmra.mrb[92].mxu0 %vm72_vm2, %v7634_v8  ;;  %6432 = vmatprep.subr.bf16.mxu1 %v9795_v0 }
  0xc5   :  { %6426 = vmatprep.mubr.msk.bf16.mxu0 %vm7542_vm1, %v9795_v0 }
  0xc7   :  { %6433 = vmatpush3.bf16.msra.mxu1 %v7777_v37 }
  0xc8   :  { %6462 = vmatprep.subr.bf16.mxu1 %v9795_v0 }
  0xca   :  { %6407 = vmatmul.mubr.msk.bf16.gmra.mrb[96].mxu1 %vm72_vm2, %v7755_v32 }
  0xcb   :  { %6410 = vmatprep.mubr.msk.bf16.mxu1 %vm7542_vm1, %v9795_v0 }
  0xcc   :  { %6427 = vmatmul.mubr.msk.bf16.gmra.mrb[96].mxu0 %vm72_vm2, %v7697_v20 }
  0xcd   :  { %6450 = vmatprep.mubr.msk.bf16.mxu0 %vm7542_vm1, %v9795_v0 }
  0xd2   :  { %6411 = vmatmul.mubr.msk.bf16.gmra.mrb[100].mxu1 %vm72_vm2, %v7811_v45 }
  0xd3   :  { %6434 = vmatprep.mubr.msk.bf16.mxu1 %vm7542_vm1, %v9795_v0 }
  0xd4   :  { %6451 = vmatmul.mubr.msk.bf16.vlgmr.msra.gmra.mrb[100].mxu0 %vm72_vm2, %v7828_v49 }
  0xd5   :  { %6454 = vmatprep.mubr.msk.bf16.mxu0 %vm7542_vm1, %v9795_v0  ;;  %6479 = vmatpush3.bf16.msra.mxu0 %v7597_v1 }
  0xd6   :  { %6480 = vmatprep.subr.bf16.mxu0 %v9795_v0 }
  0xd9   :  { %6481 = vmatpush3.bf16.msra.mxu0 %v7621_v5 }
  0xda   :  { %6435 = vmatmul.mubr.msk.bf16.vlgmr.msra.gmra.mrb[104].mxu1 %vm72_vm2, %v7856_v55  ;;  %6510 = vmatprep.subr.bf16.mxu0 %v9795_v0 }
  0xdb   :  { %6463 = vmatpush3.bf16.msra.mxu1 %v7976_v17  ;;  %6438 = vmatprep.mubr.msk.bf16.mxu1 %vm7542_vm1, %v9795_v0 }
  0xdc   :  { %6455 = vmatmul.mubr.msk.bf16.gmra.mrb[104].mxu0 %vm72_vm2, %v7867_v58  ;;  %6464 = vmatprep.subr.bf16.mxu1 %v9795_v0 }
  0xdd   :  { %v128_v1 = vpop.f32.mrb[0].mxu1  ;;  %6458 = vmatprep.mubr.msk.bf16.mxu0 %vm7542_vm1, %v9795_v0  ;;  %v120_v8 = vpop.f32.mrb[0].mxu0 }
  0xde   :  { %v6168_v10 = vpop.f32.mrb[1].mxu1  ;;  %v6164_v15 = vpop.f32.mrb[1].mxu0 }
  0xdf   :  { %v131_v20 = vpop.f32.mrb[2].mxu1  ;;  %6465 = vmatpush3.bf16.msra.mxu1 %v7807_v44  ;;  %v123_v25 = vpop.f32.mrb[2].mxu0 }
  0xe0   :  { %v6169_v29 = vpop.f32.mrb[3].mxu1  ;;  %v6165_v31 = vpop.f32.mrb[3].mxu0  ;;  %6494 = vmatprep.subr.bf16.mxu1 %v9795_v0 }
  0xe2   :  { %6439 = vmatmul.mubr.msk.bf16.gmra.mrb[108].mxu1 %vm72_vm2, %v7900_v3 }
  0xe3   :  { %6442 = vmatprep.mubr.msk.bf16.mxu1 %vm7542_vm1, %v9795_v0 }
  0xe4   :  { %6459 = vmatmul.mubr.msk.bf16.gmra.mrb[108].mxu0 %vm72_vm2, %v7903_v4 }
  0xe5   :  { %v136_v33 = vpop.f32.mrb[4].mxu1  ;;  %6482 = vmatprep.mubr.msk.bf16.mxu0 %vm7542_vm1, %v9795_v0 }
  0xe6   :  { %v6172_v34 = vpop.f32.mrb[5].mxu1  ;;  %v295_v35 = vpop.f32.mrb[4].mxu0 }
  0xe7   :  { %v139_v38 = vpop.f32.mrb[6].mxu1  ;;  %v6196_v42 = vpop.f32.mrb[5].mxu0 }
  0xe8   :  { %v6173_v43 = vpop.f32.mrb[7].mxu1  ;;  %v298_v46 = vpop.f32.mrb[6].mxu0 }
  0xe9   :  { %v6197_v47 = vpop.f32.mrb[7].mxu0 }
  0xea   :  { %6443 = vmatmul.mubr.msk.bf16.gmra.mrb[112].mxu1 %vm72_vm2, %v7920_v11 }
  0xeb   :  { %6466 = vmatprep.mubr.msk.bf16.mxu1 %vm7542_vm1, %v9795_v0 }
  0xec   :  { %6483 = vmatmul.mubr.msk.bf16.vlgmr.msra.gmra.mrb[112].mxu0 %vm72_vm2, %v7856_v55 }
  0xed   :  { %v200_v48 = vpop.f32.mrb[8].mxu1  ;;  %6486 = vmatprep.mubr.msk.bf16.mxu0 %vm7542_vm1, %v9795_v0  ;;  %6511 = vmatpush3.bf16.msra.mxu0 %v7654_v12 }
  0xee   :  { %v201_v52 = vadd.f32 %v200_v48, %v120_v8  ;;  %v6180_v53 = vpop.f32.mrb[9].mxu1  ;;  %6512 = vmatprep.subr.bf16.mxu0 %v9795_v0 }
  0xef   :  { %v203_v54 = vpop.f32.mrb[10].mxu1  ;;  %v303_v59 = vpop.f32.mrb[8].mxu0 }
  0xf0   :  { %v204_v61 = vadd.f32 %v203_v54, %v123_v25  ;;  %v318_v62 = vadd.f32 %v295_v35, %v201_v52  ;;  %v6181_v2 = vpop.f32.mrb[11].mxu1  ;;  %v6200_v6 = vpop.f32.mrb[9].mxu0 }
  0xf1   :  { %v306_v7 = vpop.f32.mrb[10].mxu0  ;;  %6513 = vmatpush3.bf16.msra.mxu0 %v7691_v19 }
  0xf2   :  { %v319_v23 = vadd.f32 %v298_v46, %v204_v61  ;;  %6467 = vmatmul.mubr.msk.bf16.vlgmr.msra.gmra.mrb[116].mxu1 %vm72_vm2, %v7832_v50  ;;  %v6201_v10 = vpop.f32.mrb[11].mxu0  ;;  %6542 = vmatprep.subr.bf16.mxu0 %v9795_v0 }
  0xf3   :  { %6495 = vmatpush3.bf16.msra.mxu1 %v7639_v9  ;;  %6470 = vmatprep.mubr.msk.bf16.mxu1 %vm7542_vm1, %v9795_v0 }
  0xf4   :  { %6487 = vmatmul.mubr.msk.bf16.gmra.mrb[116].mxu0 %vm72_vm2, %v7900_v3  ;;  %6496 = vmatprep.subr.bf16.mxu1 %v9795_v0 }
  0xf5   :  { %v208_v12 = vpop.f32.mrb[12].mxu1  ;;  %6490 = vmatprep.mubr.msk.bf16.mxu0 %vm7542_vm1, %v9795_v0 }
  0xf6   :  { %v209_v8 = vadd.f32 %v208_v12, %v128_v1  ;;  %v6184_v15 = vpop.f32.mrb[13].mxu1 }
  0xf7   :  { %v211_v25 = vpop.f32.mrb[14].mxu1  ;;  %v311_v29 = vpop.f32.mrb[12].mxu0  ;;  %6497 = vmatpush3.bf16.msra.mxu1 %v7678_v16 }
  0xf8   :  { %v212_v31 = vadd.f32 %v211_v25, %v131_v20  ;;  %v320_v9 = vadd.f32 %v303_v59, %v209_v8  ;;  %v6185_v34 = vpop.f32.mrb[15].mxu1  ;;  %v6204_v35 = vpop.f32.mrb[13].mxu0  ;;  %6526 = vmatprep.subr.bf16.mxu1 %v9795_v0 }
  0xf9   :  { %v314_v42 = vpop.f32.mrb[14].mxu0 }
  0xfa   :  { %v321_v43 = vadd.f32 %v306_v7, %v212_v31  ;;  %6471 = vmatmul.mubr.msk.bf16.gmra.mrb[120].mxu1 %vm72_vm2, %v7874_v60  ;;  %v6205_v46 = vpop.f32.mrb[15].mxu0 }
  0xfb   :  { %6474 = vmatprep.mubr.msk.bf16.mxu1 %vm7542_vm1, %v9795_v0 }
  0xfc   :  { %6491 = vmatmul.mubr.msk.bf16.gmra.mrb[120].mxu0 %vm72_vm2, %v7920_v11 }
  0xfd   :  { %v216_v1 = vpop.f32.mrb[16].mxu1  ;;  %6514 = vmatprep.mubr.msk.bf16.mxu0 %vm7542_vm1, %v9795_v0 }
  0xfe   :  { %v217_v20 = vadd.f32 %v216_v1, %v136_v33  ;;  %v6188_v47 = vpop.f32.mrb[17].mxu1 }
  0xff   :  { %v219_v48 = vpop.f32.mrb[18].mxu1  ;;  %v496_v52 = vpop.f32.mrb[16].mxu0 }
 0x100   :  { %v220_v53 = vadd.f32 %v219_v48, %v139_v38  ;;  %v322_v54 = vadd.f32 %v311_v29, %v217_v20  ;;  %v6189_v59 = vpop.f32.mrb[19].mxu1  ;;  %v6228_v61 = vpop.f32.mrb[17].mxu0 }
 0x101   :  { %v499_v2 = vpop.f32.mrb[18].mxu0 }
 0x102   :  { %v323_v6 = vadd.f32 %v314_v42, %v220_v53  ;;  %6475 = vmatmul.mubr.msk.bf16.gmra.mrb[124].mxu1 %vm72_vm2, %v8091_v24  ;;  %v6229_v7 = vpop.f32.mrb[19].mxu0 }
 0x103   :  { %6498 = vmatprep.mubr.msk.bf16.mxu1 %vm7542_vm1, %v9795_v0 }
 0x104   :  { %6515 = vmatmul.mubr.msk.bf16.vlgmr.msra.gmra.mrb[124].mxu0 %vm72_vm2, %v7828_v49 }
 0x105   :  { %v396_v33 = vpop.f32.mrb[20].mxu1  ;;  %6518 = vmatprep.mubr.msk.bf16.mxu0 %vm7542_vm1, %v9795_v0  ;;  %6543 = vmatpush3.bf16.msra.mxu0 %v7708_v22 }
 0x106   :  { %v419_v38 = vadd.f32 %v396_v33, %v318_v62  ;;  %v6212_v10 = vpop.f32.mrb[21].mxu1  ;;  %6544 = vmatprep.subr.bf16.mxu0 %v9795_v0 }
 0x107   :  { %v399_v12 = vpop.f32.mrb[22].mxu1  ;;  %v504_v8 = vpop.f32.mrb[20].mxu0 }
 0x108   :  { %v420_v15 = vadd.f32 %v399_v12, %v319_v23  ;;  %v8208_v25 = vadd.f32 %v496_v52, %v419_v38  ;;  %v6213_v29 = vpop.f32.mrb[23].mxu1  ;;  %v6232_v31 = vpop.f32.mrb[21].mxu0 }
 0x109   :  { %v507_v34 = vpop.f32.mrb[22].mxu0  ;;  %6545 = vmatpush3.bf16.msra.mxu0 %v7741_v28 }
 0x10a   :  { %v8211_v35 = vadd.f32 %v499_v2, %v420_v15  ;;  %6499 = vmatmul.mubr.msk.bf16.vlgmr.msra.gmra.mrb[128].mxu1 %vm72_vm2, %v7701_v21  ;;  %v6233_v22 = vpop.f32.mrb[23].mxu0  ;;  %6574 = vmatprep.subr.bf16.mxu0 %v9795_v0 }
 0x10b   :  { %6527 = vmatpush3.bf16.msra.mxu1 %v7748_v30  ;;  %6502 = vmatprep.mubr.msk.bf16.mxu1 %vm7542_vm1, %v9795_v0 }
 0x10c   :  { %6519 = vmatmul.mubr.msk.bf16.gmra.mrb[128].mxu0 %vm72_vm2, %v7867_v58  ;;  %6528 = vmatprep.subr.bf16.mxu1 %v9795_v0 }
 0x10d   :  { %v404_v62 = vpop.f32.mrb[24].mxu1  ;;  %6522 = vmatprep.mubr.msk.bf16.mxu0 %vm7542_vm1, %v9795_v0 }
 0x10e   :  { %v421_v23 = vadd.f32 %v404_v62, %v320_v9  ;;  %v6216_v42 = vpop.f32.mrb[25].mxu1 }
 0x10f   :  { %v407_v46 = vpop.f32.mrb[26].mxu1  ;;  %v512_v1 = vpop.f32.mrb[24].mxu0  ;;  %6529 = vmatpush3.bf16.msra.mxu1 %v7774_v36  ;;  %v8258_v42 = vpack.c.bf16 %v7790_v39, %v7737_v27  ;;  %v5343_v39 = vld [vmem:[%s9786_s0 + $0xa0] sm:$0xff] }
 0x110   :  { %v422_v20 = vadd.f32 %v407_v46, %v321_v43  ;;  %v8225_v30 = vadd.f32 %v504_v8, %v421_v23  ;;  %v6217_v47 = vpop.f32.mrb[27].mxu1  ;;  %v6236_v48 = vpop.f32.mrb[25].mxu0  ;;  %6558 = vmatprep.subr.bf16.mxu1 %v9795_v0  ;;  %v8242_v8 = vpack.c.bf16 %v7731_v26, %v7687_v18 }
 0x111   :  { %v515_v52 = vpop.f32.mrb[26].mxu0 }
 0x112   :  { %v8228_v53 = vadd.f32 %v507_v34, %v422_v20  ;;  %6503 = vmatmul.mubr.msk.bf16.gmra.mrb[132].mxu1 %vm72_vm2, %v7755_v32  ;;  %v6237_v59 = vpop.f32.mrb[27].mxu0 }
 0x113   :  { %6506 = vmatprep.mubr.msk.bf16.mxu1 %vm7542_vm1, %v9795_v0 }
 0x114   :  { %6523 = vmatmul.mubr.msk.bf16.gmra.mrb[132].mxu0 %vm72_vm2, %v7903_v4 }
 0x115   :  { %v412_v9 = vpop.f32.mrb[28].mxu1  ;;  %6546 = vmatprep.mubr.msk.bf16.mxu0 %vm7542_vm1, %v9795_v0 }
 0x116   :  { %v423_v43 = vadd.f32 %v412_v9, %v322_v54  ;;  %v6220_v61 = vpop.f32.mrb[29].mxu1  ;;  %v8277_v9 = vpack.c.bf16 %v5343_v39, %v7795_v40 }
 0x117   :  { %v415_v2 = vpop.f32.mrb[30].mxu1  ;;  %v667_v7 = vpop.f32.mrb[28].mxu0 }
 0x118   :  { %v424_v33 = vadd.f32 %v415_v2, %v323_v6  ;;  %v8238_v38 = vadd.f32 %v512_v1, %v423_v43  ;;  %v6221_v10 = vpop.f32.mrb[31].mxu1  ;;  %v6260_v12 = vpop.f32.mrb[29].mxu0 }
 0x119   :  { %v670_v15 = vpop.f32.mrb[30].mxu0 }
 0x11a   :  { %v8244_v29 = vadd.f32 %v515_v52, %v424_v33  ;;  %6507 = vmatmul.mubr.msk.bf16.gmra.mrb[136].mxu1 %vm72_vm2, %v7811_v45  ;;  %v6261_v31 = vpop.f32.mrb[31].mxu0 }
 0x11b   :  { %6530 = vmatprep.mubr.msk.bf16.mxu1 %vm7542_vm1, %v9795_v0 }
 0x11c   :  { %6547 = vmatmul.mubr.msk.bf16.vlgmr.msra.gmra.mrb[136].mxu0 %vm72_vm2, %v8242_v8 }
 0x11d   :  { %v596_v54 = vpop.f32.mrb[32].mxu1  ;;  %6550 = vmatprep.mubr.msk.bf16.mxu0 %vm7542_vm1, %v9795_v0  ;;  %6575 = vmatpush3.bf16.msra.mxu0 %v7837_v51 }
 0x11e   :  { %v668_v18 = vadd.f32 %v667_v7, %v596_v54  ;;  %v6244_v26 = vpop.f32.mrb[33].mxu1  ;;  %6576 = vmatprep.subr.bf16.mxu0 %v9795_v0 }
 0x11f   :  { %v599_v6 = vpop.f32.mrb[34].mxu1  ;;  %v675_v34 = vpop.f32.mrb[32].mxu0 }
 0x120   :  { %v671_v22 = vadd.f32 %v670_v15, %v599_v6  ;;  %v6245_v62 = vpop.f32.mrb[35].mxu1  ;;  %v6264_v23 = vpop.f32.mrb[33].mxu0 }
 0x121   :  { %v678_v46 = vpop.f32.mrb[34].mxu0  ;;  %6577 = vmatpush3.bf16.msra.mxu0 %v7860_v56 }
 0x122   :  { %6531 = vmatmul.mubr.msk.bf16.vlgmr.msra.gmra.mrb[140].mxu1 %vm72_vm2, %v7832_v50  ;;  %v6265_v51 = vpop.f32.mrb[35].mxu0  ;;  %6606 = vmatprep.subr.bf16.mxu0 %v9795_v0 }
 0x123   :  { %6559 = vmatpush3.bf16.msra.mxu1 %v7865_v57  ;;  %6534 = vmatprep.mubr.msk.bf16.mxu1 %vm7542_vm1, %v9795_v0 }
 0x124   :  { %6551 = vmatmul.mubr.msk.bf16.gmra.mrb[140].mxu0 %vm72_vm2, %v8258_v42  ;;  %6560 = vmatprep.subr.bf16.mxu1 %v9795_v0 }
 0x125   :  { %v604_v27 = vpop.f32.mrb[36].mxu1  ;;  %6554 = vmatprep.mubr.msk.bf16.mxu0 %vm7542_vm1, %v9795_v0 }
 0x126   :  { %v676_v1 = vadd.f32 %v675_v34, %v604_v27  ;;  %v6248_v20 = vpop.f32.mrb[37].mxu1 }
 0x127   :  { %v607_v47 = vpop.f32.mrb[38].mxu1  ;;  %v683_v57 = vpop.f32.mrb[36].mxu0  ;;  %6561 = vmatpush3.bf16.msra.mxu1 %v7893_v63 }
 0x128   :  { %v679_v48 = vadd.f32 %v678_v46, %v607_v47  ;;  %v6249_v52 = vpop.f32.mrb[39].mxu1  ;;  %v6268_v59 = vpop.f32.mrb[37].mxu0  ;;  %6590 = vmatprep.subr.bf16.mxu1 %v9795_v0 }
 0x129   :  { %v686_v43 = vpop.f32.mrb[38].mxu0 }
 0x12a   :  { %6535 = vmatmul.mubr.msk.bf16.gmra.mrb[144].mxu1 %vm72_vm2, %v7874_v60  ;;  %v6269_v61 = vpop.f32.mrb[39].mxu0 }
 0x12b   :  { %6538 = vmatprep.mubr.msk.bf16.mxu1 %vm7542_vm1, %v9795_v0 }
 0x12c   :  { %6555 = vmatmul.mubr.msk.bf16.gmra.mrb[144].mxu0 %vm72_vm2, %v8277_v9 }
 0x12d   :  { %v612_v2 = vpop.f32.mrb[40].mxu1  ;;  %6578 = vmatprep.mubr.msk.bf16.mxu0 %vm7542_vm1, %v9795_v0 }
 0x12e   :  { %v684_v7 = vadd.f32 %v683_v57, %v612_v2  ;;  %v6252_v40 = vpop.f32.mrb[41].mxu1 }
 0x12f   :  { %v615_v33 = vpop.f32.mrb[42].mxu1  ;;  %v825_v10 = vpop.f32.mrb[40].mxu0 }
 0x130   :  { %v687_v12 = vadd.f32 %v686_v43, %v615_v33  ;;  %v6253_v15 = vpop.f32.mrb[43].mxu1  ;;  %v6292_v31 = vpop.f32.mrb[41].mxu0 }
 0x131   :  { %v828_v54 = vpop.f32.mrb[42].mxu0 }
 0x132   :  { %6539 = vmatmul.mubr.msk.bf16.gmra.mrb[148].mxu1 %vm72_vm2, %v8091_v24  ;;  %v6293_v26 = vpop.f32.mrb[43].mxu0 }
 0x133   :  { %6562 = vmatprep.mubr.msk.bf16.mxu1 %vm7542_vm1, %v9795_v0 }
 0x134   :  { %6579 = vmatmul.mubr.msk.bf16.vlgmr.msra.gmra.mrb[148].mxu0 %vm72_vm2, %v7701_v21 }
 0x135   :  { %v743_v6 = vpop.f32.mrb[44].mxu1  ;;  %6582 = vmatprep.mubr.msk.bf16.mxu0 %vm7542_vm1, %v9795_v0  ;;  %6607 = vmatpush3.bf16.msra.mxu0 %v7925_v13 }
 0x136   :  { %v766_v34 = vadd.f32 %v743_v6, %v668_v18  ;;  %v6276_v62 = vpop.f32.mrb[45].mxu1  ;;  %6608 = vmatprep.subr.bf16.mxu0 %v9795_v0 }
 0x137   :  { %v746_v23 = vpop.f32.mrb[46].mxu1  ;;  %v833_v46 = vpop.f32.mrb[44].mxu0 }
 0x138   :  { %v767_v51 = vadd.f32 %v746_v23, %v671_v22  ;;  %v848_v27 = vadd.f32 %v825_v10, %v766_v34  ;;  %v6277_v39 = vpop.f32.mrb[47].mxu1  ;;  %v6296_v20 = vpop.f32.mrb[45].mxu0 }
 0x139   :  { %v836_v47 = vpop.f32.mrb[46].mxu0  ;;  %6609 = vmatpush3.bf16.msra.mxu0 %v7798_v41 }
 0x13a   :  { %v849_v21 = vadd.f32 %v828_v54, %v767_v51  ;;  %6563 = vmatmul.mubr.msk.bf16.vlgmr.msra.gmra.mrb[152].mxu1 %vm72_vm2, %v7856_v55  ;;  %v6297_v57 = vpop.f32.mrb[47].mxu0  ;;  %6638 = vmatprep.subr.bf16.mxu0 %v9795_v0 }
 0x13b   :  { %6591 = vmatpush3.bf16.msra.mxu1 %v7940_v14  ;;  %6566 = vmatprep.mubr.msk.bf16.mxu1 %vm7542_vm1, %v9795_v0 }
 0x13c   :  { %6583 = vmatmul.mubr.msk.bf16.gmra.mrb[152].mxu0 %vm72_vm2, %v7755_v32  ;;  %6592 = vmatprep.subr.bf16.mxu1 %v9795_v0 }
 0x13d   :  { %v751_v13 = vpop.f32.mrb[48].mxu1  ;;  %6586 = vmatprep.mubr.msk.bf16.mxu0 %vm7542_vm1, %v9795_v0 }
 0x13e   :  { %v768_v18 = vadd.f32 %v751_v13, %v676_v1  ;;  %v6280_v22 = vpop.f32.mrb[49].mxu1 }
 0x13f   :  { %v754_v52 = vpop.f32.mrb[50].mxu1  ;;  %v841_v59 = vpop.f32.mrb[48].mxu0  ;;  %6593 = vmatpush3.bf16.msra.mxu1 %v7777_v37 }
 0x140   :  { %v769_v43 = vadd.f32 %v754_v52, %v679_v48  ;;  %v850_v14 = vadd.f32 %v833_v46, %v768_v18  ;;  %v6281_v61 = vpop.f32.mrb[51].mxu1  ;;  %v6300_v2 = vpop.f32.mrb[49].mxu0  ;;  %6622 = vmatprep.subr.bf16.mxu1 %v9795_v0  ;;  %v7512_v46 = vld [vmem:[%s9785_s1 + $0x10] sm:$0xff]  }
 0x141   :  { %v844_v40 = vpop.f32.mrb[50].mxu0 }
 0x142   :  { %v851_v32 = vadd.f32 %v836_v47, %v769_v43  ;;  %6567 = vmatmul.mubr.msk.bf16.gmra.mrb[156].mxu1 %vm72_vm2, %v7900_v3  ;;  %v6301_v33 = vpop.f32.mrb[51].mxu0 }
 0x143   :  { %6570 = vmatprep.mubr.msk.bf16.mxu1 %vm7542_vm1, %v9795_v0 }
 0x144   :  { %6587 = vmatmul.mubr.msk.bf16.gmra.mrb[156].mxu0 %vm72_vm2, %v7811_v45 }
 0x145   :  { %v759_v1 = vpop.f32.mrb[52].mxu1  ;;  %6610 = vmatprep.mubr.msk.bf16.mxu0 %vm7542_vm1, %v9795_v0 }
 0x146   :  { %v770_v48 = vadd.f32 %v759_v1, %v684_v7  ;;  %v6284_v10 = vpop.f32.mrb[53].mxu1  ;;  %v8335_v7 = vld [vmem:[%s9787_s2] ss:$0 sm:$0xff] }
 0x147   :  { %v762_v15 = vpop.f32.mrb[54].mxu1  ;;  %v8320_v31 = vpop.f32.mrb[52].mxu0  ;;  %v8347_v57 = vadd.f32 %v8335_v7, %v8208_v25  ;;  %v8382_v33 = vadd.f32 %v8335_v7, %v8225_v30 }
 0x148   :  { %v771_v54 = vadd.f32 %v762_v15, %v687_v12  ;;  %v852_v26 = vadd.f32 %v841_v59, %v770_v48  ;;  %v6285_v6 = vpop.f32.mrb[55].mxu1  ;;  %v6324_v34 = vpop.f32.mrb[53].mxu0 }
 0x149   :  { %v8322_v62 = vpop.f32.mrb[54].mxu0 }
 0x14a   :  { %v8324_v23 = vadd.f32 %v844_v40, %v771_v54  ;;  %6571 = vmatmul.mubr.msk.bf16.gmra.mrb[160].mxu1 %vm72_vm2, %v7920_v11  ;;  %v6325_v45 = vpop.f32.mrb[55].mxu0 }
 0x14b   :  { %6594 = vmatprep.mubr.msk.bf16.mxu1 %vm7542_vm1, %v9795_v0 }
 0x14c   :  { %6611 = vmatmul.mubr.msk.bf16.vlgmr.msra.gmra.mrb[160].mxu0 %vm72_vm2, %v7832_v50 }
 0x14d   :  { %v907_v12 = vpop.f32.mrb[56].mxu1  ;;  %6614 = vmatprep.mubr.msk.bf16.mxu0 %vm7542_vm1, %v9795_v0  ;;  %6639 = vmatpush3.bf16.msra.mxu0 %v7512_v46 }
 0x14e   :  { %v930_v51 = vadd.f32 %v907_v12, %v848_v27  ;;  %v6308_v39 = vpop.f32.mrb[57].mxu1  ;;  %6640 = vmatprep.subr.bf16.mxu0 %v9795_v0  ;;  %v8357_v27 = vadd.f32 %v8335_v7, %v8211_v35 }
 0x14f   :  { %v910_v20 = vpop.f32.mrb[58].mxu1  ;;  %v8343_v47 = vpop.f32.mrb[56].mxu0  ;;  %v8411_v39 = vadd.f32 %v8335_v7, %v8238_v38 }
 0x150   :  { %v8350_v13 = vadd.f32 %v8335_v7, %v930_v51  ;;  %v931_v18 = vadd.f32 %v910_v20, %v849_v21  ;;  %v6309_v22 = vpop.f32.mrb[59].mxu1  ;;  %v6328_v52 = vpop.f32.mrb[57].mxu0 }
 0x151   :  { %v8352_v59 = vpop.f32.mrb[58].mxu0  ;;  %6641 = vmatpush3.bf16.msra.mxu0 %v7621_v5 }
 0x152   :  { %v942_v43 = vmax.f32 %v8347_v57, %v8350_v13  ;;  %v8362_v25 = vadd.f32 %v8335_v7, %v931_v18  ;;  %6595 = vmatmul.mubr.msk.bf16.vlgmr.msra.gmra.mrb[164].mxu1 %vm72_vm2, %v7828_v49  ;;  %v6329_v21 = vpop.f32.mrb[59].mxu0  ;;  %6670 = vmatprep.subr.bf16.mxu0 %v9795_v0 }
 0x153   :  { %6623 = vmatpush3.bf16.msra.mxu1 %v7976_v17  ;;  %6598 = vmatprep.mubr.msk.bf16.mxu1 %vm7542_vm1, %v9795_v0 }
 0x154   :  { %v943_v5 = vmax.f32 %v8357_v27, %v8362_v25  ;;  %6615 = vmatmul.mubr.msk.bf16.gmra.mrb[164].mxu0 %vm72_vm2, %v7874_v60  ;;  %6624 = vmatprep.subr.bf16.mxu1 %v9795_v0 }
 0x155   :  { %v915_v35 = vpop.f32.mrb[60].mxu1  ;;  %6618 = vmatprep.mubr.msk.bf16.mxu0 %vm7542_vm1, %v9795_v0 }
 0x156   :  { %v932_v61 = vadd.f32 %v915_v35, %v850_v14  ;;  %v6312_v2 = vpop.f32.mrb[61].mxu1  ;;  %v8392_v14 = vadd.f32 %v8335_v7, %v8228_v53  ;;  %v8419_v35 = vadd.f32 %v8335_v7, %v8244_v29 }
 0x157   :  { %v918_v40 = vpop.f32.mrb[62].mxu1  ;;  %6625 = vmatpush3.bf16.msra.mxu1 %v7807_v44  ;;  %v8378_v17 = vpop.f32.mrb[60].mxu0  ;;  %v7513_v2 = vld [vmem:[%s9785_s1 + $0x20] sm:$0xff]  }
 0x158   :  { %v8385_v1 = vadd.f32 %v8335_v7, %v932_v61  ;;  %v933_v48 = vadd.f32 %v918_v40, %v851_v32  ;;  %v6313_v10 = vpop.f32.mrb[63].mxu1  ;;  %v6332_v15 = vpop.f32.mrb[61].mxu0  ;;  %6654 = vmatprep.subr.bf16.mxu1 %v9795_v0 }
 0x159   :  { %v8388_v54 = vpop.f32.mrb[62].mxu0 }
 0x15a   :  { %v944_v6 = vmax.f32 %v8382_v33, %v8385_v1  ;;  %v8397_v30 = vadd.f32 %v8335_v7, %v933_v48  ;;  %6599 = vmatmul.mubr.msk.bf16.gmra.mrb[168].mxu1 %vm72_vm2, %v7867_v58  ;;  %v6333_v32 = vpop.f32.mrb[63].mxu0 }
 0x15b   :  { %6602 = vmatprep.mubr.msk.bf16.mxu1 %vm7542_vm1, %v9795_v0 }
 0x15c   :  { %v945_v34 = vmax.f32 %v8392_v14, %v8397_v30  ;;  %6619 = vmatmul.mubr.msk.bf16.gmra.mrb[168].mxu0 %vm72_vm2, %v8091_v24 }
 0x15d   :  { %v923_v53 = vpop.f32.mrb[64].mxu1  ;;  %6642 = vmatprep.mubr.msk.bf16.mxu0 %vm7542_vm1, %v9795_v0 }
 0x15e   :  { %v934_v45 = vadd.f32 %v923_v53, %v852_v26  ;;  %v6316_v12 = vpop.f32.mrb[65].mxu1 }
 0x15f   :  { %v926_v46 = vpop.f32.mrb[66].mxu1  ;;  %v1096_v51 = vpop.f32.mrb[64].mxu0 }
 0x160   :  { %v8414_v20 = vadd.f32 %v8335_v7, %v934_v45  ;;  %v935_v18 = vadd.f32 %v926_v46, %v8324_v23  ;;  %v6317_v22 = vpop.f32.mrb[67].mxu1  ;;  %v6356_v52 = vpop.f32.mrb[65].mxu0 }
 0x161   :  { %v1099_v21 = vpop.f32.mrb[66].mxu0 }
 0x162   :  { %v946_v26 = vmax.f32 %v8411_v39, %v8414_v20  ;;  %v8424_v61 = vadd.f32 %v8335_v7, %v935_v18  ;;  %6603 = vmatmul.mubr.msk.bf16.gmra.mrb[172].mxu1 %vm72_vm2, %v7903_v4  ;;  %v6357_v38 = vpop.f32.mrb[67].mxu0  ;;  %v7517_v39 = vld [vmem:[%s9785_s1 + $0x50] sm:$0xff]  }
 0x163   :  { %6626 = vmatprep.mubr.msk.bf16.mxu1 %vm7542_vm1, %v9795_v0 }
 0x164   :  { %v947_v23 = vmax.f32 %v8419_v35, %v8424_v61  ;;  %6643 = vmatmul.mubr.msk.bf16.vlgmr.msra.gmra.mrb[172].mxu0 %vm72_vm2, %v7828_v49  ;;  %v7518_v61 = vld [vmem:[%s9785_s1 + $0x60] sm:$0xff]  }
 0x165   :  { %v1039_v29 = vpop.f32.mrb[68].mxu1  ;;  %6646 = vmatprep.mubr.msk.bf16.mxu0 %vm7542_vm1, %v9795_v0  ;;  %6671 = vmatpush3.bf16.msra.mxu0 %v7513_v2 }
 0x166   :  { %v1040_v40 = vadd.f32 %v1039_v29, %v8320_v31  ;;  %v6340_v48 = vpop.f32.mrb[69].mxu1  ;;  %6672 = vmatprep.subr.bf16.mxu0 %v9795_v0  ;;  %v7514_v31 = vld [vmem:[%s9785_s1] sm:$0xff]  }
 0x167   :  { %v1042_v10 = vpop.f32.mrb[70].mxu1  ;;  %v1104_v15 = vpop.f32.mrb[68].mxu0 }
 0x168   :  { %v1043_v32 = vadd.f32 %v1042_v10, %v8322_v62  ;;  %v1119_v53 = vadd.f32 %v1096_v51, %v1040_v40  ;;  %v6341_v45 = vpop.f32.mrb[71].mxu1  ;;  %v6360_v12 = vpop.f32.mrb[69].mxu0 }
 0x169   :  { %v1107_v46 = vpop.f32.mrb[70].mxu0  ;;  %6673 = vmatpush3.bf16.msra.mxu0 %v7691_v19 }
 0x16a   :  { %v1120_v18 = vadd.f32 %v1099_v21, %v1043_v32  ;;  %6627 = vmatmul.mubr.msk.bf16.vlgmr.msra.gmra.mrb[176].mxu1 %vm72_vm2, %v8242_v8  ;;  %v6361_v22 = vpop.f32.mrb[71].mxu0  ;;  %6702 = vmatprep.subr.bf16.mxu0 %v9795_v0 }
 0x16b   :  { %6655 = vmatpush3.bf16.msra.mxu1 %v7514_v31  ;;  %6630 = vmatprep.mubr.msk.bf16.mxu1 %vm7542_vm1, %v9795_v0 }
 0x16c   :  { %6647 = vmatmul.mubr.msk.bf16.gmra.mrb[176].mxu0 %vm72_vm2, %v7867_v58  ;;  %6656 = vmatprep.subr.bf16.mxu1 %v9795_v0 }
 0x16d   :  { %v1047_v19 = vpop.f32.mrb[72].mxu1  ;;  %6650 = vmatprep.mubr.msk.bf16.mxu0 %vm7542_vm1, %v9795_v0 }
 0x16e   :  { %v1048_v62 = vadd.f32 %v1047_v19, %v8343_v47  ;;  %v6344_v51 = vpop.f32.mrb[73].mxu1 }
 0x16f   :  { %v1050_v52 = vpop.f32.mrb[74].mxu1  ;;  %v1112_v21 = vpop.f32.mrb[72].mxu0  ;;  %6657 = vmatpush3.bf16.msra.mxu1 %v7678_v16 }
 0x170   :  { %v1051_v38 = vadd.f32 %v1050_v52, %v8352_v59  ;;  %v1121_v29 = vadd.f32 %v1104_v15, %v1048_v62  ;;  %v6345_v2 = vpop.f32.mrb[75].mxu1  ;;  %v6364_v40 = vpop.f32.mrb[73].mxu0  ;;  %6686 = vmatprep.subr.bf16.mxu1 %v9795_v0 }
 0x171   :  { %v1115_v48 = vpop.f32.mrb[74].mxu0 }
 0x172   :  { %v1122_v10 = vadd.f32 %v1107_v46, %v1051_v38  ;;  %6631 = vmatmul.mubr.msk.bf16.gmra.mrb[180].mxu1 %vm72_vm2, %v8258_v42  ;;  %v6365_v32 = vpop.f32.mrb[75].mxu0 }
 0x173   :  { %6634 = vmatprep.mubr.msk.bf16.mxu1 %vm7542_vm1, %v9795_v0 }
 0x174   :  { %6651 = vmatmul.mubr.msk.bf16.gmra.mrb[180].mxu0 %vm72_vm2, %v7903_v4 }
 0x175   :  { %v1055_v16 = vpop.f32.mrb[76].mxu1  ;;  %6674 = vmatprep.mubr.msk.bf16.mxu0 %vm7542_vm1, %v9795_v0 }
 0x176   :  { %v1056_v47 = vadd.f32 %v1055_v16, %v8378_v17  ;;  %v6348_v59 = vpop.f32.mrb[77].mxu1 }
 0x177   :  { %v1058_v15 = vpop.f32.mrb[78].mxu1  ;;  %v1240_v45 = vpop.f32.mrb[76].mxu0 }
 0x178   :  { %v1059_v12 = vadd.f32 %v1058_v15, %v8388_v54  ;;  %v8470_v46 = vadd.f32 %v1112_v21, %v1056_v47  ;;  %v6349_v22 = vpop.f32.mrb[79].mxu1  ;;  %v6388_v31 = vpop.f32.mrb[77].mxu0  ;;  %v7515_v54 = vld [vmem:[%s9785_s1 + $0x40] sm:$0xff]  }
 0x179   :  { %v1243_v19 = vpop.f32.mrb[78].mxu0 }
 0x17a   :  { %v8472_v62 = vadd.f32 %v1115_v48, %v1059_v12  ;;  %6635 = vmatmul.mubr.msk.bf16.gmra.mrb[184].mxu1 %vm72_vm2, %v8277_v9  ;;  %v6389_v51 = vpop.f32.mrb[79].mxu0 }
 0x17b   :  { %6658 = vmatprep.mubr.msk.bf16.mxu1 %vm7542_vm1, %v9795_v0 }
 0x17c   :  { %6675 = vmatmul.mubr.msk.bf16.vlgmr.msra.gmra.mrb[184].mxu0 %vm72_vm2, %v7832_v50 }
 0x17d   :  { %v1159_v17 = vpop.f32.mrb[80].mxu1  ;;  %6678 = vmatprep.mubr.msk.bf16.mxu0 %vm7542_vm1, %v9795_v0  ;;  %6703 = vmatpush3.bf16.msra.mxu0 %v7515_v54 }
 0x17e   :  { %v1182_v52 = vadd.f32 %v1159_v17, %v1119_v53  ;;  %v6372_v21 = vpop.f32.mrb[81].mxu1  ;;  %6704 = vmatprep.subr.bf16.mxu0 %v9795_v0  ;;  %v7516_v53 = vld [vmem:[%s9785_s1 + $0x30] sm:$0xff]  }
 0x17f   :  { %v1162_v38 = vpop.f32.mrb[82].mxu1  ;;  %v1248_v2 = vpop.f32.mrb[80].mxu0 }
 0x180   :  { %v1183_v40 = vadd.f32 %v1162_v38, %v1120_v18  ;;  %v1263_v48 = vadd.f32 %v1240_v45, %v1182_v52  ;;  %v6373_v32 = vpop.f32.mrb[83].mxu1  ;;  %v6392_v16 = vpop.f32.mrb[81].mxu0 }
 0x181   :  { %v1251_v47 = vpop.f32.mrb[82].mxu0  ;;  %6705 = vmatpush3.bf16.msra.mxu0 %v7741_v28 }
 0x182   :  { %v1269_v59 = vadd.f32 %v8335_v7, %v1263_v48  ;;  %v1264_v15 = vadd.f32 %v1243_v19, %v1183_v40  ;;  %6659 = vmatmul.mubr.msk.bf16.vlgmr.msra.gmra.mrb[188].mxu1 %vm72_vm2, %v7856_v55  ;;  %v6393_v12 = vpop.f32.mrb[83].mxu0  ;;  %6734 = vmatprep.subr.bf16.mxu0 %v9795_v0 }
 0x183   :  { %6687 = vmatpush3.bf16.msra.mxu1 %v7516_v53  ;;  %6662 = vmatprep.mubr.msk.bf16.mxu1 %vm7542_vm1, %v9795_v0 }
 0x184   :  { %v8499_v28 = vmax.f32 %v942_v43, %v1269_v59  ;;  %v1270_v18 = vadd.f32 %v8335_v7, %v1264_v15  ;;  %6679 = vmatmul.mubr.msk.bf16.gmra.mrb[188].mxu0 %vm72_vm2, %v7874_v60  ;;  %6688 = vmatprep.subr.bf16.mxu1 %v9795_v0 }
 0x185   :  { %v1167_v45 = vpop.f32.mrb[84].mxu1  ;;  %6682 = vmatprep.mubr.msk.bf16.mxu0 %vm7542_vm1, %v9795_v0 }
 0x186   :  { %v8510_v22 = vmax.f32 %v943_v5, %v1270_v18  ;;  %v1184_v31 = vadd.f32 %v1167_v45, %v1121_v29  ;;  %v6376_v57 = vpop.f32.mrb[85].mxu1  ;;  %v5374_v29 = vld [vmem:[%s9786_s0 + $0xb0] sm:$0xff]  ;;  %v5377_v18 = vld [vmem:[%s9786_s0 + $0xc8] sm:$0xff] }
 0x187   :  { %v1170_v13 = vpop.f32.mrb[86].mxu1  ;;  %v1256_v43 = vpop.f32.mrb[84].mxu0  ;;  %6689 = vmatpush3.bf16.msra.mxu1 %v7774_v36 }
 0x188   :  { %v1185_v19 = vadd.f32 %v1170_v13, %v1122_v10  ;;  %v1265_v51 = vadd.f32 %v1248_v2, %v1184_v31  ;;  %v6377_v17 = vpop.f32.mrb[87].mxu1  ;;  %v6396_v54 = vpop.f32.mrb[85].mxu0  ;;  %6718 = vmatprep.subr.bf16.mxu1 %v9795_v0  ;;  %v5375_v10 = vld [vmem:[%s9786_s0 + $0xb8] sm:$0xff] }
 0x189   :  { %v1259_v52 = vpop.f32.mrb[86].mxu0  ;;  %v8542_v59 = vpack.c.bf16 %v5375_v10, %v5374_v29  ;;  %v5379_v54 = vld [vmem:[%s9786_s0 + $0xd8] sm:$0xff] }
 0x18a   :  { %v1271_v21 = vadd.f32 %v8335_v7, %v1265_v51  ;;  %v1266_v38 = vadd.f32 %v1251_v47, %v1185_v19  ;;  %6663 = vmatmul.mubr.msk.bf16.gmra.mrb[192].mxu1 %vm72_vm2, %v7900_v3  ;;  %v6397_v27 = vpop.f32.mrb[87].mxu0 }
 0x18b   :  { %6666 = vmatprep.mubr.msk.bf16.mxu1 %vm7542_vm1, %v9795_v0 }
 0x18c   :  { %v8522_v36 = vmax.f32 %v944_v6, %v1271_v21  ;;  %v1272_v25 = vadd.f32 %v8335_v7, %v1266_v38  ;;  %6683 = vmatmul.mubr.msk.bf16.gmra.mrb[192].mxu0 %vm72_vm2, %v8091_v24 }
 0x18d   :  { %v1175_v5 = vpop.f32.mrb[88].mxu1  ;;  %6706 = vmatprep.mubr.msk.bf16.mxu0 %vm7542_vm1, %v9795_v0 }
 0x18e   :  { %v8538_v33 = vmax.f32 %v945_v34, %v1272_v25  ;;  %v1186_v1 = vadd.f32 %v1175_v5, %v8470_v46  ;;  %v6380_v6 = vpop.f32.mrb[89].mxu1 }
 0x18f   :  { %v1178_v2 = vpop.f32.mrb[90].mxu1  ;;  %v1372_v40 = vpop.f32.mrb[88].mxu0 }
 0x190   :  { %v1187_v48 = vadd.f32 %v1178_v2, %v8472_v62  ;;  %v1267_v32 = vadd.f32 %v1256_v43, %v1186_v1  ;;  %v6381_v16 = vpop.f32.mrb[91].mxu1  ;;  %v6420_v47 = vpop.f32.mrb[89].mxu0  ;;  %v5376_v62 = vld [vmem:[%s9786_s0 + $0xc0] sm:$0xff] }
 0x191   :  { %v1375_v15 = vpop.f32.mrb[90].mxu0  ;;  %v8574_v51 = vpack.c.bf16 %v5377_v18, %v5376_v62 }
 0x192   :  { %v1273_v12 = vadd.f32 %v8335_v7, %v1267_v32  ;;  %v1268_v53 = vadd.f32 %v1259_v52, %v1187_v48  ;;  %6667 = vmatmul.mubr.msk.bf16.gmra.mrb[196].mxu1 %vm72_vm2, %v7920_v11  ;;  %v6421_v14 = vpop.f32.mrb[91].mxu0 }
 0x193   :  { %6690 = vmatprep.mubr.msk.bf16.mxu1 %vm7542_vm1, %v9795_v0 }
 0x194   :  { %v8552_v30 = vmax.f32 %v946_v26, %v1273_v12  ;;  %v1274_v34 = vadd.f32 %v8335_v7, %v1268_v53  ;;  %6707 = vmatmul.mubr.msk.bf16.vlgmr.msra.gmra.mrb[196].mxu0 %vm72_vm2, %v8542_v59 }
 0x195   :  { %v1315_v46 = vpop.f32.mrb[92].mxu1  ;;  %6710 = vmatprep.mubr.msk.bf16.mxu0 %vm7542_vm1, %v9795_v0  ;;  %6735 = vmatpush3.bf16.msra.mxu0 %v7517_v39 }
 0x196   :  { %v8571_v20 = vmax.f32 %v947_v23, %v1274_v34  ;;  %v1373_v26 = vadd.f32 %v1372_v40, %v1315_v46  ;;  %v6404_v45 = vpop.f32.mrb[93].mxu1  ;;  %6736 = vmatprep.subr.bf16.mxu0 %v9795_v0  ;;  %v5378_v23 = vld [vmem:[%s9786_s0 + $0xd0] sm:$0xff]  ;;  %v7519_v34 = vld [vmem:[%s9785_s1 + $0x80] sm:$0xff]  }
 0x197   :  { %v1318_v31 = vpop.f32.mrb[94].mxu1  ;;  %v1380_v57 = vpop.f32.mrb[92].mxu0  ;;  %v8597_v10 = vpack.c.bf16 %v5379_v54, %v5378_v23 }
 0x198   :  { %v1376_v13 = vadd.f32 %v1375_v15, %v1318_v31  ;;  %v6405_v43 = vpop.f32.mrb[95].mxu1  ;;  %v6424_v19 = vpop.f32.mrb[93].mxu0 }
 0x199   :  { %v1383_v17 = vpop.f32.mrb[94].mxu0  ;;  %6737 = vmatpush3.bf16.msra.mxu0 %v7860_v56 }
 0x19a   :  { %6691 = vmatmul.mubr.msk.bf16.vlgmr.msra.gmra.mrb[200].mxu1 %vm72_vm2, %v8242_v8  ;;  %v6425_v35 = vpop.f32.mrb[95].mxu0  ;;  %6766 = vmatprep.subr.bf16.mxu0 %v9795_v0 }
 0x19b   :  { %6719 = vmatpush3.bf16.msra.mxu1 %v7518_v61  ;;  %6694 = vmatprep.mubr.msk.bf16.mxu1 %vm7542_vm1, %v9795_v0 }
 0x19c   :  { %6711 = vmatmul.mubr.msk.bf16.gmra.mrb[200].mxu0 %vm72_vm2, %v8574_v51  ;;  %6720 = vmatprep.subr.bf16.mxu1 %v9795_v0 }
 0x19d   :  { %v1323_v56 = vpop.f32.mrb[96].mxu1  ;;  %6714 = vmatprep.mubr.msk.bf16.mxu0 %vm7542_vm1, %v9795_v0 }
 0x19e   :  { %v1381_v52 = vadd.f32 %v1380_v57, %v1323_v56  ;;  %v6408_v21 = vpop.f32.mrb[97].mxu1 }
 0x19f   :  { %v1326_v38 = vpop.f32.mrb[98].mxu1  ;;  %v1388_v27 = vpop.f32.mrb[96].mxu0  ;;  %6721 = vmatpush3.bf16.msra.mxu1 %v7893_v63 }
 0x1a0   :  { %v1384_v25 = vadd.f32 %v1383_v17, %v1326_v38  ;;  %v6409_v5 = vpop.f32.mrb[99].mxu1  ;;  %v6428_v29 = vpop.f32.mrb[97].mxu0  ;;  %6750 = vmatprep.subr.bf16.mxu1 %v9795_v0 }
 0x1a1   :  { %v1391_v1 = vpop.f32.mrb[98].mxu0 }
 0x1a2   :  { %6695 = vmatmul.mubr.msk.bf16.gmra.mrb[204].mxu1 %vm72_vm2, %v8258_v42  ;;  %v6429_v6 = vpop.f32.mrb[99].mxu0 }
 0x1a3   :  { %6698 = vmatprep.mubr.msk.bf16.mxu1 %vm7542_vm1, %v9795_v0 }
 0x1a4   :  { %6715 = vmatmul.mubr.msk.bf16.gmra.mrb[204].mxu0 %vm72_vm2, %v8597_v10 }
 0x1a5   :  { %v1331_v2 = vpop.f32.mrb[100].mxu1  ;;  %6738 = vmatprep.mubr.msk.bf16.mxu0 %vm7542_vm1, %v9795_v0 }
 0x1a6   :  { %v1389_v63 = vadd.f32 %v1388_v27, %v1331_v2  ;;  %v6412_v40 = vpop.f32.mrb[101].mxu1 }
 0x1a7   :  { %v1334_v48 = vpop.f32.mrb[102].mxu1  ;;  %v1492_v32 = vpop.f32.mrb[100].mxu0 }
 0x1a8   :  { %v1392_v16 = vadd.f32 %v1391_v1, %v1334_v48  ;;  %v6413_v47 = vpop.f32.mrb[103].mxu1  ;;  %v6452_v15 = vpop.f32.mrb[101].mxu0 }
 0x1a9   :  { %v1495_v12 = vpop.f32.mrb[102].mxu0 }
 0x1aa   :  { %6699 = vmatmul.mubr.msk.bf16.gmra.mrb[208].mxu1 %vm72_vm2, %v8277_v9  ;;  %v6453_v53 = vpop.f32.mrb[103].mxu0 }
 0x1ab   :  { %6722 = vmatprep.mubr.msk.bf16.mxu1 %vm7542_vm1, %v9795_v0 }
 0x1ac   :  { %6739 = vmatmul.mubr.msk.bf16.vlgmr.msra.gmra.mrb[208].mxu0 %vm72_vm2, %v7856_v55 }
 0x1ad   :  { %v1429_v14 = vpop.f32.mrb[104].mxu1  ;;  %6742 = vmatprep.mubr.msk.bf16.mxu0 %vm7542_vm1, %v9795_v0  ;;  %6767 = vmatpush3.bf16.msra.mxu0 %v7519_v34 }
 0x1ae   :  { %v1452_v46 = vadd.f32 %v1429_v14, %v1373_v26  ;;  %v6436_v62 = vpop.f32.mrb[105].mxu1  ;;  %6768 = vmatprep.subr.bf16.mxu0 %v9795_v0  ;;  %v7520_v26 = vld [vmem:[%s9785_s1 + $0x70] sm:$0xff]  }
 0x1af   :  { %v1432_v18 = vpop.f32.mrb[106].mxu1  ;;  %v1500_v39 = vpop.f32.mrb[104].mxu0 }
 0x1b0   :  { %v1453_v45 = vadd.f32 %v1432_v18, %v1376_v13  ;;  %v1515_v31 = vadd.f32 %v1492_v32, %v1452_v46  ;;  %v6437_v57 = vpop.f32.mrb[107].mxu1  ;;  %v6456_v43 = vpop.f32.mrb[105].mxu0  ;;  %v7521_v18 = vld [vmem:[%s9785_s1 + $0x90] sm:$0xff]  }
 0x1b1   :  { %v1503_v55 = vpop.f32.mrb[106].mxu0  ;;  %6769 = vmatpush3.bf16.msra.mxu0 %v7798_v41 }
 0x1b2   :  { %v1516_v19 = vadd.f32 %v1495_v12, %v1453_v45  ;;  %6723 = vmatmul.mubr.msk.bf16.vlgmr.msra.gmra.mrb[212].mxu1 %vm72_vm2, %v7828_v49  ;;  %v6457_v17 = vpop.f32.mrb[107].mxu0 }
 0x1b3   :  { %6751 = vmatpush3.bf16.msra.mxu1 %v7520_v26  ;;  %6726 = vmatprep.mubr.msk.bf16.mxu1 %vm7542_vm1, %v9795_v0 }
 0x1b4   :  { %6743 = vmatmul.mubr.msk.bf16.gmra.mrb[212].mxu0 %vm72_vm2, %v7900_v3  ;;  %6752 = vmatprep.subr.bf16.mxu1 %v9795_v0 }
 0x1b5   :  { %v1437_v13 = vpop.f32.mrb[108].mxu1  ;;  %6746 = vmatprep.mubr.msk.bf16.mxu0 %vm7542_vm1, %v9795_v0 }
 0x1b6   :  { %v1454_v41 = vadd.f32 %v1437_v13, %v1381_v52  ;;  %v6440_v49 = vpop.f32.mrb[109].mxu1 }
 0x1b7   :  { %v1440_v35 = vpop.f32.mrb[110].mxu1  ;;  %v1508_v61 = vpop.f32.mrb[108].mxu0  ;;  %6753 = vmatpush3.bf16.msra.mxu1 %v7777_v37 }
 0x1b8   :  { %v1455_v56 = vadd.f32 %v1440_v35, %v1384_v25  ;;  %v1517_v23 = vadd.f32 %v1500_v39, %v1454_v41  ;;  %v6441_v54 = vpop.f32.mrb[111].mxu1  ;;  %v6460_v21 = vpop.f32.mrb[109].mxu0  ;;  %6782 = vmatprep.subr.bf16.mxu1 %v9795_v0 }
 0x1b9   :  { %v1511_v38 = vpop.f32.mrb[110].mxu0 }
 0x1ba   :  { %v1518_v3 = vadd.f32 %v1503_v55, %v1455_v56  ;;  %6727 = vmatmul.mubr.msk.bf16.gmra.mrb[216].mxu1 %vm72_vm2, %v7867_v58  ;;  %v6461_v27 = vpop.f32.mrb[111].mxu0 }
 0x1bb   :  { %6730 = vmatprep.mubr.msk.bf16.mxu1 %vm7542_vm1, %v9795_v0 }
 0x1bc   :  { %6747 = vmatmul.mubr.msk.bf16.gmra.mrb[216].mxu0 %vm72_vm2, %v7920_v11 }
 0x1bd   :  { %v1445_v52 = vpop.f32.mrb[112].mxu1  ;;  %6770 = vmatprep.mubr.msk.bf16.mxu0 %vm7542_vm1, %v9795_v0 }
 0x1be   :  { %v1456_v37 = vadd.f32 %v1445_v52, %v1389_v63  ;;  %v6444_v25 = vpop.f32.mrb[113].mxu1 }
 0x1bf   :  { %v1448_v5 = vpop.f32.mrb[114].mxu1  ;;  %v8643_v29 = vpop.f32.mrb[112].mxu0 }
 0x1c0   :  { %v1457_v1 = vadd.f32 %v1448_v5, %v1392_v16  ;;  %v1519_v6 = vadd.f32 %v1508_v61, %v1456_v37  ;;  %v6445_v2 = vpop.f32.mrb[115].mxu1  ;;  %v6484_v58 = vpop.f32.mrb[113].mxu0 }
 0x1c1   :  { %v8645_v40 = vpop.f32.mrb[114].mxu0 }
 0x1c2   :  { %v1520_v48 = vadd.f32 %v1511_v38, %v1457_v1  ;;  %6731 = vmatmul.mubr.msk.bf16.gmra.mrb[220].mxu1 %vm72_vm2, %v7903_v4  ;;  %v6485_v11 = vpop.f32.mrb[115].mxu0 }
 0x1c3   :  { %6754 = vmatprep.mubr.msk.bf16.mxu1 %vm7542_vm1, %v9795_v0 }
 0x1c4   :  { %6771 = vmatmul.mubr.msk.bf16.vlgmr.msra.gmra.mrb[220].mxu0 %vm72_vm2, %v8242_v8 }
 0x1c5   :  { %v1555_v63 = vpop.f32.mrb[116].mxu1  ;;  %6774 = vmatprep.mubr.msk.bf16.mxu0 %vm7542_vm1, %v9795_v0 }
 0x1c6   :  { %v1578_v32 = vadd.f32 %v1555_v63, %v1515_v31  ;;  %v6468_v16 = vpop.f32.mrb[117].mxu1 }
 0x1c7   :  { %v1558_v47 = vpop.f32.mrb[118].mxu1  ;;  %v8655_v15 = vpop.f32.mrb[116].mxu0 }
 0x1c8   :  { %v1584_v12 = vadd.f32 %v8335_v7, %v1578_v32  ;;  %v1579_v53 = vadd.f32 %v1558_v47, %v1516_v19  ;;  %v6469_v4 = vpop.f32.mrb[119].mxu1  ;;  %v6488_v14 = vpop.f32.mrb[117].mxu0 }
 0x1c9   :  { %v8658_v34 = vpop.f32.mrb[118].mxu0 }
 0x1ca   :  { %v1590_v46 = vmax.f32 %v8499_v28, %v1584_v12  ;;  %v1585_v8 = vadd.f32 %v8335_v7, %v1579_v53  ;;  %6755 = vmatmul.mubr.msk.bf16.vlgmr.msra.gmra.mrb[224].mxu1 %vm72_vm2, %v7832_v50  ;;  %v6489_v62 = vpop.f32.mrb[119].mxu0 }
 0x1cb   :  { %6783 = vmatpush3.bf16.msra.mxu1 %v7521_v18  ;;  %6758 = vmatprep.mubr.msk.bf16.mxu1 %vm7542_vm1, %v9795_v0 }
 0x1cc   :  { %v1591_v39 = vmax.f32 %v8510_v22, %v1585_v8  ;;  %6775 = vmatmul.mubr.msk.bf16.gmra.mrb[224].mxu0 %vm72_vm2, %v8258_v42  ;;  %6784 = vmatprep.subr.bf16.mxu1 %v9795_v0  ;;  %v1596_v50 = vmax.f32 %v1590_v46, 0.0 }
 0x1cd   :  { %v1563_v28 = vpop.f32.mrb[120].mxu1  ;;  %6778 = vmatprep.mubr.msk.bf16.mxu0 %vm7542_vm1, %v9795_v0 }
 0x1ce   :  { %v1597_v45 = vmax.f32 %v1591_v39, 0.0  ;;  %v1580_v31 = vadd.f32 %v1563_v28, %v1517_v23  ;;  %v6472_v57 = vpop.f32.mrb[121].mxu1 }
 0x1cf   :  { %v1566_v43 = vpop.f32.mrb[122].mxu1  ;;  %6785 = vmatpush3.bf16.msra.mxu1 %v7807_v44  ;;  %v8676_v55 = vpop.f32.mrb[120].mxu0 }
 0x1d0   :  { %v1586_v22 = vadd.f32 %v8335_v7, %v1580_v31  ;;  %v1581_v19 = vadd.f32 %v1566_v43, %v1518_v3  ;;  %v6473_v17 = vpop.f32.mrb[123].mxu1  ;;  %v6492_v42 = vpop.f32.mrb[121].mxu0  ;;  %v8679_v26 = vpack.c.bf16 %v1597_v45, %v1596_v50 }
 0x1d1   :  { %v8681_v13 = vpop.f32.mrb[122].mxu0 }
 0x1d2   :  { %v1592_v41 = vmax.f32 %v8522_v36, %v1586_v22  ;;  %v1587_v49 = vadd.f32 %v8335_v7, %v1581_v19  ;;  %6759 = vmatmul.mubr.msk.bf16.gmra.mrb[228].mxu1 %vm72_vm2, %v7874_v60  ;;  %v6493_v35 = vpop.f32.mrb[123].mxu0 }
 0x1d3   :  { %6762 = vmatprep.mubr.msk.bf16.mxu1 %vm7542_vm1, %v9795_v0 }
 0x1d4   :  { %v1598_v44 = vmax.f32 %v1592_v41, 0.0  ;;  %v1593_v61 = vmax.f32 %v8538_v33, %v1587_v49  ;;  %6779 = vmatmul.mubr.msk.bf16.gmra.mrb[228].mxu0 %vm72_vm2, %v8277_v9 }
 0x1d5   :  { %v1571_v56 = vpop.f32.mrb[124].mxu1 }
 0x1d6   :  { %v8692_v23 = vpack.c.bf16 %v1598_v44, %v1597_v45  ;;  %v1599_v54 = vmax.f32 %v1593_v61, 0.0  ;;  %v1582_v36 = vadd.f32 %v1571_v56, %v1519_v6  ;;  %v6476_v21 = vpop.f32.mrb[125].mxu1 }
 0x1d7   :  { %v1574_v38 = vpop.f32.mrb[126].mxu1  ;;  %v1750_v3 = vpop.f32.mrb[124].mxu0 }
 0x1d8   :  { %v8694_v27 = vpack.c.bf16 %v1599_v54, %v1598_v44  ;;  %v1588_v60 = vadd.f32 %v8335_v7, %v1582_v36  ;;  %v1583_v52 = vadd.f32 %v1574_v38, %v1520_v48  ;;  %v6477_v37 = vpop.f32.mrb[127].mxu1  ;;  %v6516_v25 = vpop.f32.mrb[125].mxu0 }
 0x1d9   :  { %v1753_v5 = vpop.f32.mrb[126].mxu0 }
 0x1da   :  { %v1594_v33 = vmax.f32 %v8552_v30, %v1588_v60  ;;  %v1589_v9 = vadd.f32 %v8335_v7, %v1583_v52  ;;  %6763 = vmatmul.mubr.msk.bf16.gmra.mrb[232].mxu1 %vm72_vm2, %v8091_v24  ;;  %v6517_v1 = vpop.f32.mrb[127].mxu0 }
 0x1db   :  { %6786 = vmatprep.mubr.msk.bf16.mxu1 %vm7542_vm1, %v9795_v0 }
 0x1dc   :  { %v1600_v6 = vmax.f32 %v1594_v33, 0.0  ;;  %v1595_v2 = vmax.f32 %v8571_v20, %v1589_v9 }
 0x1dd   :  { %v1693_v58 = vpop.f32.mrb[128].mxu1 }
 0x1de   :  { %v8704_v11 = vpack.c.bf16 %v1600_v6, %v1599_v54  ;;  %v1601_v48 = vmax.f32 %v1595_v2, 0.0  ;;  %v1694_v63 = vadd.f32 %v1693_v58, %v8643_v29  ;;  %v6500_v32 = vpop.f32.mrb[129].mxu1 }
 0x1df   :  { %v1696_v30 = vpop.f32.mrb[130].mxu1  ;;  %v1758_v16 = vpop.f32.mrb[128].mxu0 }
 0x1e0   :  { %v8707_v7 = vpack.c.bf16 %v1601_v48, %v1600_v6  ;;  %v1697_v24 = vadd.f32 %v1696_v30, %v8645_v40  ;;  %v1773_v47 = vadd.f32 %v1750_v3, %v1694_v63  ;;  %v6501_v12 = vpop.f32.mrb[131].mxu1  ;;  %v6520_v53 = vpop.f32.mrb[129].mxu0 }
 0x1e1   :  { %v1761_v4 = vpop.f32.mrb[130].mxu0 }
 0x1e2   :  { %v1774_v14 = vadd.f32 %v1753_v5, %v1697_v24  ;;  %6787 = vmatmul.mubr.msk.bf16.vlgmr.msra.gmra.mrb[236].mxu1 %vm72_vm2, %v8542_v59  ;;  %v6521_v20 = vpop.f32.mrb[131].mxu0 }
 0x1e3   :  { %6790 = vmatprep.mubr.msk.bf16.mxu1 %vm7542_vm1, %v9795_v0 }
 0x1e5   :  { %v1701_v29 = vpop.f32.mrb[132].mxu1 }
 0x1e6   :  { %v1702_v46 = vadd.f32 %v1701_v29, %v8655_v15  ;;  %v6504_v8 = vpop.f32.mrb[133].mxu1 }
 0x1e7   :  { %v1704_v62 = vpop.f32.mrb[134].mxu1  ;;  %v1766_v18 = vpop.f32.mrb[132].mxu0 }
 0x1e8   :  { %v1705_v40 = vadd.f32 %v1704_v62, %v8658_v34  ;;  %v1775_v39 = vadd.f32 %v1758_v16, %v1702_v46  ;;  %v6505_v28 = vpop.f32.mrb[135].mxu1  ;;  %v6524_v50 = vpop.f32.mrb[133].mxu0 }
 0x1e9   :  { %v1769_v45 = vpop.f32.mrb[134].mxu0 }
 0x1ea   :  { %v1776_v31 = vadd.f32 %v1761_v4, %v1705_v40  ;;  %6791 = vmatmul.mubr.msk.bf16.gmra.mrb[240].mxu1 %vm72_vm2, %v8574_v51  ;;  %v6525_v59 = vpop.f32.mrb[135].mxu0 }
 0x1eb   :  { %6794 = vmatprep.mubr.msk.bf16.mxu1 %vm7542_vm1, %v9795_v0  ;;  %v9341_v0 = vld [vmem:[%s9788_s3 + $0x120] sm:$0xff]  }
 0x1ec   :  { %9823 = vst [vmem:[#allocation7_spill] sm:$0xff] %v9341_v0 }
 0x1ed   :  { %v1709_v57 = vpop.f32.mrb[136].mxu1 }
 0x1ee   :  { %v1710_v15 = vadd.f32 %v1709_v57, %v8676_v55  ;;  %v6508_v43 = vpop.f32.mrb[137].mxu1 }
 0x1ef   :  { %v1712_v22 = vpop.f32.mrb[138].mxu1  ;;  %v1894_v19 = vpop.f32.mrb[136].mxu0 }
 0x1f0   :  { %v1713_v34 = vadd.f32 %v1712_v22, %v8681_v13  ;;  %v1777_v17 = vadd.f32 %v1766_v18, %v1710_v15  ;;  %v6509_v42 = vpop.f32.mrb[139].mxu1  ;;  %v6548_v41 = vpop.f32.mrb[137].mxu0 }
 0x1f1   :  { %v1897_v49 = vpop.f32.mrb[138].mxu0 }
 0x1f2   :  { %v1778_v35 = vadd.f32 %v1769_v45, %v1713_v34  ;;  %6795 = vmatmul.mubr.msk.bf16.gmra.mrb[244].mxu1 %vm72_vm2, %v8597_v10  ;;  %v6549_v51 = vpop.f32.mrb[139].mxu0 }
 0x1f5   :  { %v1813_v44 = vpop.f32.mrb[140].mxu1 }
 0x1f6   :  { %v1836_v61 = vadd.f32 %v1813_v44, %v1773_v47  ;;  %v6532_v56 = vpop.f32.mrb[141].mxu1 }
 0x1f7   :  { %v1816_v54 = vpop.f32.mrb[142].mxu1  ;;  %v1902_v36 = vpop.f32.mrb[140].mxu0 }
 0x1f8   :  { %v1837_v55 = vadd.f32 %v1816_v54, %v1774_v14  ;;  %v8724_v21 = vadd.f32 %v1894_v19, %v1836_v61  ;;  %v6533_v38 = vpop.f32.mrb[143].mxu1  ;;  %v6552_v3 = vpop.f32.mrb[141].mxu0 }
 0x1f9   :  { %v1905_v13 = vpop.f32.mrb[142].mxu0 }
 0x1fa   :  { %v8726_v60 = vadd.f32 %v1897_v49, %v1837_v55  ;;  %v6553_v52 = vpop.f32.mrb[143].mxu0 }
 0x1fd   :  { %v1821_v37 = vpop.f32.mrb[144].mxu1 }
 0x1fe   :  { %v1838_v25 = vadd.f32 %v1821_v37, %v1775_v39  ;;  %v6536_v5 = vpop.f32.mrb[145].mxu1 }
 0x1ff   :  { %v1824_v33 = vpop.f32.mrb[146].mxu1  ;;  %v1910_v10 = vpop.f32.mrb[144].mxu0 }
 0x200   :  { %v1839_v9 = vadd.f32 %v1824_v33, %v1776_v31  ;;  %v8728_v1 = vadd.f32 %v1902_v36, %v1838_v25  ;;  %v6537_v6 = vpop.f32.mrb[147].mxu1  ;;  %v6556_v2 = vpop.f32.mrb[145].mxu0 }
 0x201   :  { %v1913_v58 = vpop.f32.mrb[146].mxu0  ;;  %v7388_v2 = vld [vmem:[%s9788_s3 + $0x40] sm:$0xff]  }
 0x202   :  { %v8730_v48 = vadd.f32 %v1905_v13, %v1839_v9  ;;  %v6557_v63 = vpop.f32.mrb[147].mxu0  ;;  %6798 = vmatprep.subr.bf16.mxu0 %v7388_v2 }
 0x203   :  { %6799 = vmatpush3.bf16.msra.mxu0 %v7388_v2 }
 0x205   :  { %v1829_v32 = vpop.f32.mrb[148].mxu1 }
 0x206   :  { %v1840_v30 = vadd.f32 %v1829_v32, %v1777_v17  ;;  %v6540_v16 = vpop.f32.mrb[149].mxu1 }
 0x207   :  { %v1832_v24 = vpop.f32.mrb[150].mxu1  ;;  %v2020_v47 = vpop.f32.mrb[148].mxu0  ;;  %v7390_v16 = vld [vmem:[%s9788_s3 + $0x48] sm:$0xff]  }
 0x208   :  { %v1841_v12 = vadd.f32 %v1832_v24, %v1778_v35  ;;  %v8732_v53 = vadd.f32 %v1910_v10, %v1840_v30  ;;  %v6541_v4 = vpop.f32.mrb[151].mxu1  ;;  %v6580_v14 = vpop.f32.mrb[149].mxu0  ;;  %v7391_v24 = vld [vmem:[%s9788_s3 + $0x188] sm:$0xff]   ;;  %6800 = vmatprep.subr.bf16.mxu0 %v7390_v16 }
 0x209   :  { %v2023_v20 = vpop.f32.mrb[150].mxu0  ;;  %6801 = vmatpush3.bf16.msra.mxu0 %v7390_v16  ;;  %v7403_v16 = vld [vmem:[%s9788_s3 + $0x1b8] sm:$0xff]  }
 0x20a   :  { %v8734_v29 = vadd.f32 %v1913_v58, %v1841_v12  ;;  %v6581_v46 = vpop.f32.mrb[151].mxu0  ;;  %v7389_v58 = vld [vmem:[%s9788_s3 + $0x180] sm:$0xff]  }
 0x20b   :  { %6898 = vmatprep.subr.bf16.mxu1 %v7389_v58  ;;  %v7392_v46 = vld [vmem:[%s9788_s3 + $0x50] sm:$0xff]  }
 0x20c   :  { %6899 = vmatpush3.bf16.msra.mxu1 %v7389_v58  ;;  %6802 = vmatprep.subr.bf16.mxu0 %v7392_v46 }
 0x20d   :  { %v1963_v8 = vpop.f32.mrb[152].mxu1  ;;  %6900 = vmatprep.subr.bf16.mxu1 %v7391_v24  ;;  %6803 = vmatpush3.bf16.msra.mxu0 %v7392_v46  ;;  %v8838_v46 = vld [vmem:[%s9788_s3 + $0x140] sm:$0xff]  }
 0x20e   :  { %v2021_v62 = vadd.f32 %v2020_v47, %v1963_v8  ;;  %v6564_v18 = vpop.f32.mrb[153].mxu1  ;;  %v7393_v8 = vld [vmem:[%s9788_s3 + $0x190] sm:$0xff]  }
 0x20f   :  { %v1966_v40 = vpop.f32.mrb[154].mxu1  ;;  %v2028_v39 = vpop.f32.mrb[152].mxu0 }
 0x210   :  { %v2024_v28 = vadd.f32 %v2023_v20, %v1966_v40  ;;  %v6565_v50 = vpop.f32.mrb[155].mxu1  ;;  %v6584_v45 = vpop.f32.mrb[153].mxu0  ;;  %6901 = vmatpush3.bf16.msra.mxu1 %v7391_v24 }
 0x211   :  { %v2031_v31 = vpop.f32.mrb[154].mxu0  ;;  %6902 = vmatprep.subr.bf16.mxu1 %v7393_v8 }
 0x212   :  { %v6585_v59 = vpop.f32.mrb[155].mxu0 }
 0x213   :  { %v7395_v59 = vld [vmem:[%s9788_s3 + $0x198] sm:$0xff]  }
 0x214   :  { %6903 = vmatpush3.bf16.msra.mxu1 %v7393_v8 }
 0x215   :  { %v1971_v57 = vpop.f32.mrb[156].mxu1  ;;  %6904 = vmatprep.subr.bf16.mxu1 %v7395_v59 }
 0x216   :  { %v2029_v15 = vadd.f32 %v2028_v39, %v1971_v57  ;;  %v6568_v43 = vpop.f32.mrb[157].mxu1 }
 0x217   :  { %v1974_v22 = vpop.f32.mrb[158].mxu1  ;;  %v2036_v19 = vpop.f32.mrb[156].mxu0 }
 0x218   :  { %v2032_v34 = vadd.f32 %v2031_v31, %v1974_v22  ;;  %v6569_v17 = vpop.f32.mrb[159].mxu1  ;;  %v6588_v42 = vpop.f32.mrb[157].mxu0  ;;  %v7394_v31 = vld [vmem:[%s9788_s3 + $0x58] sm:$0xff]   ;;  %6905 = vmatpush3.bf16.msra.mxu1 %v7395_v59 }
 0x219   :  { %v2039_v41 = vpop.f32.mrb[158].mxu0  ;;  %6804 = vmatprep.subr.bf16.mxu0 %v7394_v31  ;;  %v7397_v17 = vld [vmem:[%s9788_s3 + $0x1a0] sm:$0xff]  }
 0x21a   :  { %v6589_v49 = vpop.f32.mrb[159].mxu0  ;;  %6805 = vmatpush3.bf16.msra.mxu0 %v7394_v31  ;;  %6906 = vmatprep.subr.bf16.mxu1 %v7397_v17 }
 0x21c   :  { %6907 = vmatpush3.bf16.msra.mxu1 %v7397_v17 }
 0x21d   :  { %v1979_v35 = vpop.f32.mrb[160].mxu1 }
 0x21e   :  { %v2037_v51 = vadd.f32 %v2036_v19, %v1979_v35  ;;  %v6572_v44 = vpop.f32.mrb[161].mxu1 }
 0x21f   :  { %v1982_v61 = vpop.f32.mrb[162].mxu1  ;;  %v2140_v56 = vpop.f32.mrb[160].mxu0 }
 0x220   :  { %v2040_v54 = vadd.f32 %v2039_v41, %v1982_v61  ;;  %v6573_v36 = vpop.f32.mrb[163].mxu1  ;;  %v6612_v55 = vpop.f32.mrb[161].mxu0 }
 0x221   :  { %v2143_v38 = vpop.f32.mrb[162].mxu0 }
 0x222   :  { %v6613_v3 = vpop.f32.mrb[163].mxu0 }
 0x225   :  { %v2077_v13 = vpop.f32.mrb[164].mxu1 }
 0x226   :  { %v2100_v52 = vadd.f32 %v2077_v13, %v2021_v62  ;;  %v6596_v37 = vpop.f32.mrb[165].mxu1 }
 0x227   :  { %v2080_v25 = vpop.f32.mrb[166].mxu1  ;;  %v2148_v5 = vpop.f32.mrb[164].mxu0  ;;  %v7401_v37 = vld [vmem:[%s9788_s3 + $0x1b0] sm:$0xff]  }
 0x228   :  { %v2101_v33 = vadd.f32 %v2080_v25, %v2024_v28  ;;  %v8736_v10 = vadd.f32 %v2140_v56, %v2100_v52  ;;  %v6597_v9 = vpop.f32.mrb[167].mxu1  ;;  %v6616_v6 = vpop.f32.mrb[165].mxu0  ;;  %v7398_v56 = vld [vmem:[%s9788_s3 + $0x68] sm:$0xff]   ;;  %v7400_v52 = vld [vmem:[%s9788_s3 + $0x70] sm:$0xff]   ;;  %v8800_v25 = vld [vmem:[%s9787_s2] ss:$0 sm:$0xff] }
 0x229   :  { %v2151_v63 = vpop.f32.mrb[166].mxu0  ;;  %v8814_v58 = vadd.f32 %v8800_v25, %v8726_v60  ;;  %v8842_v8 = vadd.f32 %v8800_v25, %v8728_v1 }
 0x22a   :  { %v8744_v32 = vadd.f32 %v2143_v38, %v2101_v33  ;;  %v6617_v30 = vpop.f32.mrb[167].mxu0 }
 0x22d   :  { %v2085_v47 = vpop.f32.mrb[168].mxu1 }
 0x22e   :  { %v2102_v12 = vadd.f32 %v2085_v47, %v2029_v15  ;;  %v6600_v4 = vpop.f32.mrb[169].mxu1 }
 0x22f   :  { %v2088_v14 = vpop.f32.mrb[170].mxu1  ;;  %v2156_v20 = vpop.f32.mrb[168].mxu0 }
 0x230   :  { %v2103_v62 = vadd.f32 %v2088_v14, %v2032_v34  ;;  %v8758_v18 = vadd.f32 %v2148_v5, %v2102_v12  ;;  %v6601_v40 = vpop.f32.mrb[171].mxu1  ;;  %v6620_v39 = vpop.f32.mrb[169].mxu0  ;;  %v7396_v34 = vld [vmem:[%s9788_s3 + $0x60] sm:$0xff]   ;;  %v8804_v5 = vadd.f32 %v8800_v25, %v8724_v21 }
 0x231   :  { %v2159_v28 = vpop.f32.mrb[170].mxu0  ;;  %6806 = vmatprep.subr.bf16.mxu0 %v7396_v34 }
 0x232   :  { %v8760_v50 = vadd.f32 %v2151_v63, %v2103_v62  ;;  %v6621_v45 = vpop.f32.mrb[171].mxu0  ;;  %6807 = vmatpush3.bf16.msra.mxu0 %v7396_v34 }
 0x233   :  { %6808 = vmatprep.subr.bf16.mxu0 %v7398_v56  ;;  %v8852_v45 = vadd.f32 %v8800_v25, %v8730_v48  ;;  %v8864_v48 = vadd.f32 %v8800_v25, %v8732_v53 }
 0x235   :  { %v2093_v57 = vpop.f32.mrb[172].mxu1 }
 0x236   :  { %v2104_v15 = vadd.f32 %v2093_v57, %v2037_v51  ;;  %v6604_v43 = vpop.f32.mrb[173].mxu1  ;;  %6809 = vmatpush3.bf16.msra.mxu0 %v7398_v56  ;;  %v8872_v56 = vadd.f32 %v8800_v25, %v8734_v29 }
 0x237   :  { %v2096_v22 = vpop.f32.mrb[174].mxu1  ;;  %v8768_v19 = vpop.f32.mrb[172].mxu0  ;;  %6810 = vmatprep.subr.bf16.mxu0 %v7400_v52 }
 0x238   :  { %v2105_v42 = vadd.f32 %v2096_v22, %v2040_v54  ;;  %v8776_v41 = vadd.f32 %v2156_v20, %v2104_v15  ;;  %v6605_v49 = vpop.f32.mrb[175].mxu1  ;;  %v6644_v35 = vpop.f32.mrb[173].mxu0  ;;  %v7399_v54 = vld [vmem:[%s9788_s3 + $0x1a8] sm:$0xff]   ;;  %v8833_v20 = vld [vmem:[%s9788_s3] sm:$0xff]  }
 0x239   :  { %v8778_v51 = vpop.f32.mrb[174].mxu0  ;;  %6908 = vmatprep.subr.bf16.mxu1 %v7399_v54 }
 0x23a   :  { %v8780_v44 = vadd.f32 %v2159_v28, %v2105_v42  ;;  %v6645_v61 = vpop.f32.mrb[175].mxu0  ;;  %6909 = vmatpush3.bf16.msra.mxu1 %v7399_v54  ;;  %6811 = vmatpush3.bf16.msra.mxu0 %v7400_v52 }
 0x23b   :  { %6910 = vmatprep.subr.bf16.mxu1 %v7401_v37 }
 0x23d   :  { %v2203_v36 = vpop.f32.mrb[176].mxu1 }
 0x23e   :  { %v2226_v55 = vadd.f32 %v2203_v36, %v8736_v10  ;;  %v6628_v38 = vpop.f32.mrb[177].mxu1  ;;  %6911 = vmatpush3.bf16.msra.mxu1 %v7401_v37 }
 0x23f   :  { %v2206_v3 = vpop.f32.mrb[178].mxu1  ;;  %v8789_v13 = vpop.f32.mrb[176].mxu0  ;;  %6912 = vmatprep.subr.bf16.mxu1 %v7403_v16 }
 0x240   :  { %v8807_v33 = vadd.f32 %v8800_v25, %v2226_v55  ;;  %v2227_v10 = vadd.f32 %v2206_v3, %v8744_v32  ;;  %v6629_v9 = vpop.f32.mrb[179].mxu1  ;;  %v6648_v6 = vpop.f32.mrb[177].mxu0  ;;  %v7402_v32 = vld [vmem:[%s9788_s3 + $0x78] sm:$0xff]  }
 0x241   :  { %v8810_v2 = vpop.f32.mrb[178].mxu0  ;;  %6812 = vmatprep.subr.bf16.mxu0 %v7402_v32 }
 0x242   :  { %v2238_v63 = vmax.f32 %v8804_v5, %v8807_v33  ;;  %v8819_v21 = vadd.f32 %v8800_v25, %v2227_v10  ;;  %v6649_v30 = vpop.f32.mrb[179].mxu0  ;;  %6813 = vmatpush3.bf16.msra.mxu0 %v7402_v32  ;;  %6913 = vmatpush3.bf16.msra.mxu1 %v7403_v16 }
 0x243   :  { %6818 = vmatprep.subr.bf16.mxu0 %v8833_v20  ;;  %6918 = vmatprep.subr.bf16.mxu1 %v8838_v46 }
 0x244   :  { %v2239_v60 = vmax.f32 %v8814_v58, %v8819_v21 }
 0x245   :  { %v2211_v24 = vpop.f32.mrb[180].mxu1 }
 0x246   :  { %v2228_v47 = vadd.f32 %v2211_v24, %v8758_v18  ;;  %v6632_v12 = vpop.f32.mrb[181].mxu1 }
 0x247   :  { %v2214_v4 = vpop.f32.mrb[182].mxu1  ;;  %v2294_v14 = vpop.f32.mrb[180].mxu0 }
 0x248   :  { %v8845_v62 = vadd.f32 %v8800_v25, %v2228_v47  ;;  %v2229_v18 = vadd.f32 %v2214_v4, %v8760_v50  ;;  %v6633_v40 = vpop.f32.mrb[183].mxu1  ;;  %v6652_v39 = vpop.f32.mrb[181].mxu0 }
 0x249   :  { %v2297_v28 = vpop.f32.mrb[182].mxu0 }
 0x24a   :  { %v2240_v1 = vmax.f32 %v8842_v8, %v8845_v62  ;;  %v8857_v31 = vadd.f32 %v8800_v25, %v2229_v18  ;;  %v6653_v59 = vpop.f32.mrb[183].mxu0 }
 0x24c   :  { %v2241_v50 = vmax.f32 %v8852_v45, %v8857_v31 }
 0x24d   :  { %v2219_v57 = vpop.f32.mrb[184].mxu1 }
 0x24e   :  { %v2230_v15 = vadd.f32 %v2219_v57, %v8776_v41  ;;  %v6636_v43 = vpop.f32.mrb[185].mxu1 }
 0x24f   :  { %v2222_v22 = vpop.f32.mrb[186].mxu1  ;;  %v2392_v34 = vpop.f32.mrb[184].mxu0 }
 0x250   :  { %v8867_v17 = vadd.f32 %v8800_v25, %v2230_v15  ;;  %v2231_v42 = vadd.f32 %v2222_v22, %v8780_v44  ;;  %v6637_v49 = vpop.f32.mrb[187].mxu1  ;;  %v6676_v35 = vpop.f32.mrb[185].mxu0 }
 0x251   :  { %v2395_v61 = vpop.f32.mrb[186].mxu0 }
 0x252   :  { %v2242_v41 = vmax.f32 %v8864_v48, %v8867_v17  ;;  %v8877_v54 = vadd.f32 %v8800_v25, %v2231_v42  ;;  %v6677_v53 = vpop.f32.mrb[187].mxu0 }
 0x254   :  { %v2243_v36 = vmax.f32 %v8872_v56, %v8877_v54 }
 0x255   :  { %v2335_v55 = vpop.f32.mrb[188].mxu1 }
 0x256   :  { %v2336_v44 = vadd.f32 %v2335_v55, %v8768_v19  ;;  %v6660_v38 = vpop.f32.mrb[189].mxu1 }
 0x257   :  { %v2338_v3 = vpop.f32.mrb[190].mxu1  ;;  %v2400_v52 = vpop.f32.mrb[188].mxu0 }
 0x258   :  { %v2339_v37 = vadd.f32 %v2338_v3, %v8778_v51  ;;  %v2415_v29 = vadd.f32 %v2392_v34, %v2336_v44  ;;  %v6661_v10 = vpop.f32.mrb[191].mxu1  ;;  %v6680_v9 = vpop.f32.mrb[189].mxu0 }
 0x259   :  { %v2403_v6 = vpop.f32.mrb[190].mxu0 }
 0x25a   :  { %v2416_v30 = vadd.f32 %v2395_v61, %v2339_v37  ;;  %v6681_v32 = vpop.f32.mrb[191].mxu0 }
 0x25d   :  { %v2343_v16 = vpop.f32.mrb[192].mxu1 }
 0x25e   :  { %v2344_v24 = vadd.f32 %v2343_v16, %v8789_v13  ;;  %v6664_v47 = vpop.f32.mrb[193].mxu1 }
 0x25f   :  { %v2346_v12 = vpop.f32.mrb[194].mxu1  ;;  %v2408_v4 = vpop.f32.mrb[192].mxu0 }
 0x260   :  { %v2347_v18 = vadd.f32 %v2346_v12, %v8810_v2  ;;  %v2417_v19 = vadd.f32 %v2400_v52, %v2344_v24  ;;  %v6665_v40 = vpop.f32.mrb[195].mxu1  ;;  %v6684_v39 = vpop.f32.mrb[193].mxu0 }
 0x261   :  { %v2411_v59 = vpop.f32.mrb[194].mxu0 }
 0x262   :  { %v2418_v57 = vadd.f32 %v2403_v6, %v2347_v18  ;;  %v6685_v51 = vpop.f32.mrb[195].mxu0 }
 0x265   :  { %v2351_v15 = vpop.f32.mrb[196].mxu1 }
 0x266   :  { %v2352_v43 = vadd.f32 %v2351_v15, %v2294_v14  ;;  %v6668_v22 = vpop.f32.mrb[197].mxu1 }
 0x267   :  { %v2354_v34 = vpop.f32.mrb[198].mxu1  ;;  %v2536_v42 = vpop.f32.mrb[196].mxu0 }
 0x268   :  { %v2355_v49 = vadd.f32 %v2354_v34, %v2297_v28  ;;  %v2419_v35 = vadd.f32 %v2408_v4, %v2352_v43  ;;  %v6669_v61 = vpop.f32.mrb[199].mxu1  ;;  %v6708_v13 = vpop.f32.mrb[197].mxu0 }
 0x269   :  { %v2539_v53 = vpop.f32.mrb[198].mxu0 }
 0x26a   :  { %v2420_v55 = vadd.f32 %v2411_v59, %v2355_v49  ;;  %v6709_v44 = vpop.f32.mrb[199].mxu0 }
 0x26d   :  { %v2455_v38 = vpop.f32.mrb[200].mxu1 }
 0x26e   :  { %v2478_v2 = vadd.f32 %v2455_v38, %v2415_v29  ;;  %v6692_v3 = vpop.f32.mrb[201].mxu1 }
 0x26f   :  { %v2458_v52 = vpop.f32.mrb[202].mxu1  ;;  %v2544_v37 = vpop.f32.mrb[200].mxu0 }
 0x270   :  { %v2479_v10 = vadd.f32 %v2458_v52, %v2416_v30  ;;  %v2559_v9 = vadd.f32 %v2536_v42, %v2478_v2  ;;  %v6693_v6 = vpop.f32.mrb[203].mxu1  ;;  %v6712_v32 = vpop.f32.mrb[201].mxu0 }
 0x271   :  { %v2547_v14 = vpop.f32.mrb[202].mxu0 }
 0x272   :  { %v2565_v16 = vadd.f32 %v8800_v25, %v2559_v9  ;;  %v2560_v24 = vadd.f32 %v2539_v53, %v2479_v10  ;;  %v6713_v28 = vpop.f32.mrb[203].mxu0 }
 0x274   :  { %v8889_v47 = vmax.f32 %v2238_v63, %v2565_v16  ;;  %v2566_v12 = vadd.f32 %v8800_v25, %v2560_v24 }
 0x275   :  { %v2463_v29 = vpop.f32.mrb[204].mxu1 }
 0x276   :  { %v8895_v30 = vmax.f32 %v2239_v60, %v2566_v12  ;;  %v2480_v4 = vadd.f32 %v2463_v29, %v2417_v19  ;;  %v6696_v18 = vpop.f32.mrb[205].mxu1 }
 0x277   :  { %v2466_v40 = vpop.f32.mrb[206].mxu1  ;;  %v2552_v39 = vpop.f32.mrb[204].mxu0 }
 0x278   :  { %v2481_v59 = vadd.f32 %v2466_v40, %v2418_v57  ;;  %v2561_v51 = vadd.f32 %v2544_v37, %v2480_v4  ;;  %v6697_v15 = vpop.f32.mrb[207].mxu1  ;;  %v6716_v43 = vpop.f32.mrb[205].mxu0 }
 0x279   :  { %v2555_v22 = vpop.f32.mrb[206].mxu0 }
 0x27a   :  { %v2567_v5 = vadd.f32 %v8800_v25, %v2561_v51  ;;  %v2562_v33 = vadd.f32 %v2547_v14, %v2481_v59  ;;  %v6717_v63 = vpop.f32.mrb[207].mxu0 }
 0x27c   :  { %v8901_v34 = vmax.f32 %v2240_v1, %v2567_v5  ;;  %v2568_v58 = vadd.f32 %v8800_v25, %v2562_v33 }
 0x27d   :  { %v2471_v21 = vpop.f32.mrb[208].mxu1 }
 0x27e   :  { %v8907_v60 = vmax.f32 %v2241_v50, %v2568_v58  ;;  %v2482_v19 = vadd.f32 %v2471_v21, %v2419_v35  ;;  %v6700_v57 = vpop.f32.mrb[209].mxu1 }
 0x27f   :  { %v2474_v42 = vpop.f32.mrb[210].mxu1  ;;  %v2668_v49 = vpop.f32.mrb[208].mxu0 }
 0x280   :  { %v2483_v61 = vadd.f32 %v2474_v42, %v2420_v55  ;;  %v2563_v13 = vadd.f32 %v2552_v39, %v2482_v19  ;;  %v6701_v53 = vpop.f32.mrb[211].mxu1  ;;  %v6740_v44 = vpop.f32.mrb[209].mxu0 }
 0x281   :  { %v2671_v38 = vpop.f32.mrb[210].mxu0 }
 0x282   :  { %v2569_v8 = vadd.f32 %v8800_v25, %v2563_v13  ;;  %v2564_v62 = vadd.f32 %v2555_v22, %v2483_v61  ;;  %v6741_v1 = vpop.f32.mrb[211].mxu0 }
 0x284   :  { %v8913_v2 = vmax.f32 %v2242_v41, %v2569_v8  ;;  %v2570_v45 = vadd.f32 %v8800_v25, %v2564_v62 }
 0x285   :  { %v2611_v31 = vpop.f32.mrb[212].mxu1 }
 0x286   :  { %v8919_v50 = vmax.f32 %v2243_v36, %v2570_v45  ;;  %v2669_v35 = vadd.f32 %v2668_v49, %v2611_v31  ;;  %v6724_v55 = vpop.f32.mrb[213].mxu1 }
 0x287   :  { %v2614_v3 = vpop.f32.mrb[214].mxu1  ;;  %v2676_v52 = vpop.f32.mrb[212].mxu0 }
 0x288   :  { %v2672_v37 = vadd.f32 %v2671_v38, %v2614_v3  ;;  %v6725_v10 = vpop.f32.mrb[215].mxu1  ;;  %v6744_v9 = vpop.f32.mrb[213].mxu0 }
 0x289   :  { %v2679_v6 = vpop.f32.mrb[214].mxu0 }
 0x28a   :  { %v6745_v32 = vpop.f32.mrb[215].mxu0 }
 0x28d   :  { %v2619_v48 = vpop.f32.mrb[216].mxu1 }
 0x28e   :  { %v2677_v17 = vadd.f32 %v2676_v52, %v2619_v48  ;;  %v6728_v41 = vpop.f32.mrb[217].mxu1 }
 0x28f   :  { %v2622_v14 = vpop.f32.mrb[218].mxu1  ;;  %v2684_v16 = vpop.f32.mrb[216].mxu0 }
 0x290   :  { %v2680_v24 = vadd.f32 %v2679_v6, %v2622_v14  ;;  %v6729_v28 = vpop.f32.mrb[219].mxu1  ;;  %v6748_v12 = vpop.f32.mrb[217].mxu0 }
 0x291   :  { %v2687_v56 = vpop.f32.mrb[218].mxu0 }
 0x292   :  { %v6749_v54 = vpop.f32.mrb[219].mxu0 }
 0x295   :  { %v2627_v36 = vpop.f32.mrb[220].mxu1 }
 0x296   :  { %v2685_v29 = vadd.f32 %v2684_v16, %v2627_v36  ;;  %v6732_v4 = vpop.f32.mrb[221].mxu1 }
 0x297   :  { %v2630_v18 = vpop.f32.mrb[222].mxu1  ;;  %v2788_v40 = vpop.f32.mrb[220].mxu0 }
 0x298   :  { %v2688_v39 = vadd.f32 %v2687_v56, %v2630_v18  ;;  %v6733_v59 = vpop.f32.mrb[223].mxu1  ;;  %v6772_v51 = vpop.f32.mrb[221].mxu0 }
 0x299   :  { %v2791_v15 = vpop.f32.mrb[222].mxu0 }
 0x29a   :  { %v6773_v43 = vpop.f32.mrb[223].mxu0 }
 0x29d   :  { %v2725_v22 = vpop.f32.mrb[224].mxu1 }
 0x29e   :  { %v2748_v5 = vadd.f32 %v2725_v22, %v2669_v35  ;;  %v6756_v33 = vpop.f32.mrb[225].mxu1 }
 0x29f   :  { %v2728_v63 = vpop.f32.mrb[226].mxu1  ;;  %v2796_v58 = vpop.f32.mrb[224].mxu0 }
 0x2a0   :  { %v2749_v21 = vadd.f32 %v2728_v63, %v2672_v37  ;;  %v2811_v19 = vadd.f32 %v2788_v40, %v2748_v5  ;;  %v6757_v57 = vpop.f32.mrb[227].mxu1  ;;  %v6776_v42 = vpop.f32.mrb[225].mxu0 }
 0x2a1   :  { %v2799_v49 = vpop.f32.mrb[226].mxu0 }
 0x2a2   :  { %v2812_v61 = vadd.f32 %v2791_v15, %v2749_v21  ;;  %v6777_v13 = vpop.f32.mrb[227].mxu0 }
 0x2a5   :  { %v2733_v53 = vpop.f32.mrb[228].mxu1 }
 0x2a6   :  { %v2750_v44 = vadd.f32 %v2733_v53, %v2677_v17  ;;  %v6760_v38 = vpop.f32.mrb[229].mxu1 }
 0x2a7   :  { %v2736_v8 = vpop.f32.mrb[230].mxu1  ;;  %v2804_v62 = vpop.f32.mrb[228].mxu0  ;;  %v8941_v38 = vld [vmem:[%s9788_s3 + $0x8] sm:$0xff]  }
 0x2a8   :  { %v2751_v1 = vadd.f32 %v2736_v8, %v2680_v24  ;;  %v2813_v45 = vadd.f32 %v2796_v58, %v2750_v44  ;;  %v6761_v31 = vpop.f32.mrb[231].mxu1  ;;  %v6780_v55 = vpop.f32.mrb[229].mxu0 }
 0x2a9   :  { %v2807_v35 = vpop.f32.mrb[230].mxu0  ;;  %v8985_v31 = vld [vmem:[%s9788_s3 + $0x158] sm:$0xff]   ;;  %v8994_v55 = vld [vmem:[%s9788_s3 + $0x20] sm:$0xff]  }
 0x2aa   :  { %v2814_v3 = vadd.f32 %v2799_v49, %v2751_v1  ;;  %v6781_v52 = vpop.f32.mrb[231].mxu0 }
 0x2ab   :  { %v9013_v52 = vld [vmem:[%s9788_s3 + $0x168] sm:$0xff]  }
 0x2ad   :  { %v2741_v10 = vpop.f32.mrb[232].mxu1 }
 0x2ae   :  { %v2752_v37 = vadd.f32 %v2741_v10, %v2685_v29  ;;  %v6764_v9 = vpop.f32.mrb[233].mxu1  ;;  %v9022_v10 = vld [vmem:[%s9788_s3 + $0x30] sm:$0xff]  }
 0x2af   :  { %v2744_v6 = vpop.f32.mrb[234].mxu1  ;;  %v9036_v9 = vld [vmem:[%s9788_s3 + $0x38] sm:$0xff]  }
 0x2b0   :  { %v2753_v32 = vadd.f32 %v2744_v6, %v2688_v39  ;;  %v2815_v48 = vadd.f32 %v2804_v62, %v2752_v37  ;;  %v6765_v41 = vpop.f32.mrb[235].mxu1  ;;  %v9027_v37 = vld [vmem:[%s9788_s3 + $0x170] sm:$0xff]   ;;  %v9041_v6 = vld [vmem:[%s9788_s3 + $0x178] sm:$0xff]  }
 0x2b1   :  { %v9064_v41 = vld [vmem:[%s9788_s3 + $0x88] sm:$0xff]  }
 0x2b2   :  { %v2816_v14 = vadd.f32 %v2807_v35, %v2753_v32  ;;  %v8999_v35 = vld [vmem:[%s9788_s3 + $0x160] sm:$0xff]  }
 0x2b3   :  { %v9050_v32 = vld [vmem:[%s9788_s3 + $0x80] sm:$0xff]  }
 0x2b5   :  { %v2851_v16 = vpop.f32.mrb[236].mxu1 }
 0x2b6   :  { %v2874_v17 = vadd.f32 %v2851_v16, %v2811_v19  ;;  %v6788_v28 = vpop.f32.mrb[237].mxu1  ;;  %v9080_v16 = vld [vmem:[%s9788_s3 + $0x90] sm:$0xff]  }
 0x2b7   :  { %v2854_v12 = vpop.f32.mrb[238].mxu1  ;;  %v9095_v28 = vld [vmem:[%s9788_s3 + $0x98] sm:$0xff]  }
 0x2b8   :  { %v2880_v24 = vadd.f32 %v8800_v25, %v2874_v17  ;;  %v2875_v56 = vadd.f32 %v2854_v12, %v2812_v61  ;;  %v6789_v54 = vpop.f32.mrb[239].mxu1  ;;  %v9087_v17 = vld [vmem:[%s9788_s3 + $0x1d0] sm:$0xff]   ;;  %v9101_v12 = vld [vmem:[%s9788_s3 + $0x1d8] sm:$0xff]  }
 0x2b9   :  { %v9123_v54 = vld [vmem:[%s9788_s3 + $0xa8] sm:$0xff]  }
 0x2ba   :  { %v2886_v36 = vmax.f32 %v8889_v47, %v2880_v24  ;;  %v2881_v4 = vadd.f32 %v8800_v25, %v2875_v56  ;;  %v9109_v24 = vld [vmem:[%s9788_s3 + $0xa0] sm:$0xff]  }
 0x2bb   :  { %v9115_v56 = vld [vmem:[%s9788_s3 + $0x1e0] sm:$0xff]  }
 0x2bc   :  { %v2887_v29 = vmax.f32 %v8895_v30, %v2881_v4  ;;  %v2892_v40 = vmax.f32 %v2886_v36, 0.0  ;;  %v9129_v36 = vld [vmem:[%s9788_s3 + $0x1e8] sm:$0xff]   ;;  %v9137_v4 = vld [vmem:[%s9788_s3 + $0xb0] sm:$0xff]  }
 0x2bd   :  { %v2859_v18 = vpop.f32.mrb[240].mxu1 }
 0x2be   :  { %v2893_v39 = vmax.f32 %v2887_v29, 0.0  ;;  %v2876_v59 = vadd.f32 %v2859_v18, %v2813_v45  ;;  %v6792_v51 = vpop.f32.mrb[241].mxu1  ;;  %v9143_v29 = vld [vmem:[%s9788_s3 + $0x1f0] sm:$0xff]   ;;  %v9151_v18 = vld [vmem:[%s9788_s3 + $0xb8] sm:$0xff]  }
 0x2bf   :  { %v2862_v15 = vpop.f32.mrb[242].mxu1  ;;  %v9180_v51 = vld [vmem:[%s9788_s3 + $0xc8] sm:$0xff]  }
 0x2c0   :  { %v8925_v43 = vpack.c.bf16 %v2893_v39, %v2892_v40  ;;  %v2882_v22 = vadd.f32 %v8800_v25, %v2876_v59  ;;  %v2877_v5 = vadd.f32 %v2862_v15, %v2814_v3  ;;  %v6793_v33 = vpop.f32.mrb[243].mxu1  ;;  %v9008_v3 = vld [vmem:[%s9788_s3 + $0x28] sm:$0xff]   ;;  %v9157_v40 = vld [vmem:[%s9788_s3 + $0x1f8] sm:$0xff]   ;;  %v9171_v59 = vld [vmem:[%s9788_s3 + $0x200] sm:$0xff]  }
 0x2c1   :  { %v9186_v15 = vld [vmem:[%s9788_s3 + $0x208] sm:$0xff]   ;;  %v9211_v33 = vld [vmem:[%s9788_s3 + $0xd8] sm:$0xff]  }
 0x2c2   :  { %v2888_v63 = vmax.f32 %v8901_v34, %v2882_v22  ;;  %v2883_v47 = vadd.f32 %v8800_v25, %v2877_v5  ;;  %6814 = vmatprep.mubr.bf16.mxu0 %v8925_v43  ;;  %6914 = vmatprep.mubr.bf16.mxu1 %v8925_v43  ;;  %v9195_v22 = vld [vmem:[%s9788_s3 + $0xd0] sm:$0xff]  }
 0x2c3   :  { %v9202_v5 = vld [vmem:[%s9788_s3 + $0x210] sm:$0xff]  }
 0x2c4   :  { %v2894_v30 = vmax.f32 %v2888_v63, 0.0  ;;  %v2889_v58 = vmax.f32 %v8907_v60, %v2883_v47  ;;  %v8946_v60 = vld [vmem:[%s9788_s3 + $0x148] sm:$0xff]   ;;  %v9217_v63 = vld [vmem:[%s9788_s3 + $0x218] sm:$0xff]   ;;  %v9225_v47 = vld [vmem:[%s9788_s3 + $0xe0] sm:$0xff]  }
 0x2c5   :  { %v2867_v21 = vpop.f32.mrb[244].mxu1 }
 0x2c6   :  { %v8933_v19 = vpack.c.bf16 %v2894_v30, %v2893_v39  ;;  %v2895_v57 = vmax.f32 %v2889_v58, 0.0  ;;  %v2878_v42 = vadd.f32 %v2867_v21, %v2815_v48  ;;  %v6796_v49 = vpop.f32.mrb[245].mxu1  ;;  %v9055_v48 = vld [vmem:[%s9788_s3 + $0x1c0] sm:$0xff]   ;;  %v9239_v58 = vld [vmem:[%s9788_s3 + $0xe8] sm:$0xff]  }
 0x2c7   :  { %v2870_v61 = vpop.f32.mrb[246].mxu1  ;;  %v9165_v39 = vld [vmem:[%s9788_s3 + $0xc0] sm:$0xff]   ;;  %v9245_v21 = vld [vmem:[%s9788_s3 + $0x228] sm:$0xff]   ;;  %v9267_v49 = vld [vmem:[%s9788_s3 + $0xf8] sm:$0xff]  }
 0x2c8   :  { %v8935_v13 = vpack.c.bf16 %v2895_v57, %v2894_v30  ;;  %v2884_v34 = vadd.f32 %v8800_v25, %v2878_v42  ;;  %v2879_v53 = vadd.f32 %v2870_v61, %v2816_v14  ;;  %v6797_v44 = vpop.f32.mrb[247].mxu1  ;;  %v9069_v14 = vld [vmem:[%s9788_s3 + $0x1c8] sm:$0xff]   ;;  %v9231_v30 = vld [vmem:[%s9788_s3 + $0x220] sm:$0xff]   ;;  %v9259_v42 = vld [vmem:[%s9788_s3 + $0x230] sm:$0xff]  }
 0x2c9   :  { %v9273_v61 = vld [vmem:[%s9788_s3 + $0x238] sm:$0xff]   ;;  %v9296_v44 = vld [vmem:[%s9788_s3 + $0x108] sm:$0xff]  }
 0x2ca   :  { %v2890_v8 = vmax.f32 %v8913_v2, %v2884_v34  ;;  %v2885_v62 = vadd.f32 %v8800_v25, %v2879_v53  ;;  %6815 = vmatmul.mubr.bf16.vlgmr.msra.gmra.mrb[232].mxu0 %v8935_v13  ;;  %6915 = vmatmul.mubr.bf16.vlgmr.msra.gmra.mrb[248].mxu1 %v8935_v13  ;;  %v8960_v2 = vld [vmem:[%s9788_s3 + $0x10] sm:$0xff]   ;;  %v9281_v34 = vld [vmem:[%s9788_s3 + $0x100] sm:$0xff]  }
 0x2cb   :  { %6819 = vmatpush3.bf16.msra.mxu0 %v8833_v20  ;;  %6919 = vmatpush3.bf16.msra.mxu1 %v8838_v46  ;;  %v8965_v25 = vld [vmem:[%s9788_s3 + $0x150] sm:$0xff]   ;;  %v9287_v53 = vld [vmem:[%s9788_s3 + $0x240] sm:$0xff]  }
 0x2cc   :  { %v2896_v1 = vmax.f32 %v2890_v8, 0.0  ;;  %v2891_v45 = vmax.f32 %v8919_v50, %v2885_v62  ;;  %6834 = vmatprep.mubr.bf16.mxu0 %v8679_v26  ;;  %6934 = vmatprep.mubr.bf16.mxu1 %v8679_v26  ;;  %v8980_v50 = vld [vmem:[%s9788_s3 + $0x18] sm:$0xff]   ;;  %v9302_v8 = vld [vmem:[%s9788_s3 + $0x248] sm:$0xff]   ;;  %v9311_v62 = vld [vmem:[%s9788_s3 + $0x110] sm:$0xff]  }
 0x2cd   :  { %6820 = vmatprep.subr.bf16.mxu0 %v8941_v38  ;;  %6920 = vmatprep.subr.bf16.mxu1 %v8946_v60  ;;  %9819 = vst [vmem:[#allocation3_spill] sm:$0xff] %v9311_v62 }
 0x2ce   :  { %v8969_v20 = vpack.c.bf16 %v2896_v1, %v2895_v57  ;;  %v2897_v46 = vmax.f32 %v2891_v45, 0.0  ;;  %v9253_v57 = vld [vmem:[%s9788_s3 + $0xf0] sm:$0xff]   ;;  %v9327_v45 = vld [vmem:[%s9788_s3 + $0x118] sm:$0xff]  }
 0x2cf   :  { %6821 = vmatpush3.bf16.msra.mxu0 %v8941_v38  ;;  %6921 = vmatpush3.bf16.msra.mxu1 %v8946_v60  ;;  %9821 = vst [vmem:[#allocation5_spill] sm:$0xff] %v9327_v45 }
 0x2d0   :  { %v8973_v26 = vpack.c.bf16 %v2897_v46, %v2896_v1  ;;  %6822 = vmatprep.subr.bf16.mxu0 %v8960_v2  ;;  %6922 = vmatprep.subr.bf16.mxu1 %v8965_v25  ;;  %v9318_v1 = vld [vmem:[%s9788_s3 + $0x250] sm:$0xff]   ;;  %v9333_v46 = vld [vmem:[%s9788_s3 + $0x258] sm:$0xff]  }
 0x2d1   :  { %9820 = vst [vmem:[#allocation4_spill] sm:$0xff] %v9318_v1  ;;  %9822 = vst [vmem:[#allocation6_spill] sm:$0xff] %v9333_v46 }
 0x2d2   :  { %9818 = vst [vmem:[#allocation2_spill] sm:$0xff] %v8973_v26  ;;  %v9347_v26 = vld [vmem:[%s9788_s3 + $0x260] sm:$0xff]  }
 0x2d3   :  { %6823 = vmatpush3.bf16.msra.mxu0 %v8960_v2  ;;  %6923 = vmatpush3.bf16.msra.mxu1 %v8965_v25  ;;  %9824 = vst [vmem:[#allocation8_spill] sm:$0xff] %v9347_v26 }
 0x2d4   :  { %6824 = vmatprep.subr.bf16.mxu0 %v8980_v50  ;;  %6924 = vmatprep.subr.bf16.mxu1 %v8985_v31 }
 0x2d7   :  { %6825 = vmatpush3.bf16.msra.mxu0 %v8980_v50  ;;  %6925 = vmatpush3.bf16.msra.mxu1 %v8985_v31 }
 0x2d8   :  { %6826 = vmatprep.subr.bf16.mxu0 %v8994_v55  ;;  %6926 = vmatprep.subr.bf16.mxu1 %v8999_v35 }
 0x2db   :  { %6827 = vmatpush3.bf16.msra.mxu0 %v8994_v55  ;;  %6927 = vmatpush3.bf16.msra.mxu1 %v8999_v35 }
 0x2dc   :  { %6828 = vmatprep.subr.bf16.mxu0 %v9008_v3  ;;  %6928 = vmatprep.subr.bf16.mxu1 %v9013_v52 }
 0x2df   :  { %6829 = vmatpush3.bf16.msra.mxu0 %v9008_v3  ;;  %6929 = vmatpush3.bf16.msra.mxu1 %v9013_v52 }
 0x2e0   :  { %6830 = vmatprep.subr.bf16.mxu0 %v9022_v10  ;;  %6930 = vmatprep.subr.bf16.mxu1 %v9027_v37 }
 0x2e3   :  { %6831 = vmatpush3.bf16.msra.mxu0 %v9022_v10  ;;  %6931 = vmatpush3.bf16.msra.mxu1 %v9027_v37 }
 0x2e4   :  { %6832 = vmatprep.subr.bf16.mxu0 %v9036_v9  ;;  %6932 = vmatprep.subr.bf16.mxu1 %v9041_v6 }
 0x2e7   :  { %6833 = vmatpush3.bf16.msra.mxu0 %v9036_v9  ;;  %6933 = vmatpush3.bf16.msra.mxu1 %v9041_v6 }
 0x2e8   :  { %6838 = vmatprep.subr.bf16.mxu0 %v9050_v32  ;;  %6938 = vmatprep.subr.bf16.mxu1 %v9055_v48 }
 0x2ea   :  { %6835 = vmatmul.mubr.bf16.vlgmr.msra.gmra.mrb[232].mxu0 %v8694_v27  ;;  %6935 = vmatmul.mubr.bf16.vlgmr.msra.gmra.mrb[248].mxu1 %v8694_v27 }
 0x2eb   :  { %6839 = vmatpush3.bf16.msra.mxu0 %v9050_v32  ;;  %6854 = vmatprep.mubr.bf16.mxu0 %v8692_v23 }
 0x2ec   :  { %6939 = vmatpush3.bf16.msra.mxu1 %v9055_v48  ;;  %6954 = vmatprep.mubr.bf16.mxu1 %v8692_v23 }
 0x2ed   :  { %6840 = vmatprep.subr.bf16.mxu0 %v9064_v41  ;;  %6940 = vmatprep.subr.bf16.mxu1 %v9069_v14 }
 0x2ef   :  { %6841 = vmatpush3.bf16.msra.mxu0 %v9064_v41 }
 0x2f0   :  { %6941 = vmatpush3.bf16.msra.mxu1 %v9069_v14  ;;  %6842 = vmatprep.subr.bf16.mxu0 %v9080_v16 }
 0x2f1   :  { %6942 = vmatprep.subr.bf16.mxu1 %v9087_v17 }
 0x2f3   :  { %6843 = vmatpush3.bf16.msra.mxu0 %v9080_v16 }
 0x2f4   :  { %6943 = vmatpush3.bf16.msra.mxu1 %v9087_v17  ;;  %6844 = vmatprep.subr.bf16.mxu0 %v9095_v28 }
 0x2f5   :  { %6944 = vmatprep.subr.bf16.mxu1 %v9101_v12 }
 0x2f7   :  { %6845 = vmatpush3.bf16.msra.mxu0 %v9095_v28 }
 0x2f8   :  { %6945 = vmatpush3.bf16.msra.mxu1 %v9101_v12  ;;  %6846 = vmatprep.subr.bf16.mxu0 %v9109_v24 }
 0x2f9   :  { %6946 = vmatprep.subr.bf16.mxu1 %v9115_v56 }
 0x2fb   :  { %6847 = vmatpush3.bf16.msra.mxu0 %v9109_v24 }
 0x2fc   :  { %6947 = vmatpush3.bf16.msra.mxu1 %v9115_v56  ;;  %6848 = vmatprep.subr.bf16.mxu0 %v9123_v54 }
 0x2fd   :  { %6948 = vmatprep.subr.bf16.mxu1 %v9129_v36 }
 0x2ff   :  { %6849 = vmatpush3.bf16.msra.mxu0 %v9123_v54 }
 0x300   :  { %6949 = vmatpush3.bf16.msra.mxu1 %v9129_v36  ;;  %6850 = vmatprep.subr.bf16.mxu0 %v9137_v4 }
 0x301   :  { %6950 = vmatprep.subr.bf16.mxu1 %v9143_v29 }
 0x303   :  { %6851 = vmatpush3.bf16.msra.mxu0 %v9137_v4 }
 0x304   :  { %6951 = vmatpush3.bf16.msra.mxu1 %v9143_v29  ;;  %6852 = vmatprep.subr.bf16.mxu0 %v9151_v18 }
 0x305   :  { %6952 = vmatprep.subr.bf16.mxu1 %v9157_v40 }
 0x307   :  { %6853 = vmatpush3.bf16.msra.mxu0 %v9151_v18 }
 0x308   :  { %6953 = vmatpush3.bf16.msra.mxu1 %v9157_v40  ;;  %6858 = vmatprep.subr.bf16.mxu0 %v9165_v39 }
 0x309   :  { %6958 = vmatprep.subr.bf16.mxu1 %v9171_v59 }
 0x30a   :  { %6855 = vmatmul.mubr.bf16.vlgmr.msra.gmra.mrb[232].mxu0 %v8704_v11 }
 0x30b   :  { %6955 = vmatmul.mubr.bf16.vlgmr.msra.gmra.mrb[248].mxu1 %v8704_v11  ;;  %6859 = vmatpush3.bf16.msra.mxu0 %v9165_v39 }
 0x30c   :  { %6874 = vmatprep.mubr.bf16.mxu0 %v8933_v19  ;;  %6959 = vmatpush3.bf16.msra.mxu1 %v9171_v59 }
 0x30d   :  { %6974 = vmatprep.mubr.bf16.mxu1 %v8933_v19  ;;  %6860 = vmatprep.subr.bf16.mxu0 %v9180_v51 }
 0x30e   :  { %6960 = vmatprep.subr.bf16.mxu1 %v9186_v15 }
 0x30f   :  { %6861 = vmatpush3.bf16.msra.mxu0 %v9180_v51 }
 0x310   :  { %6961 = vmatpush3.bf16.msra.mxu1 %v9186_v15  ;;  %6862 = vmatprep.subr.bf16.mxu0 %v9195_v22 }
 0x311   :  { %6962 = vmatprep.subr.bf16.mxu1 %v9202_v5 }
 0x313   :  { %6863 = vmatpush3.bf16.msra.mxu0 %v9195_v22 }
 0x314   :  { %6963 = vmatpush3.bf16.msra.mxu1 %v9202_v5  ;;  %6864 = vmatprep.subr.bf16.mxu0 %v9211_v33 }
 0x315   :  { %6964 = vmatprep.subr.bf16.mxu1 %v9217_v63 }
 0x317   :  { %6865 = vmatpush3.bf16.msra.mxu0 %v9211_v33 }
 0x318   :  { %6965 = vmatpush3.bf16.msra.mxu1 %v9217_v63  ;;  %6866 = vmatprep.subr.bf16.mxu0 %v9225_v47 }
 0x319   :  { %6966 = vmatprep.subr.bf16.mxu1 %v9231_v30 }
 0x31b   :  { %6867 = vmatpush3.bf16.msra.mxu0 %v9225_v47 }
 0x31c   :  { %6967 = vmatpush3.bf16.msra.mxu1 %v9231_v30  ;;  %6868 = vmatprep.subr.bf16.mxu0 %v9239_v58 }
 0x31d   :  { %6968 = vmatprep.subr.bf16.mxu1 %v9245_v21 }
 0x31f   :  { %6869 = vmatpush3.bf16.msra.mxu0 %v9239_v58 }
 0x320   :  { %6969 = vmatpush3.bf16.msra.mxu1 %v9245_v21  ;;  %6870 = vmatprep.subr.bf16.mxu0 %v9253_v57 }
 0x321   :  { %6970 = vmatprep.subr.bf16.mxu1 %v9259_v42 }
 0x323   :  { %6871 = vmatpush3.bf16.msra.mxu0 %v9253_v57 }
 0x324   :  { %6971 = vmatpush3.bf16.msra.mxu1 %v9259_v42  ;;  %6872 = vmatprep.subr.bf16.mxu0 %v9267_v49 }
 0x325   :  { %6972 = vmatprep.subr.bf16.mxu1 %v9273_v61 }
 0x327   :  { %6873 = vmatpush3.bf16.msra.mxu0 %v9267_v49 }
 0x328   :  { %6973 = vmatpush3.bf16.msra.mxu1 %v9273_v61  ;;  %6878 = vmatprep.subr.bf16.mxu0 %v9281_v34 }
 0x329   :  { %6978 = vmatprep.subr.bf16.mxu1 %v9287_v53 }
 0x32a   :  { %6875 = vmatmul.mubr.bf16.vlgmr.msra.gmra.mrb[232].mxu0 %v8969_v20 }
 0x32b   :  { %6975 = vmatmul.mubr.bf16.vlgmr.msra.gmra.mrb[248].mxu1 %v8969_v20  ;;  %6879 = vmatpush3.bf16.msra.mxu0 %v9281_v34 }
 0x32c   :  { %6894 = vmatprep.mubr.bf16.mxu0 %v8694_v27  ;;  %6979 = vmatpush3.bf16.msra.mxu1 %v9287_v53 }
 0x32d   :  { %6994 = vmatprep.mubr.bf16.mxu1 %v8694_v27  ;;  %6880 = vmatprep.subr.bf16.mxu0 %v9296_v44 }
 0x32e   :  { %6980 = vmatprep.subr.bf16.mxu1 %v9302_v8 }
 0x32f   :  { %6881 = vmatpush3.bf16.msra.mxu0 %v9296_v44 }
 0x330   :  { %6981 = vmatpush3.bf16.msra.mxu1 %v9302_v8  ;;  %6882 = vmatprep.subr.bf16.mxu0 %v9311_v62 }
 0x331   :  { %6982 = vmatprep.subr.bf16.mxu1 %v9318_v1 }
 0x333   :  { %6883 = vmatpush3.bf16.msra.mxu0 %v9311_v62  ;;  %v9361_v62 = vld [vmem:[%s9788_s3 + $0x268] sm:$0xff]  }
 0x334   :  { %6983 = vmatpush3.bf16.msra.mxu1 %v9318_v1  ;;  %6884 = vmatprep.subr.bf16.mxu0 %v9327_v45  ;;  %v9355_v1 = vld [vmem:[%s9788_s3 + $0x128] sm:$0xff]   ;;  %9826 = vst [vmem:[#allocation10_spill] sm:$0xff] %v9361_v62 }
 0x335   :  { %6984 = vmatprep.subr.bf16.mxu1 %v9333_v46  ;;  %9825 = vst [vmem:[#allocation9_spill] sm:$0xff] %v9355_v1 }
 0x337   :  { %6885 = vmatpush3.bf16.msra.mxu0 %v9327_v45  ;;  %v9375_v45 = vld [vmem:[%s9788_s3 + $0x270] sm:$0xff]  }
 0x338   :  { %6985 = vmatpush3.bf16.msra.mxu1 %v9333_v46  ;;  %6886 = vmatprep.subr.bf16.mxu0 %v9341_v0  ;;  %v9369_v46 = vld [vmem:[%s9788_s3 + $0x130] sm:$0xff]  }
 0x339   :  { %6986 = vmatprep.subr.bf16.mxu1 %v9347_v26 }
 0x33b   :  { %6887 = vmatpush3.bf16.msra.mxu0 %v9341_v0  ;;  %v9389_v0 = vld [vmem:[%s9788_s3 + $0x278] sm:$0xff]  }
 0x33c   :  { %6987 = vmatpush3.bf16.msra.mxu1 %v9347_v26  ;;  %6888 = vmatprep.subr.bf16.mxu0 %v9355_v1  ;;  %v9383_v26 = vld [vmem:[%s9788_s3 + $0x138] sm:$0xff]   ;;  %9828 = vst [vmem:[#allocation12_spill] sm:$0xff] %v9389_v0 }
 0x33d   :  { %6988 = vmatprep.subr.bf16.mxu1 %v9361_v62  ;;  %9827 = vst [vmem:[#allocation11_spill] sm:$0xff] %v9383_v26 }
 0x33f   :  { %6889 = vmatpush3.bf16.msra.mxu0 %v9355_v1  ;;  %v7524_v1 = vld [vmem:[%s9788_s3 + $0x180] sm:$0xff]  }
 0x340   :  { %6989 = vmatpush3.bf16.msra.mxu1 %v9361_v62  ;;  %6890 = vmatprep.subr.bf16.mxu0 %v9369_v46  ;;  %v7523_v62 = vld [vmem:[%s9788_s3 + $0x40] sm:$0xff]  }
 0x341   :  { %6990 = vmatprep.subr.bf16.mxu1 %v9375_v45 }
 0x343   :  { %6891 = vmatpush3.bf16.msra.mxu0 %v9369_v46 }
 0x344   :  { %6991 = vmatpush3.bf16.msra.mxu1 %v9375_v45  ;;  %6892 = vmatprep.subr.bf16.mxu0 %v9383_v26 }
 0x345   :  { %6992 = vmatprep.subr.bf16.mxu1 %v9389_v0 }
 0x347   :  { %6893 = vmatpush3.bf16.msra.mxu0 %v9383_v26  ;;  %v7526_v26 = vld [vmem:[%s9788_s3 + $0x188] sm:$0xff]  }
 0x348   :  { %6993 = vmatpush3.bf16.msra.mxu1 %v9389_v0  ;;  %6998 = vmatprep.subr.bf16.mxu0 %v7523_v62  ;;  %v7525_v0 = vld [vmem:[%s9788_s3 + $0x48] sm:$0xff]  }
 0x349   :  { %7098 = vmatprep.subr.bf16.mxu1 %v7524_v1 }
 0x34a   :  { %6895 = vmatmul.mubr.bf16.vlgmr.msra.gmra.mrb[232].mxu0 %v8707_v7 }
 0x34b   :  { %6995 = vmatmul.mubr.bf16.vlgmr.msra.gmra.mrb[248].mxu1 %v8707_v7  ;;  %6999 = vmatpush3.bf16.msra.mxu0 %v7523_v62  ;;  %v7527_v62 = vld [vmem:[%s9788_s3 + $0x50] sm:$0xff]  }
 0x34c   :  { %7014 = vmatprep.mubr.bf16.mxu0 %v8692_v23  ;;  %7099 = vmatpush3.bf16.msra.mxu1 %v7524_v1  ;;  %v7529_v1 = vld [vmem:[%s9788_s3 + $0x58] sm:$0xff]  }
 0x34d   :  { %7114 = vmatprep.mubr.bf16.mxu1 %v8692_v23  ;;  %7000 = vmatprep.subr.bf16.mxu0 %v7525_v0  ;;  %v7528_v23 = vld [vmem:[%s9788_s3 + $0x190] sm:$0xff]  }
 0x34e   :  { %7100 = vmatprep.subr.bf16.mxu1 %v7526_v26 }
 0x34f   :  { %7001 = vmatpush3.bf16.msra.mxu0 %v7525_v0  ;;  %v7530_v0 = vld [vmem:[%s9788_s3 + $0x198] sm:$0xff]  }
 0x350   :  { %7101 = vmatpush3.bf16.msra.mxu1 %v7526_v26  ;;  %7002 = vmatprep.subr.bf16.mxu0 %v7527_v62  ;;  %v7531_v26 = vld [vmem:[%s9788_s3 + $0x60] sm:$0xff]  }
 0x351   :  { %7102 = vmatprep.subr.bf16.mxu1 %v7528_v23 }
 0x353   :  { %7003 = vmatpush3.bf16.msra.mxu0 %v7527_v62  ;;  %v7532_v62 = vld [vmem:[%s9788_s3 + $0x1a0] sm:$0xff]  }
 0x354   :  { %7103 = vmatpush3.bf16.msra.mxu1 %v7528_v23  ;;  %7004 = vmatprep.subr.bf16.mxu0 %v7529_v1  ;;  %v7533_v23 = vld [vmem:[%s9788_s3 + $0x68] sm:$0xff]  }
 0x355   :  { %7104 = vmatprep.subr.bf16.mxu1 %v7530_v0 }
 0x357   :  { %7005 = vmatpush3.bf16.msra.mxu0 %v7529_v1  ;;  %v7534_v1 = vld [vmem:[%s9788_s3 + $0x1a8] sm:$0xff]  }
 0x358   :  { %7105 = vmatpush3.bf16.msra.mxu1 %v7530_v0  ;;  %7006 = vmatprep.subr.bf16.mxu0 %v7531_v26  ;;  %v7535_v0 = vld [vmem:[%s9788_s3 + $0x70] sm:$0xff]  }
 0x359   :  { %7106 = vmatprep.subr.bf16.mxu1 %v7532_v62 }
 0x35b   :  { %7007 = vmatpush3.bf16.msra.mxu0 %v7531_v26  ;;  %v7536_v26 = vld [vmem:[%s9788_s3 + $0x1b0] sm:$0xff]  }
 0x35c   :  { %7107 = vmatpush3.bf16.msra.mxu1 %v7532_v62  ;;  %7008 = vmatprep.subr.bf16.mxu0 %v7533_v23  ;;  %v7537_v62 = vld [vmem:[%s9788_s3 + $0x78] sm:$0xff]  }
 0x35d   :  { %7108 = vmatprep.subr.bf16.mxu1 %v7534_v1 }
 0x35f   :  { %7009 = vmatpush3.bf16.msra.mxu0 %v7533_v23  ;;  %v7538_v23 = vld [vmem:[%s9788_s3 + $0x1b8] sm:$0xff]  }
 0x360   :  { %7109 = vmatpush3.bf16.msra.mxu1 %v7534_v1  ;;  %7010 = vmatprep.subr.bf16.mxu0 %v7535_v0  ;;  %v7539_v1 = vld [vmem:[%s9788_s3] sm:$0xff]  }
 0x361   :  { %7110 = vmatprep.subr.bf16.mxu1 %v7536_v26 }
 0x363   :  { %7011 = vmatpush3.bf16.msra.mxu0 %v7535_v0  ;;  %v7540_v0 = vld [vmem:[%s9788_s3 + $0x140] sm:$0xff]  }
 0x364   :  { %7111 = vmatpush3.bf16.msra.mxu1 %v7536_v26  ;;  %7012 = vmatprep.subr.bf16.mxu0 %v7537_v62 }
 0x365   :  { %7112 = vmatprep.subr.bf16.mxu1 %v7538_v23 }
 0x367   :  { %7013 = vmatpush3.bf16.msra.mxu0 %v7537_v62 }
 0x368   :  { %7113 = vmatpush3.bf16.msra.mxu1 %v7538_v23  ;;  %7018 = vmatprep.subr.bf16.mxu0 %v7539_v1 }
 0x369   :  { %7118 = vmatprep.subr.bf16.mxu1 %v7540_v0 }
 0x36a   :  { %7015 = vmatmul.mubr.bf16.vlgmr.msra.gmra.mrb[236].mxu0 %v8704_v11 }
 0x36b   :  { %7115 = vmatmul.mubr.bf16.vlgmr.msra.gmra.mrb[252].mxu1 %v8704_v11  ;;  %7019 = vmatpush3.bf16.msra.mxu0 %v7539_v1  ;;  %v9830_v11 = vld [vmem:[#allocation4_spill] sm:$0xff] }
 0x36c   :  { %7034 = vmatprep.mubr.bf16.mxu0 %v8925_v43  ;;  %7119 = vmatpush3.bf16.msra.mxu1 %v7540_v0 }
 0x36d   :  { %7134 = vmatprep.mubr.bf16.mxu1 %v8925_v43  ;;  %7020 = vmatprep.subr.bf16.mxu0 %v8941_v38  ;;  %v9832_v43 = vld [vmem:[#allocation6_spill] sm:$0xff] }
 0x36e   :  { %7120 = vmatprep.subr.bf16.mxu1 %v8946_v60 }
 0x36f   :  { %7021 = vmatpush3.bf16.msra.mxu0 %v8941_v38  ;;  %v9835_v38 = vld [vmem:[#allocation9_spill] sm:$0xff] }
 0x370   :  { %7121 = vmatpush3.bf16.msra.mxu1 %v8946_v60  ;;  %7022 = vmatprep.subr.bf16.mxu0 %v8960_v2  ;;  %v9836_v60 = vld [vmem:[#allocation10_spill] sm:$0xff] }
 0x371   :  { %7122 = vmatprep.subr.bf16.mxu1 %v8965_v25 }
 0x373   :  { %7023 = vmatpush3.bf16.msra.mxu0 %v8960_v2  ;;  %v9837_v2 = vld [vmem:[#allocation11_spill] sm:$0xff] }
 0x374   :  { %7123 = vmatpush3.bf16.msra.mxu1 %v8965_v25  ;;  %7024 = vmatprep.subr.bf16.mxu0 %v8980_v50  ;;  %v9838_v25 = vld [vmem:[#allocation12_spill] sm:$0xff] }
 0x375   :  { %7124 = vmatprep.subr.bf16.mxu1 %v8985_v31 }
 0x377   :  { %7025 = vmatpush3.bf16.msra.mxu0 %v8980_v50  ;;  %v7468_v50 = vld [vmem:[%s9789_s5] sm:$0xff]  }
 0x378   :  { %7125 = vmatpush3.bf16.msra.mxu1 %v8985_v31  ;;  %7026 = vmatprep.subr.bf16.mxu0 %v8994_v55  ;;  %v9839_v31 = vmov 0.0  }
 0x379   :  { %7126 = vmatprep.subr.bf16.mxu1 %v8999_v35 }
 0x37b   :  { %7027 = vmatpush3.bf16.msra.mxu0 %v8994_v55  ;;  %v9840_v55 = vld [vmem:[#allocation2_spill] sm:$0xff] }
 0x37c   :  { %7127 = vmatpush3.bf16.msra.mxu1 %v8999_v35  ;;  %7028 = vmatprep.subr.bf16.mxu0 %v9008_v3  ;;  %v7471_v35 = vld [vmem:[%s9789_s5 + $0x48] sm:$0xff]  }
 0x37d   :  { %7128 = vmatprep.subr.bf16.mxu1 %v9013_v52 }
 0x37f   :  { %7029 = vmatpush3.bf16.msra.mxu0 %v9008_v3  ;;  %v7470_v3 = vld [vmem:[%s9789_s5 + $0x8] sm:$0xff]  }
 0x380   :  { %7129 = vmatpush3.bf16.msra.mxu1 %v9013_v52  ;;  %7030 = vmatprep.subr.bf16.mxu0 %v9022_v10  ;;  %v7473_v52 = vld [vmem:[%s9789_s5 + $0x50] sm:$0xff]  }
 0x381   :  { %7130 = vmatprep.subr.bf16.mxu1 %v9027_v37 }
 0x383   :  { %7031 = vmatpush3.bf16.msra.mxu0 %v9022_v10  ;;  %v7472_v10 = vld [vmem:[%s9789_s5 + $0x10] sm:$0xff]  }
 0x384   :  { %7131 = vmatpush3.bf16.msra.mxu1 %v9027_v37  ;;  %7032 = vmatprep.subr.bf16.mxu0 %v9036_v9  ;;  %v7475_v37 = vld [vmem:[%s9789_s5 + $0x58] sm:$0xff]  }
 0x385   :  { %7132 = vmatprep.subr.bf16.mxu1 %v9041_v6 }
 0x387   :  { %7033 = vmatpush3.bf16.msra.mxu0 %v9036_v9  ;;  %v7474_v9 = vld [vmem:[%s9789_s5 + $0x18] sm:$0xff]  }
 0x388   :  { %7133 = vmatpush3.bf16.msra.mxu1 %v9041_v6  ;;  %7038 = vmatprep.subr.bf16.mxu0 %v9050_v32  ;;  %v7477_v6 = vld [vmem:[%s9789_s5 + $0x60] sm:$0xff]  }
 0x389   :  { %7138 = vmatprep.subr.bf16.mxu1 %v9055_v48 }
 0x38a   :  { %7035 = vmatmul.mubr.bf16.vlgmr.msra.gmra.mrb[236].mxu0 %v8935_v13 }
 0x38b   :  { %7135 = vmatmul.mubr.bf16.vlgmr.msra.gmra.mrb[252].mxu1 %v8935_v13  ;;  %7039 = vmatpush3.bf16.msra.mxu0 %v9050_v32  ;;  %v7476_v32 = vld [vmem:[%s9789_s5 + $0x20] sm:$0xff]  }
 0x38c   :  { %7054 = vmatprep.mubr.bf16.mxu0 %v8933_v19  ;;  %7139 = vmatpush3.bf16.msra.mxu1 %v9055_v48  ;;  %v5502_v48 = vld [vmem:[%s9790_s4] ss:$0 sm:$0xff] }
 0x38d   :  { %7154 = vmatprep.mubr.bf16.mxu1 %v8933_v19  ;;  %7040 = vmatprep.subr.bf16.mxu0 %v9064_v41  ;;  %v9833_v19 = vld [vmem:[#allocation7_spill] sm:$0xff] }
 0x38e   :  { %7140 = vmatprep.subr.bf16.mxu1 %v9069_v14 }
 0x38f   :  { %7041 = vmatpush3.bf16.msra.mxu0 %v9064_v41 }
 0x390   :  { %7141 = vmatpush3.bf16.msra.mxu1 %v9069_v14  ;;  %7042 = vmatprep.subr.bf16.mxu0 %v9080_v16 }
 0x391   :  { %7142 = vmatprep.subr.bf16.mxu1 %v9087_v17 }
 0x393   :  { %7043 = vmatpush3.bf16.msra.mxu0 %v9080_v16 }
 0x394   :  { %7143 = vmatpush3.bf16.msra.mxu1 %v9087_v17  ;;  %7044 = vmatprep.subr.bf16.mxu0 %v9095_v28 }
 0x395   :  { %7144 = vmatprep.subr.bf16.mxu1 %v9101_v12 }
 0x397   :  { %7045 = vmatpush3.bf16.msra.mxu0 %v9095_v28 }
 0x398   :  { %7145 = vmatpush3.bf16.msra.mxu1 %v9101_v12  ;;  %7046 = vmatprep.subr.bf16.mxu0 %v9109_v24 }
 0x399   :  { %7146 = vmatprep.subr.bf16.mxu1 %v9115_v56 }
 0x39b   :  { %7047 = vmatpush3.bf16.msra.mxu0 %v9109_v24 }
 0x39c   :  { %7147 = vmatpush3.bf16.msra.mxu1 %v9115_v56  ;;  %7048 = vmatprep.subr.bf16.mxu0 %v9123_v54 }
 0x39d   :  { %7148 = vmatprep.subr.bf16.mxu1 %v9129_v36 }
 0x39f   :  { %7049 = vmatpush3.bf16.msra.mxu0 %v9123_v54 }
 0x3a0   :  { %7149 = vmatpush3.bf16.msra.mxu1 %v9129_v36  ;;  %7050 = vmatprep.subr.bf16.mxu0 %v9137_v4 }
 0x3a1   :  { %7150 = vmatprep.subr.bf16.mxu1 %v9143_v29 }
 0x3a3   :  { %7051 = vmatpush3.bf16.msra.mxu0 %v9137_v4 }
 0x3a4   :  { %7151 = vmatpush3.bf16.msra.mxu1 %v9143_v29  ;;  %7052 = vmatprep.subr.bf16.mxu0 %v9151_v18 }
 0x3a5   :  { %7152 = vmatprep.subr.bf16.mxu1 %v9157_v40 }
 0x3a7   :  { %7053 = vmatpush3.bf16.msra.mxu0 %v9151_v18 }
 0x3a8   :  { %7153 = vmatpush3.bf16.msra.mxu1 %v9157_v40  ;;  %7058 = vmatprep.subr.bf16.mxu0 %v9165_v39 }
 0x3a9   :  { %7158 = vmatprep.subr.bf16.mxu1 %v9171_v59 }
 0x3aa   :  { %7055 = vmatmul.mubr.bf16.vlgmr.msra.gmra.mrb[236].mxu0 %v8969_v20 }
 0x3ab   :  { %7155 = vmatmul.mubr.bf16.vlgmr.msra.gmra.mrb[252].mxu1 %v8969_v20  ;;  %7059 = vmatpush3.bf16.msra.mxu0 %v9165_v39  ;;  %v7469_v20 = vld [vmem:[%s9789_s5 + $0x40] sm:$0xff]  }
 0x3ac   :  { %7074 = vmatprep.mubr.bf16.mxu0 %v8694_v27  ;;  %7159 = vmatpush3.bf16.msra.mxu1 %v9171_v59 }
 0x3ad   :  { %7174 = vmatprep.mubr.bf16.mxu1 %v8694_v27  ;;  %7060 = vmatprep.subr.bf16.mxu0 %v9180_v51  ;;  %v9829_v27 = vld [vmem:[#allocation3_spill] sm:$0xff] }
 0x3ae   :  { %7160 = vmatprep.subr.bf16.mxu1 %v9186_v15 }
 0x3af   :  { %7061 = vmatpush3.bf16.msra.mxu0 %v9180_v51 }
 0x3b0   :  { %7161 = vmatpush3.bf16.msra.mxu1 %v9186_v15  ;;  %7062 = vmatprep.subr.bf16.mxu0 %v9195_v22 }
 0x3b1   :  { %7162 = vmatprep.subr.bf16.mxu1 %v9202_v5 }
 0x3b3   :  { %7063 = vmatpush3.bf16.msra.mxu0 %v9195_v22 }
 0x3b4   :  { %7163 = vmatpush3.bf16.msra.mxu1 %v9202_v5  ;;  %7064 = vmatprep.subr.bf16.mxu0 %v9211_v33 }
 0x3b5   :  { %7164 = vmatprep.subr.bf16.mxu1 %v9217_v63 }
 0x3b7   :  { %7065 = vmatpush3.bf16.msra.mxu0 %v9211_v33  ;;  %v7478_v33 = vld [vmem:[%s9789_s5 + $0x28] sm:$0xff]  }
 0x3b8   :  { %7165 = vmatpush3.bf16.msra.mxu1 %v9217_v63  ;;  %7066 = vmatprep.subr.bf16.mxu0 %v9225_v47  ;;  %v7479_v63 = vld [vmem:[%s9789_s5 + $0x68] sm:$0xff]  }
 0x3b9   :  { %7166 = vmatprep.subr.bf16.mxu1 %v9231_v30 }
 0x3bb   :  { %7067 = vmatpush3.bf16.msra.mxu0 %v9225_v47  ;;  %v7480_v47 = vld [vmem:[%s9789_s5 + $0x30] sm:$0xff]  }
 0x3bc   :  { %7167 = vmatpush3.bf16.msra.mxu1 %v9231_v30  ;;  %7068 = vmatprep.subr.bf16.mxu0 %v9239_v58  ;;  %v7481_v30 = vld [vmem:[%s9789_s5 + $0x70] sm:$0xff]  }
 0x3bd   :  { %7168 = vmatprep.subr.bf16.mxu1 %v9245_v21 }
 0x3bf   :  { %7069 = vmatpush3.bf16.msra.mxu0 %v9239_v58  ;;  %v7482_v58 = vld [vmem:[%s9789_s5 + $0x38] sm:$0xff]  }
 0x3c0   :  { %7169 = vmatpush3.bf16.msra.mxu1 %v9245_v21  ;;  %7070 = vmatprep.subr.bf16.mxu0 %v9253_v57  ;;  %v7483_v21 = vld [vmem:[%s9789_s5 + $0x78] sm:$0xff]  }
 0x3c1   :  { %7170 = vmatprep.subr.bf16.mxu1 %v9259_v42 }
 0x3c3   :  { %7071 = vmatpush3.bf16.msra.mxu0 %v9253_v57 }
 0x3c4   :  { %7171 = vmatpush3.bf16.msra.mxu1 %v9259_v42  ;;  %7072 = vmatprep.subr.bf16.mxu0 %v9267_v49 }
 0x3c5   :  { %7172 = vmatprep.subr.bf16.mxu1 %v9273_v61 }
 0x3c7   :  { %7073 = vmatpush3.bf16.msra.mxu0 %v9267_v49 }
 0x3c8   :  { %7173 = vmatpush3.bf16.msra.mxu1 %v9273_v61  ;;  %7078 = vmatprep.subr.bf16.mxu0 %v9281_v34 }
 0x3c9   :  { %7178 = vmatprep.subr.bf16.mxu1 %v9287_v53 }
 0x3ca   :  { %7075 = vmatmul.mubr.bf16.vlgmr.msra.gmra.mrb[236].mxu0 %v8707_v7 }
 0x3cb   :  { %7175 = vmatmul.mubr.bf16.vlgmr.msra.gmra.mrb[252].mxu1 %v8707_v7  ;;  %7079 = vmatpush3.bf16.msra.mxu0 %v9281_v34  ;;  %v9831_v7 = vld [vmem:[#allocation5_spill] sm:$0xff] }
 0x3cc   :  { %7094 = vmatprep.mubr.bf16.mxu0 %v8935_v13  ;;  %7179 = vmatpush3.bf16.msra.mxu1 %v9287_v53 }
 0x3cd   :  { %7194 = vmatprep.mubr.bf16.mxu1 %v8935_v13  ;;  %7080 = vmatprep.subr.bf16.mxu0 %v9296_v44  ;;  %v9834_v13 = vld [vmem:[#allocation8_spill] sm:$0xff] }
 0x3ce   :  { %7180 = vmatprep.subr.bf16.mxu1 %v9302_v8 }
 0x3cf   :  { %7081 = vmatpush3.bf16.msra.mxu0 %v9296_v44 }
 0x3d0   :  { %7181 = vmatpush3.bf16.msra.mxu1 %v9302_v8  ;;  %7082 = vmatprep.subr.bf16.mxu0 %v9829_v27 }
 0x3d1   :  { %7182 = vmatprep.subr.bf16.mxu1 %v9830_v11 }
 0x3d3   :  { %7083 = vmatpush3.bf16.msra.mxu0 %v9829_v27 }
 0x3d4   :  { %7183 = vmatpush3.bf16.msra.mxu1 %v9830_v11  ;;  %7084 = vmatprep.subr.bf16.mxu0 %v9831_v7 }
 0x3d5   :  { %7184 = vmatprep.subr.bf16.mxu1 %v9832_v43 }
 0x3d7   :  { %7085 = vmatpush3.bf16.msra.mxu0 %v9831_v7 }
 0x3d8   :  { %7185 = vmatpush3.bf16.msra.mxu1 %v9832_v43  ;;  %7086 = vmatprep.subr.bf16.mxu0 %v9833_v19 }
 0x3d9   :  { %7186 = vmatprep.subr.bf16.mxu1 %v9834_v13 }
 0x3db   :  { %7087 = vmatpush3.bf16.msra.mxu0 %v9833_v19 }
 0x3dc   :  { %7187 = vmatpush3.bf16.msra.mxu1 %v9834_v13  ;;  %7088 = vmatprep.subr.bf16.mxu0 %v9835_v38 }
 0x3dd   :  { %7188 = vmatprep.subr.bf16.mxu1 %v9836_v60 }
 0x3df   :  { %7089 = vmatpush3.bf16.msra.mxu0 %v9835_v38 }
 0x3e0   :  { %7189 = vmatpush3.bf16.msra.mxu1 %v9836_v60  ;;  %7090 = vmatprep.subr.bf16.mxu0 %v9369_v46 }
 0x3e1   :  { %7190 = vmatprep.subr.bf16.mxu1 %v9375_v45 }
 0x3e3   :  { %7091 = vmatpush3.bf16.msra.mxu0 %v9369_v46 }
 0x3e4   :  { %7191 = vmatpush3.bf16.msra.mxu1 %v9375_v45  ;;  %7092 = vmatprep.subr.bf16.mxu0 %v9837_v2 }
 0x3e5   :  { %7192 = vmatprep.subr.bf16.mxu1 %v9838_v25 }
 0x3e7   :  { %7093 = vmatpush3.bf16.msra.mxu0 %v9837_v2 }
 0x3e8   :  { %7193 = vmatpush3.bf16.msra.mxu1 %v9838_v25  ;;  %7198 = vmatprep.subr.bf16.mxu0 %v9839_v31 }
 0x3e9   :  { %7218 = vmatprep.subr.bf16.mxu1 %v9839_v31 }
 0x3ea   :  { %7095 = vmatmul.mubr.bf16.vlgmr.msra.gmra.mrb[236].mxu0 %v9840_v55 }
 0x3eb   :  { %7195 = vmatmul.mubr.bf16.vlgmr.msra.gmra.mrb[252].mxu1 %v9840_v55  ;;  %7199 = vmatpush3.bf16.msra.mxu0 %v7469_v20  ;;  %v7484_v20 = vld [vmem:[%s9789_s5 + $0xc0] sm:$0xff]  }
 0x3ec   :  { %7219 = vmatpush3.bf16.msra.mxu1 %v7468_v50  ;;  %7200 = vmatprep.subr.bf16.mxu0 %v9839_v31 }
 0x3ed   :  { %7220 = vmatprep.subr.bf16.mxu1 %v9839_v31  ;;  %7234 = vmatprep.mubr.msk.bf16.mxu1 %vm7542_vm1, %v9839_v31 }
 0x3ee   :  { %7214 = vmatprep.mubr.msk.bf16.mxu0 %vm7542_vm1, %v9839_v31 }
 0x3ef   :  { %7201 = vmatpush3.bf16.msra.mxu0 %v7471_v35  ;;  %v7485_v35 = vld [vmem:[%s9789_s5 + $0x80] sm:$0xff]  }
 0x3f0   :  { %7221 = vmatpush3.bf16.msra.mxu1 %v7470_v3  ;;  %7202 = vmatprep.subr.bf16.mxu0 %v9839_v31 }
 0x3f1   :  { %7222 = vmatprep.subr.bf16.mxu1 %v9839_v31 }
 0x3f3   :  { %7203 = vmatpush3.bf16.msra.mxu0 %v7473_v52  ;;  %v7486_v52 = vld [vmem:[%s9789_s5 + $0xc8] sm:$0xff]  }
 0x3f4   :  { %7223 = vmatpush3.bf16.msra.mxu1 %v7472_v10  ;;  %7204 = vmatprep.subr.bf16.mxu0 %v9839_v31  ;;  %v7487_v10 = vld [vmem:[%s9789_s5 + $0x88] sm:$0xff]  }
 0x3f5   :  { %7224 = vmatprep.subr.bf16.mxu1 %v9839_v31 }
 0x3f7   :  { %7205 = vmatpush3.bf16.msra.mxu0 %v7475_v37  ;;  %v7488_v37 = vld [vmem:[%s9789_s5 + $0xd0] sm:$0xff]  }
 0x3f8   :  { %7225 = vmatpush3.bf16.msra.mxu1 %v7474_v9  ;;  %7206 = vmatprep.subr.bf16.mxu0 %v9839_v31  ;;  %v7489_v9 = vld [vmem:[%s9789_s5 + $0x90] sm:$0xff]  }
 0x3f9   :  { %7226 = vmatprep.subr.bf16.mxu1 %v9839_v31 }
 0x3fb   :  { %7207 = vmatpush3.bf16.msra.mxu0 %v7477_v6  ;;  %v7490_v6 = vld [vmem:[%s9789_s5 + $0xd8] sm:$0xff]  }
 0x3fc   :  { %7227 = vmatpush3.bf16.msra.mxu1 %v7476_v32  ;;  %7208 = vmatprep.subr.bf16.mxu0 %v9839_v31  ;;  %v7491_v32 = vld [vmem:[%s9789_s5 + $0x98] sm:$0xff]  }
 0x3fd   :  { %7228 = vmatprep.subr.bf16.mxu1 %v9839_v31 }
 0x3ff   :  { %7209 = vmatpush3.bf16.msra.mxu0 %v7479_v63 }
 0x400   :  { %7229 = vmatpush3.bf16.msra.mxu1 %v7478_v33  ;;  %7210 = vmatprep.subr.bf16.mxu0 %v9839_v31 }
 0x401   :  { %7230 = vmatprep.subr.bf16.mxu1 %v9839_v31 }
 0x403   :  { %7211 = vmatpush3.bf16.msra.mxu0 %v7481_v30 }
 0x404   :  { %7231 = vmatpush3.bf16.msra.mxu1 %v7480_v47  ;;  %7212 = vmatprep.subr.bf16.mxu0 %v9839_v31 }
 0x405   :  { %7232 = vmatprep.subr.bf16.mxu1 %v9839_v31 }
 0x407   :  { %7213 = vmatpush3.bf16.msra.mxu0 %v7483_v21 }
 0x408   :  { %7233 = vmatpush3.bf16.msra.mxu1 %v7482_v58  ;;  %7238 = vmatprep.subr.bf16.mxu0 %v9839_v31 }
 0x409   :  { %7258 = vmatprep.subr.bf16.mxu1 %v9839_v31 }
 0x41d   :  { %v6896_v41 = vpop.f32.mrb[232].mxu0 }
 0x41e   :  { %v3497_v14 = vadd.f32 %v6896_v41, %v5502_v48  ;;  %v6996_v16 = vpop.f32.mrb[248].mxu1  ;;  %v3469_v17 = vpop.f32.mrb[233].mxu0  ;;  %v7493_v41 = vld [vmem:[%s9789_s5 + $0xa0] sm:$0xff]  }
 0x41f   :  { %v4083_v28 = vadd.f32 %v6996_v16, %v5502_v48  ;;  %v3495_v12 = vadd.f32 %v5502_v48, %v3469_v17  ;;  %v4062_v24 = vpop.f32.mrb[249].mxu1  ;;  %v6897_v56 = vpop.f32.mrb[234].mxu0  ;;  %v7495_v16 = vld [vmem:[%s9789_s5 + $0xa8] sm:$0xff]   ;;  %v7496_v17 = vld [vmem:[%s9789_s5 + $0xf0] sm:$0xff]  }
 0x420   :  { %v4081_v54 = vadd.f32 %v5502_v48, %v4062_v24  ;;  %v3498_v36 = vadd.f32 %v6897_v56, %v5502_v48  ;;  %v6997_v4 = vpop.f32.mrb[250].mxu1  ;;  %v3472_v29 = vpop.f32.mrb[235].mxu0  ;;  %v7499_v56 = vld [vmem:[%s9789_s5 + $0xb8] sm:$0xff]  }
 0x421   :  { %v4087_v18 = vmax.f32 %v3497_v14, %v4083_v28  ;;  %v4084_v40 = vadd.f32 %v6997_v4, %v5502_v48  ;;  %v3496_v39 = vadd.f32 %v5502_v48, %v3472_v29  ;;  %v4065_v59 = vpop.f32.mrb[251].mxu1  ;;  %v7494_v14 = vld [vmem:[%s9789_s5 + $0xe8] sm:$0xff]   ;;  %v7497_v28 = vld [vmem:[%s9789_s5 + $0xb0] sm:$0xff]   ;;  %v7500_v29 = vld [vmem:[%s9791_s7] sm:$0xff]  }
 0x422   :  { %v4085_v51 = vmax.f32 %v3495_v12, %v4081_v54  ;;  %v4082_v15 = vadd.f32 %v5502_v48, %v4065_v59  ;;  %v7498_v12 = vld [vmem:[%s9789_s5 + $0xf8] sm:$0xff]   ;;  %v7504_v59 = vld [vmem:[%s9791_s7 + $0x20] sm:$0xff]  }
 0x423   :  { %v4088_v22 = vmax.f32 %v3498_v36, %v4084_v40  ;;  %v7502_v40 = vld [vmem:[%s9791_s7 + $0x10] sm:$0xff]  }
 0x424   :  { %v4086_v5 = vmax.f32 %v3496_v39, %v4082_v15  ;;  %v7503_v39 = vld [vmem:[%s9791_s7 + $0x18] sm:$0xff]   ;;  %v7506_v15 = vld [vmem:[%s9791_s7 + $0x30] sm:$0xff]  }
 0x4bd   :  { %v7096_v57 = vpop.f32.mrb[236].mxu0 }
 0x4be   :  { %v4349_v42 = vadd.f32 %v7096_v57, %v5502_v48  ;;  %v7196_v49 = vpop.f32.mrb[252].mxu1  ;;  %v4328_v61 = vpop.f32.mrb[237].mxu0 }
 0x4bf   :  { %v4347_v34 = vadd.f32 %v5502_v48, %v4328_v61  ;;  %v4593_v53 = vpop.f32.mrb[253].mxu1  ;;  %v7097_v44 = vpop.f32.mrb[238].mxu0  ;;  %v9672_v45 = vadd.f32 %v7196_v49, %v5502_v48 }
 0x4c0   :  { %v9670_v8 = vmax.f32 %v4087_v18, %v4349_v42  ;;  %v4350_v46 = vadd.f32 %v7097_v44, %v5502_v48  ;;  %v7197_v26 = vpop.f32.mrb[254].mxu1  ;;  %v4331_v62 = vpop.f32.mrb[239].mxu0  ;;  %v4612_v1 = vadd.f32 %v5502_v48, %v4593_v53  ;;  %v7501_v18 = vld [vmem:[%s9791_s7 + $0x8] sm:$0xff]  }
 0x4c1   :  { %v4351_v23 = vmax.f32 %v4085_v51, %v4347_v34  ;;  %v4348_v0 = vadd.f32 %v5502_v48, %v4331_v62  ;;  %v4596_v27 = vpop.f32.mrb[255].mxu1  ;;  %v4615_v43 = vadd.f32 %v7197_v26, %v5502_v48  ;;  %v7505_v51 = vld [vmem:[%s9791_s7 + $0x28] sm:$0xff]  }
 0x4c2   :  { %v4618_v11 = vmax.f32 %v9670_v8, %v9672_v45  ;;  %v4354_v7 = vmax.f32 %v4088_v22, %v4350_v46  ;;  %v4613_v38 = vadd.f32 %v5502_v48, %v4596_v27  ;;  %v7492_v48 = vld [vmem:[%s9789_s5 + $0xe0] sm:$0xff]   ;;  %v7507_v22 = vld [vmem:[%s9791_s7 + $0x38] sm:$0xff]  }
 0x4c3   :  { %v4616_v19 = vmax.f32 %v4351_v23, %v4612_v1  ;;  %v4352_v13 = vmax.f32 %v4086_v5, %v4348_v0  ;;  %v5703_v45 = vld [vmem:[%s9792_s6] ss:$0 sm:$0xff] }
 0x4c4   :  { %v4619_v60 = vmax.f32 %v4354_v7, %v4615_v43  ;;  %v4622_v54 = vmax.f32 %v4618_v11, 0.0  ;;  %v5704_v27 = vld [vmem:[%s9793_s8] ss:$0 sm:$0xff] }
 0x4c5   :  { %v4620_v2 = vmax.f32 %v4616_v19, 0.0  ;;  %v4617_v25 = vmax.f32 %v4352_v13, %v4613_v38 }
 0x4c6   :  { %v4623_v24 = vmax.f32 %v4619_v60, 0.0  ;;  %v4835_v4 = vpack.c.bf16 %v4622_v54, %v4622_v54 }
 0x4c7   :  { %v4624_v50 = vpack.c.bf16 %v4620_v2, %v4620_v2  ;;  %v4621_v55 = vmax.f32 %v4617_v25, 0.0 }
 0x4c8   :  { %v4942_v36 = vpack.c.bf16 %v4623_v24, %v4623_v24 }
 0x4c9   :  { %v4641_v3 = vpack.c.bf16 %v4621_v55, %v4621_v55  ;;  %7235 = vmatmul.mubr.bf16.vlgmr.msra.gmra.mrb[0].mxu1 %v4624_v50 }
 0x4ca   :  { %7259 = vmatpush3.bf16.msra.mxu1 %v7484_v20  ;;  %7274 = vmatprep.mubr.msk.bf16.mxu1 %vm7542_vm1, %v9839_v31 }
 0x4cb   :  { %7215 = vmatmul.mubr.bf16.vlgmr.msra.gmra.mrb[240].mxu0 %v4641_v3  ;;  %7260 = vmatprep.subr.bf16.mxu1 %v9839_v31 }
 0x4cc   :  { %7239 = vmatpush3.bf16.msra.mxu0 %v7485_v35  ;;  %7254 = vmatprep.mubr.msk.bf16.mxu0 %vm7542_vm1, %v9839_v31 }
 0x4cd   :  { %7240 = vmatprep.subr.bf16.mxu0 %v9839_v31 }
 0x4ce   :  { %7261 = vmatpush3.bf16.msra.mxu1 %v7486_v52 }
 0x4cf   :  { %7262 = vmatprep.subr.bf16.mxu1 %v9839_v31 }
 0x4d0   :  { %7241 = vmatpush3.bf16.msra.mxu0 %v7487_v10 }
 0x4d1   :  { %7242 = vmatprep.subr.bf16.mxu0 %v9839_v31 }
 0x4d2   :  { %7263 = vmatpush3.bf16.msra.mxu1 %v7488_v37 }
 0x4d3   :  { %7264 = vmatprep.subr.bf16.mxu1 %v9839_v31 }
 0x4d4   :  { %7243 = vmatpush3.bf16.msra.mxu0 %v7489_v9 }
 0x4d5   :  { %7244 = vmatprep.subr.bf16.mxu0 %v9839_v31 }
 0x4d6   :  { %7265 = vmatpush3.bf16.msra.mxu1 %v7490_v6 }
 0x4d7   :  { %7266 = vmatprep.subr.bf16.mxu1 %v9839_v31 }
 0x4d8   :  { %7245 = vmatpush3.bf16.msra.mxu0 %v7491_v32 }
 0x4d9   :  { %7246 = vmatprep.subr.bf16.mxu0 %v9839_v31 }
 0x4da   :  { %7267 = vmatpush3.bf16.msra.mxu1 %v7492_v48 }
 0x4db   :  { %7268 = vmatprep.subr.bf16.mxu1 %v9839_v31 }
 0x4dc   :  { %7247 = vmatpush3.bf16.msra.mxu0 %v7493_v41 }
 0x4dd   :  { %7248 = vmatprep.subr.bf16.mxu0 %v9839_v31 }
 0x4de   :  { %7269 = vmatpush3.bf16.msra.mxu1 %v7494_v14 }
 0x4df   :  { %7270 = vmatprep.subr.bf16.mxu1 %v9839_v31 }
 0x4e0   :  { %7249 = vmatpush3.bf16.msra.mxu0 %v7495_v16 }
 0x4e1   :  { %7250 = vmatprep.subr.bf16.mxu0 %v9839_v31 }
 0x4e2   :  { %7271 = vmatpush3.bf16.msra.mxu1 %v7496_v17 }
 0x4e3   :  { %7272 = vmatprep.subr.bf16.mxu1 %v9839_v31 }
 0x4e4   :  { %7251 = vmatpush3.bf16.msra.mxu0 %v7497_v28 }
 0x4e5   :  { %7252 = vmatprep.subr.bf16.mxu0 %v9839_v31 }
 0x4e6   :  { %7273 = vmatpush3.bf16.msra.mxu1 %v7498_v12 }
 0x4e8   :  { %7253 = vmatpush3.bf16.msra.mxu0 %v7499_v56 }
 0x4e9   :  { %7275 = vmatmul.mubr.bf16.vlgmr.msra.gmra.mrb[4].mxu1 %v4942_v36  ;;  %7278 = vmatprep.subr.bf16.mxu0 %v9839_v31 }
 0x4eb   :  { %7255 = vmatmul.mubr.bf16.vlgmr.msra.gmra.mrb[244].mxu0 %v4835_v4 }
 0x4ec   :  { %7294 = vmatprep.mubr.msk.bf16.mxu0 %vm7542_vm1, %v9839_v31  ;;  %7279 = vmatpush3.bf16.msra.mxu0 %v7500_v29 }
 0x4ed   :  { %7280 = vmatprep.subr.bf16.mxu0 %v9839_v31 }
 0x4f0   :  { %7281 = vmatpush3.bf16.msra.mxu0 %v7501_v18 }
 0x4f1   :  { %7282 = vmatprep.subr.bf16.mxu0 %v9839_v31 }
 0x4f4   :  { %7283 = vmatpush3.bf16.msra.mxu0 %v7502_v40 }
 0x4f5   :  { %7284 = vmatprep.subr.bf16.mxu0 %v9839_v31 }
 0x4f8   :  { %7285 = vmatpush3.bf16.msra.mxu0 %v7503_v39 }
 0x4f9   :  { %7286 = vmatprep.subr.bf16.mxu0 %v9839_v31 }
 0x4fc   :  { %7287 = vmatpush3.bf16.msra.mxu0 %v7504_v59 }
 0x4fd   :  { %7288 = vmatprep.subr.bf16.mxu0 %v9839_v31 }
 0x500   :  { %7289 = vmatpush3.bf16.msra.mxu0 %v7505_v51 }
 0x501   :  { %7290 = vmatprep.subr.bf16.mxu0 %v9839_v31 }
 0x504   :  { %7291 = vmatpush3.bf16.msra.mxu0 %v7506_v15 }
 0x505   :  { %7292 = vmatprep.subr.bf16.mxu0 %v9839_v31 }
 0x508   :  { %7293 = vmatpush3.bf16.msra.mxu0 %v7507_v22 }
 0x59c   :  { %v4829_v5 = vpop.f32.mrb[0].mxu1 }
 0x59d   :  { %v7236_v33 = vpop.f32.mrb[1].mxu1 }
 0x59e   :  { %v4741_v63 = vpop.f32.mrb[240].mxu0  ;;  %v4832_v47 = vpop.f32.mrb[2].mxu1 }
 0x59f   :  { %v4830_v30 = vadd.f32 %v4829_v5, %v4741_v63  ;;  %v7216_v58 = vpop.f32.mrb[241].mxu0  ;;  %v7237_v21 = vpop.f32.mrb[3].mxu1 }
 0x5a0   :  { %v4744_v57 = vpop.f32.mrb[242].mxu0 }
 0x5a1   :  { %v7217_v42 = vpop.f32.mrb[243].mxu0 }
 0x5bc   :  { %v5042_v49 = vpop.f32.mrb[4].mxu1 }
 0x5bd   :  { %v7276_v61 = vpop.f32.mrb[5].mxu1 }
 0x5be   :  { %v4935_v34 = vpop.f32.mrb[244].mxu0  ;;  %v5045_v53 = vpop.f32.mrb[6].mxu1 }
 0x5bf   :  { %v4941_v44 = vadd.f32 %v4935_v34, %v4830_v30  ;;  %v7256_v31 = vpop.f32.mrb[245].mxu0  ;;  %v7277_v8 = vpop.f32.mrb[7].mxu1 }
 0x5c0   :  { %v4938_v46 = vpop.f32.mrb[246].mxu0 }
 0x5c1   :  { %v5048_v26 = vadd.f32 %v5042_v49, %v4941_v44  ;;  %v7257_v62 = vpop.f32.mrb[247].mxu0 }
 0x5c3   :  { %v5056_v23 = vadd.f32 %v5703_v45, %v5048_v26 }
 0x5c5   :  { %v5057_v1 = vmax.f32 %v5056_v23, 0.0 }
 0x5c7   :  { %v5058_v0 = vpack.c.bf16 %v5057_v1, %v5057_v1 }
 0x5c9   :  { %7295 = vmatmul.mubr.bf16.vlgmr.msra.gmra.mrb[248].mxu0 %v5058_v0 }
 0x69c   :  { %v5164_v11 = vpop.f32.mrb[248].mxu0 }
 0x69d   :  { %v5165_v7 = vadd.f32 %v5704_v27, %v5164_v11  ;;  %v7296_v43 = vpop.f32.mrb[249].mxu0 }
 0x69e   :  { %v5167_v19 = vpop.f32.mrb[250].mxu0 }
 0x69f   :  { %5170 = vmax.xlane.f32.xlu0 %v5165_v7  ;;  %v7297_v13 = vpop.f32.mrb[251].mxu0 }
 0x72c   :  { %v5171_v38 = vpop.xlane.xlu0 %5170 }
 0x72d   :  { %v5172_v60 = vsub.f32 %v5165_v7, %v5171_v38 }
 0x72f   :  { %v5173_v2 = vmul.f32 1.442695, %v5172_v60 }
 0x731   :  { %7508 = vpow2.f32 %v5173_v2 }
 0x73b   :  { %v7509_v25 = vpop.eup %7508 }
 0x73c   :  { %5175 = vadd.xlane.f32.xlu0 %v7509_v25 }
 0x7c9   :  { %v5176_v20 = vpop.xlane.xlu0 %5175 }
 0x7ca   :  { %7510 = vlog2.f32 %v5176_v20 }
 0x7d4   :  { %v7511_v50 = vpop.eup %7510 }
 0x7d5   :  { %v5178_v55 = vmul.f32 0.6931472, %v7511_v50 }
 0x7d7   :  { %v5179_v35 = vsub.f32 %v5172_v60, %v5178_v55 }
 0x7d9   :  { %5180 = vst [vmem:[%s9794_s9] sm:$0xff] %v5179_v35 }

</bundles_post_ra>
